<compile_context>
chip_gen: v7x
topology: tpu7x:2x2x1
jax: 0.10.0
libtpu: 0.0.40
codegen_flags: <defaults>
</compile_context>

<pallas_src>
import collections
import functools

import jax
import jax.numpy as jnp
from jax.experimental import pallas as pl
from jax.experimental.pallas import tpu as pltpu

D_IN = 784        # 28 * 28
D_H = 400
D_Z = 20
D_HEADS = 128     # lane-dense padded width for the fused [mu | logvar] output slab


def _round_up(x, m):
    return (x + m - 1) // m * m


# ----------------------------------------------------------------------------- kernel ----
def _vae_kernel(x_ref, eps_ref,
                w1_ref, b1_ref,
                wh_ref, bh_ref,
                w3_ref, b3_ref,
                w4_ref, b4_ref,
                recon_ref, heads_ref):
    bf16 = jnp.bfloat16
    x = x_ref[...]                                                     # (Bt, 784) bf16

    # encode: h1 = relu(x @ W1 + b1)        -- bf16 weights, f32 accumulation on the MXU
    h1 = jnp.dot(x, w1_ref[...], preferred_element_type=jnp.float32) + b1_ref[...]
    h1 = jnp.maximum(h1, 0.0)                                          # (Bt, 400) f32

    # fused heads: [mu | logvar | 0] = h1 @ W_heads + b_heads -> lane-dense (Bt, 128)
    heads = jnp.dot(h1.astype(bf16), wh_ref[...],
                    preferred_element_type=jnp.float32) + bh_ref[...]  # (Bt, 128) f32
    heads_ref[...] = heads.astype(heads_ref.dtype)                     # bf16 store

    mu = heads[:, :D_Z]                                                # (Bt, 20) f32
    logvar = heads[:, D_Z:2 * D_Z]                                     # (Bt, 20) f32

    # reparametrize: z = eps * exp(0.5 * logvar) + mu
    std = jnp.exp(0.5 * logvar)
    z = eps_ref[...] * std + mu                                        # (Bt, 20) f32

    # decode: h3 = relu(z @ W3 + b3) ; recon = sigmoid(h3 @ W4 + b4)
    h3 = jnp.dot(z.astype(bf16), w3_ref[...],
                 preferred_element_type=jnp.float32) + b3_ref[...]
    h3 = jnp.maximum(h3, 0.0)                                          # (Bt, 400) f32

    logits = jnp.dot(h3.astype(bf16), w4_ref[...],
                     preferred_element_type=jnp.float32) + b4_ref[...] # (Bt, 784) f32
    # sigmoid(x) = 0.5 * tanh(0.5 * x) + 0.5 : single EUP op, exact, no overflow path.
    recon_ref[...] = (0.5 * jnp.tanh(0.5 * logits) + 0.5).astype(recon_ref.dtype)


# ---------------------------------------------------------------- tiling / call builder ----
_TileConfig = collections.namedtuple("_TileConfig", ["block_b", "vmem_limit", "two_tc"])


def _tile_config():
    kind = ""
    try:
        kind = jax.devices()[0].device_kind.lower()
    except Exception:  # noqa: BLE001
        pass
    if "v7" in kind:
        # 64 MiB physical VMEM, 2 TensorCores, ~3.2 TB/s HBM.
        return _TileConfig(block_b=1024, vmem_limit=32 << 20, two_tc=True)
    if "v6" in kind:
        # 128 MiB physical VMEM; still HBM-bound -> big tiles + raised scoped limit.
        return _TileConfig(block_b=2048, vmem_limit=64 << 20, two_tc=False)
    if "v5" in kind:
        # v5e scoped default is only 16 MiB; keep an explicit 32 MiB limit, moderate tiles.
        return _TileConfig(block_b=512, vmem_limit=32 << 20, two_tc=False)
    return _TileConfig(block_b=512, vmem_limit=32 << 20, two_tc=False)


@functools.lru_cache(maxsize=None)
def _build_call(bt, grid_steps, vmem_limit, buffered_weights):
    def row_spec(cols):
        return pl.BlockSpec((bt, cols), lambda i: (i, 0))

    def resident_spec(rows, cols):
        # Constant index_map: the block never changes, so it is DMAed once and stays
        # VMEM-resident across the batch grid. Single-buffer it to halve its VMEM cost.
        if buffered_weights:
            return pl.BlockSpec((rows, cols), lambda i: (0, 0),
                                pipeline_mode=pl.Buffered(1))
        return pl.BlockSpec((rows, cols), lambda i: (0, 0))

    in_specs = [
        row_spec(D_IN),                     # x (bf16)
        row_spec(D_Z),                      # eps (f32)
        resident_spec(D_IN, D_H),           # w1 (bf16)
        resident_spec(1, D_H),              # b1 (f32)
        resident_spec(D_H, D_HEADS),        # w_heads (bf16, zero-padded)
        resident_spec(1, D_HEADS),          # b_heads (f32)
        resident_spec(D_Z, D_H),            # w3 (bf16)
        resident_spec(1, D_H),              # b3 (f32)
        resident_spec(D_H, D_IN),           # w4 (bf16)
        resident_spec(1, D_IN),             # b4 (f32)
    ]
    out_specs = [row_spec(D_IN), row_spec(D_HEADS)]
    B_pad = bt * grid_steps
    out_shapes = (
        jax.ShapeDtypeStruct((B_pad, D_IN), jnp.bfloat16),      # recon (bf16)
        jax.ShapeDtypeStruct((B_pad, D_HEADS), jnp.bfloat16),   # [mu | logvar | 0] (bf16)
    )
    return pl.pallas_call(
        _vae_kernel,
        out_shape=out_shapes,
        grid=(grid_steps,),
        in_specs=in_specs,
        out_specs=out_specs,
        compiler_params=pltpu.CompilerParams(
            dimension_semantics=("parallel",),
            vmem_limit_bytes=vmem_limit,
        ),
    )


_BUFFERED_WEIGHTS_OK = None   # lazily determined: does this Pallas accept pl.Buffered(1)?


def _run_kernel(x, eps, weights, bt, grid_steps, vmem_limit):
    global _BUFFERED_WEIGHTS_OK
    modes = [True, False] if _BUFFERED_WEIGHTS_OK is None else [_BUFFERED_WEIGHTS_OK]
    last_err = None
    for buffered in modes:
        try:
            out = _build_call(bt, grid_steps, vmem_limit, buffered)(x, eps, *weights)
            _BUFFERED_WEIGHTS_OK = buffered
            return out
        except Exception as e:  # noqa: BLE001  fall back to default double buffering
            last_err = e
    raise last_err


# --------------------------------------------------------------------------- wrapper ----
def vae_forward(x_img, eps, prep_params, *, block_b=None):
    """x_img: (B, 1, 28, 28) f32, eps: (B, 20) f32.

    Returns (recon (B, 784) bf16, mu (B, 20) f32, logvar (B, 20) f32).
    recon is kept in bf16 so a downstream BCE loss can consume it without re-widening
    the HBM stream; upcast with .astype(jnp.float32) if f32 is needed.
    """
    B = x_img.shape[0]
    # Stream x as bf16: halves the input HBM bytes; the matmul casts to bf16 anyway.
    x = x_img.reshape(B, D_IN).astype(jnp.bfloat16)
    eps = eps.astype(jnp.float32)
    weights = prep_params

    cfg = _tile_config()
    if block_b is None:
        block_b = cfg.block_b

    # Batch tile: at least 8 sublanes, at most block_b rows.
    bt = min(block_b, _round_up(B, 8))
    # On 2-TC chips keep the grid >= 2 steps so "parallel" actually uses both TensorCores.
    if cfg.two_tc and bt >= 16 and _round_up(B, bt) // bt < 2:
        bt = _round_up((bt + 1) // 2, 8)
    B_pad = _round_up(B, bt)
    if B_pad != B:
        x = jnp.pad(x, ((0, B_pad - B), (0, 0)))
        eps = jnp.pad(eps, ((0, B_pad - B), (0, 0)))
    grid_steps = B_pad // bt

    recon_pad, heads_pad = _run_kernel(x, eps, weights, bt, grid_steps, cfg.vmem_limit)

    recon = recon_pad[:B]                                       # bf16
    mu = heads_pad[:B, :D_Z].astype(jnp.float32)
    logvar = heads_pad[:B, D_Z:2 * D_Z].astype(jnp.float32)
    return recon, mu, logvar


# ------------------------------------------------------------------------ params / ref ----
def init_params(key):
    """Deterministic init mimicking torch.nn.Linear default (uniform +/- 1/sqrt(fan_in)).
    Weights stored as (in_features, out_features), f32 masters."""
    def linear(k, fan_in, fan_out):
        kw, kb = jax.random.split(k)
        bound = 1.0 / jnp.sqrt(jnp.float32(fan_in))
        w = jax.random.uniform(kw, (fan_in, fan_out), jnp.float32, -bound, bound)
        b = jax.random.uniform(kb, (1, fan_out), jnp.float32, -bound, bound)
        return w, b

    k1, k21, k22, k3, k4 = jax.random.split(key, 5)
    w1, b1 = linear(k1, D_IN, D_H)      # fc1
    w21, b21 = linear(k21, D_H, D_Z)    # fc21 (mu head)
    w22, b22 = linear(k22, D_H, D_Z)    # fc22 (logvar head)
    w3, b3 = linear(k3, D_Z, D_H)       # fc3
    w4, b4 = linear(k4, D_H, D_IN)      # fc4
    return (w1, b1, w21, b21, w22, b22, w3, b3, w4, b4)


def prepare_params(params):
    """Fuse fc21/fc22 into a lane-dense padded head and cast weights to bf16."""
    (w1, b1, w21, b21, w22, b22, w3, b3, w4, b4) = params
    wh = jnp.zeros((D_H, D_HEADS), jnp.float32)
    wh = wh.at[:, :D_Z].set(w21).at[:, D_Z:2 * D_Z].set(w22)
    bh = jnp.zeros((1, D_HEADS), jnp.float32)
    bh = bh.at[:, :D_Z].set(b21[0]).at[:, D_Z:2 * D_Z].set(b22[0])
    bf = lambda w: w.astype(jnp.bfloat16)
    return (bf(w1), b1, bf(wh), bh, bf(w3), b3, bf(w4), b4)


def _reference_forward(x_img, eps, prep_params):
    """Pure-JAX reference using the same bf16-weight / f32-accumulation numerics."""
    (w1, b1, wh, bh, w3, b3, w4, b4) = prep_params
    x = x_img.reshape(x_img.shape[0], D_IN).astype(jnp.float32)
    bdot = lambda a, w: jnp.dot(a.astype(jnp.bfloat16), w,
                                preferred_element_type=jnp.float32)
    h1 = jax.nn.relu(bdot(x, w1) + b1)
    heads = bdot(h1, wh) + bh
    mu = heads[:, :D_Z]
    logvar = heads[:, D_Z:2 * D_Z]
    z = eps * jnp.exp(0.5 * logvar) + mu
    h3 = jax.nn.relu(bdot(z, w3) + b3)
    recon = jax.nn.sigmoid(bdot(h3, w4) + b4)
    return recon, mu, logvar


# ------------------------------------------------------------------------------ main ----
if __name__ == "__main__":
    key = jax.random.PRNGKey(0)
    k_param, k_x, k_eps = jax.random.split(key, 3)

    B = 8
    # Deterministic "image" batch in NCHW, values in [0, 1) like MNIST pixels.
    x_img = jax.random.uniform(k_x, (B, 1, 28, 28), jnp.float32)
    # Deterministic reparametrization noise (torch draws eps ~ N(0, 1) inside forward).
    eps = jax.random.normal(k_eps, (B, D_Z), jnp.float32)

    params = init_params(k_param)
    prep = prepare_params(params)

    recon, mu, logvar = vae_forward(x_img, eps, prep)
    jax.block_until_ready((recon, mu, logvar))

    # Sanity-check against a matched-precision pure-JAX reference (kernel emits bf16
    # activations, so tolerances allow one bf16 ulp).
    r_ref, mu_ref, lv_ref = _reference_forward(x_img, eps, prep)
    assert recon.shape == (B, D_IN) and mu.shape == (B, D_Z) and logvar.shape == (B, D_Z)

    def _close(a, b):
        return bool(jnp.allclose(a.astype(jnp.float32), b, atol=1e-2, rtol=1e-2))

    assert _close(recon, r_ref), float(jnp.abs(recon.astype(jnp.float32) - r_ref).max())
    assert _close(mu, mu_ref), float(jnp.abs(mu - mu_ref).max())
    assert _close(logvar, lv_ref), float(jnp.abs(logvar - lv_ref).max())

    print("KERNEL_OK")
</pallas_src>

<mosaic_0001>
module attributes {stable_mosaic.version = 11 : i64} {
  func.func @_vae_kernel(%arg0: i32, %arg1: memref<8x784xbf16, #tpu.memory_space<vmem>>, %arg2: memref<8x20xf32, #tpu.memory_space<vmem>>, %arg3: memref<784x400xbf16, #tpu.memory_space<vmem>>, %arg4: memref<1x400xf32, #tpu.memory_space<vmem>>, %arg5: memref<400x128xbf16, #tpu.memory_space<vmem>>, %arg6: memref<1x128xf32, #tpu.memory_space<vmem>>, %arg7: memref<20x400xbf16, #tpu.memory_space<vmem>>, %arg8: memref<1x400xf32, #tpu.memory_space<vmem>>, %arg9: memref<400x784xbf16, #tpu.memory_space<vmem>>, %arg10: memref<1x784xf32, #tpu.memory_space<vmem>>, %arg11: memref<8x784xbf16, #tpu.memory_space<vmem>>, %arg12: memref<8x128xbf16, #tpu.memory_space<vmem>>) attributes {dimension_semantics = [#tpu.dimension_semantics<parallel>], iteration_bounds = array<i64: 1>, scalar_prefetch = 0 : i64, scratch_operands = 0 : i64, tpu.core_type = #tpu.core_type<tc>, window_params = [{transform_indices = @transform_0, window_bounds = array<i64: 8, 784>}, {transform_indices = @transform_1, window_bounds = array<i64: 8, 20>}, {pipeline_mode = #tpu.pipeline_mode<synchronous>, transform_indices = @transform_2, window_bounds = array<i64: 784, 400>}, {pipeline_mode = #tpu.pipeline_mode<synchronous>, transform_indices = @transform_3, window_bounds = array<i64: 1, 400>}, {pipeline_mode = #tpu.pipeline_mode<synchronous>, transform_indices = @transform_4, window_bounds = array<i64: 400, 128>}, {pipeline_mode = #tpu.pipeline_mode<synchronous>, transform_indices = @transform_5, window_bounds = array<i64: 1, 128>}, {pipeline_mode = #tpu.pipeline_mode<synchronous>, transform_indices = @transform_6, window_bounds = array<i64: 20, 400>}, {pipeline_mode = #tpu.pipeline_mode<synchronous>, transform_indices = @transform_7, window_bounds = array<i64: 1, 400>}, {pipeline_mode = #tpu.pipeline_mode<synchronous>, transform_indices = @transform_8, window_bounds = array<i64: 400, 784>}, {pipeline_mode = #tpu.pipeline_mode<synchronous>, transform_indices = @transform_9, window_bounds = array<i64: 1, 784>}, {transform_indices = @transform_10, window_bounds = array<i64: 8, 784>}, {transform_indices = @transform_11, window_bounds = array<i64: 8, 128>}]} {
    %c0 = arith.constant 0 : index
    %c0_0 = arith.constant 0 : index
    %0 = vector.load %arg1[%c0, %c0_0] : memref<8x784xbf16, #tpu.memory_space<vmem>>, vector<8x784xbf16>
    %c0_1 = arith.constant 0 : index
    %c0_2 = arith.constant 0 : index
    %1 = vector.load %arg3[%c0_1, %c0_2] : memref<784x400xbf16, #tpu.memory_space<vmem>>, vector<784x400xbf16>
    %cst = arith.constant dense<0.000000e+00> : vector<8x400xf32>
    %2 = tpu.matmul %0, %1, %cst {dimension_numbers = #tpu.dot_dimension_numbers<[1], [0], [0], [1], [0, 0, 1, 1], [], []>} : vector<8x784xbf16>, vector<784x400xbf16>, vector<8x400xf32> -> vector<8x400xf32>
    %c0_3 = arith.constant 0 : index
    %c0_4 = arith.constant 0 : index
    %3 = vector.load %arg4[%c0_3, %c0_4] : memref<1x400xf32, #tpu.memory_space<vmem>>, vector<1x400xf32>
    %4 = vector.broadcast %3 : vector<1x400xf32> to vector<8x400xf32>
    %5 = arith.addf %2, %4 : vector<8x400xf32>
    %cst_5 = arith.constant 0.000000e+00 : f32
    %6 = vector.broadcast %cst_5 : f32 to vector<8x400xf32>
    %7 = arith.maximumf %5, %6 : vector<8x400xf32>
    %8 = arith.truncf %7 : vector<8x400xf32> to vector<8x400xbf16>
    %c0_6 = arith.constant 0 : index
    %c0_7 = arith.constant 0 : index
    %9 = vector.load %arg5[%c0_6, %c0_7] : memref<400x128xbf16, #tpu.memory_space<vmem>>, vector<400x128xbf16>
    %cst_8 = arith.constant dense<0.000000e+00> : vector<8x128xf32>
    %10 = tpu.matmul %8, %9, %cst_8 {dimension_numbers = #tpu.dot_dimension_numbers<[1], [0], [0], [1], [0, 0, 1, 1], [], []>} : vector<8x400xbf16>, vector<400x128xbf16>, vector<8x128xf32> -> vector<8x128xf32>
    %c0_9 = arith.constant 0 : index
    %c0_10 = arith.constant 0 : index
    %11 = vector.load %arg6[%c0_9, %c0_10] : memref<1x128xf32, #tpu.memory_space<vmem>>, vector<1x128xf32>
    %12 = vector.broadcast %11 : vector<1x128xf32> to vector<8x128xf32>
    %13 = arith.addf %10, %12 : vector<8x128xf32>
    %14 = arith.truncf %13 : vector<8x128xf32> to vector<8x128xbf16>
    %c0_11 = arith.constant 0 : index
    %c0_12 = arith.constant 0 : index
    %15 = vector.load %arg12[%c0_11, %c0_12] : memref<8x128xbf16, #tpu.memory_space<vmem>>, vector<8x128xbf16>
    tpu.vector_store %arg12[%c0_11, %c0_12], %14 {strides = array<i32>} : memref<8x128xbf16, #tpu.memory_space<vmem>>, vector<8x128xbf16>,
    %16 = vector.extract_strided_slice %13 {offsets = [0, 0], sizes = [8, 20], strides = [1, 1]} : vector<8x128xf32> to vector<8x20xf32>
    %17 = vector.extract_strided_slice %13 {offsets = [0, 20], sizes = [8, 20], strides = [1, 1]} : vector<8x128xf32> to vector<8x20xf32>
    %cst_13 = arith.constant 5.000000e-01 : f32
    %18 = vector.broadcast %cst_13 : f32 to vector<8x20xf32>
    %19 = arith.mulf %18, %17 : vector<8x20xf32>
    %20 = math.exp %19 : vector<8x20xf32>
    %c0_14 = arith.constant 0 : index
    %c0_15 = arith.constant 0 : index
    %21 = vector.load %arg2[%c0_14, %c0_15] : memref<8x20xf32, #tpu.memory_space<vmem>>, vector<8x20xf32>
    %22 = arith.mulf %21, %20 : vector<8x20xf32>
    %23 = arith.addf %22, %16 : vector<8x20xf32>
    %24 = arith.truncf %23 : vector<8x20xf32> to vector<8x20xbf16>
    %c0_16 = arith.constant 0 : index
    %c0_17 = arith.constant 0 : index
    %25 = vector.load %arg7[%c0_16, %c0_17] : memref<20x400xbf16, #tpu.memory_space<vmem>>, vector<20x400xbf16>
    %cst_18 = arith.constant dense<0.000000e+00> : vector<8x400xf32>
    %26 = tpu.matmul %24, %25, %cst_18 {dimension_numbers = #tpu.dot_dimension_numbers<[1], [0], [0], [1], [0, 0, 1, 1], [], []>} : vector<8x20xbf16>, vector<20x400xbf16>, vector<8x400xf32> -> vector<8x400xf32>
    %c0_19 = arith.constant 0 : index
    %c0_20 = arith.constant 0 : index
    %27 = vector.load %arg8[%c0_19, %c0_20] : memref<1x400xf32, #tpu.memory_space<vmem>>, vector<1x400xf32>
    %28 = vector.broadcast %27 : vector<1x400xf32> to vector<8x400xf32>
    %29 = arith.addf %26, %28 : vector<8x400xf32>
    %cst_21 = arith.constant 0.000000e+00 : f32
    %30 = vector.broadcast %cst_21 : f32 to vector<8x400xf32>
    %31 = arith.maximumf %29, %30 : vector<8x400xf32>
    %32 = arith.truncf %31 : vector<8x400xf32> to vector<8x400xbf16>
    %c0_22 = arith.constant 0 : index
    %c0_23 = arith.constant 0 : index
    %33 = vector.load %arg9[%c0_22, %c0_23] : memref<400x784xbf16, #tpu.memory_space<vmem>>, vector<400x784xbf16>
    %cst_24 = arith.constant dense<0.000000e+00> : vector<8x784xf32>
    %34 = tpu.matmul %32, %33, %cst_24 {dimension_numbers = #tpu.dot_dimension_numbers<[1], [0], [0], [1], [0, 0, 1, 1], [], []>} : vector<8x400xbf16>, vector<400x784xbf16>, vector<8x784xf32> -> vector<8x784xf32>
    %c0_25 = arith.constant 0 : index
    %c0_26 = arith.constant 0 : index
    %35 = vector.load %arg10[%c0_25, %c0_26] : memref<1x784xf32, #tpu.memory_space<vmem>>, vector<1x784xf32>
    %36 = vector.broadcast %35 : vector<1x784xf32> to vector<8x784xf32>
    %37 = arith.addf %34, %36 : vector<8x784xf32>
    %cst_27 = arith.constant 5.000000e-01 : f32
    %38 = vector.broadcast %cst_27 : f32 to vector<8x784xf32>
    %39 = arith.mulf %38, %37 : vector<8x784xf32>
    %40 = math.tanh %39 : vector<8x784xf32>
    %cst_28 = arith.constant 5.000000e-01 : f32
    %41 = vector.broadcast %cst_28 : f32 to vector<8x784xf32>
    %42 = arith.mulf %41, %40 : vector<8x784xf32>
    %cst_29 = arith.constant 5.000000e-01 : f32
    %43 = vector.broadcast %cst_29 : f32 to vector<8x784xf32>
    %44 = arith.addf %42, %43 : vector<8x784xf32>
    %45 = arith.truncf %44 : vector<8x784xf32> to vector<8x784xbf16>
    %c0_30 = arith.constant 0 : index
    %c0_31 = arith.constant 0 : index
    %46 = vector.load %arg11[%c0_30, %c0_31] : memref<8x784xbf16, #tpu.memory_space<vmem>>, vector<8x784xbf16>
    tpu.vector_store %arg11[%c0_30, %c0_31], %45 {strides = array<i32>} : memref<8x784xbf16, #tpu.memory_space<vmem>>, vector<8x784xbf16>,
    return
  }
  func.func @transform_0(%arg0: i32) -> (i32, i32) {
    %c0_i32 = arith.constant 0 : i32
    %c0_i32_0 = arith.constant 0 : i32
    return %arg0, %c0_i32 : i32, i32
  }
  func.func @transform_1(%arg0: i32) -> (i32, i32) {
    %c0_i32 = arith.constant 0 : i32
    %c0_i32_0 = arith.constant 0 : i32
    return %arg0, %c0_i32 : i32, i32
  }
  func.func @transform_2(%arg0: i32) -> (i32, i32) {
    %c0_i32 = arith.constant 0 : i32
    %c0_i32_0 = arith.constant 0 : i32
    %c0_i32_1 = arith.constant 0 : i32
    return %c0_i32, %c0_i32_0 : i32, i32
  }
  func.func @transform_3(%arg0: i32) -> (i32, i32) {
    %c0_i32 = arith.constant 0 : i32
    %c0_i32_0 = arith.constant 0 : i32
    %c0_i32_1 = arith.constant 0 : i32
    return %c0_i32, %c0_i32_0 : i32, i32
  }
  func.func @transform_4(%arg0: i32) -> (i32, i32) {
    %c0_i32 = arith.constant 0 : i32
    %c0_i32_0 = arith.constant 0 : i32
    %c0_i32_1 = arith.constant 0 : i32
    return %c0_i32, %c0_i32_0 : i32, i32
  }
  func.func @transform_5(%arg0: i32) -> (i32, i32) {
    %c0_i32 = arith.constant 0 : i32
    %c0_i32_0 = arith.constant 0 : i32
    %c0_i32_1 = arith.constant 0 : i32
    return %c0_i32, %c0_i32_0 : i32, i32
  }
  func.func @transform_6(%arg0: i32) -> (i32, i32) {
    %c0_i32 = arith.constant 0 : i32
    %c0_i32_0 = arith.constant 0 : i32
    %c0_i32_1 = arith.constant 0 : i32
    return %c0_i32, %c0_i32_0 : i32, i32
  }
  func.func @transform_7(%arg0: i32) -> (i32, i32) {
    %c0_i32 = arith.constant 0 : i32
    %c0_i32_0 = arith.constant 0 : i32
    %c0_i32_1 = arith.constant 0 : i32
    return %c0_i32, %c0_i32_0 : i32, i32
  }
  func.func @transform_8(%arg0: i32) -> (i32, i32) {
    %c0_i32 = arith.constant 0 : i32
    %c0_i32_0 = arith.constant 0 : i32
    %c0_i32_1 = arith.constant 0 : i32
    return %c0_i32, %c0_i32_0 : i32, i32
  }
  func.func @transform_9(%arg0: i32) -> (i32, i32) {
    %c0_i32 = arith.constant 0 : i32
    %c0_i32_0 = arith.constant 0 : i32
    %c0_i32_1 = arith.constant 0 : i32
    return %c0_i32, %c0_i32_0 : i32, i32
  }
  func.func @transform_10(%arg0: i32) -> (i32, i32) {
    %c0_i32 = arith.constant 0 : i32
    %c0_i32_0 = arith.constant 0 : i32
    return %arg0, %c0_i32 : i32, i32
  }
  func.func @transform_11(%arg0: i32) -> (i32, i32) {
    %c0_i32 = arith.constant 0 : i32
    %c0_i32_0 = arith.constant 0 : i32
    return %arg0, %c0_i32 : i32, i32
  }
}

module attributes {stable_mosaic.version = 11 : i64} {
  func.func @_vae_kernel(%arg0: i32, %arg1: memref<8x784xbf16, #tpu.memory_space<vmem>>, %arg2: memref<8x20xf32, #tpu.memory_space<vmem>>, %arg3: memref<784x400xbf16, #tpu.memory_space<vmem>>, %arg4: memref<1x400xf32, #tpu.memory_space<vmem>>, %arg5: memref<400x128xbf16, #tpu.memory_space<vmem>>, %arg6: memref<1x128xf32, #tpu.memory_space<vmem>>, %arg7: memref<20x400xbf16, #tpu.memory_space<vmem>>, %arg8: memref<1x400xf32, #tpu.memory_space<vmem>>, %arg9: memref<400x784xbf16, #tpu.memory_space<vmem>>, %arg10: memref<1x784xf32, #tpu.memory_space<vmem>>, %arg11: memref<8x784xbf16, #tpu.memory_space<vmem>>, %arg12: memref<8x128xbf16, #tpu.memory_space<vmem>>) attributes {dimension_semantics = [#tpu.dimension_semantics<parallel>], iteration_bounds = array<i64: 1>, scalar_prefetch = 0 : i64, scratch_operands = 0 : i64, tpu.core_type = #tpu.core_type<tc>, window_params = [{transform_indices = @transform_0, window_bounds = array<i64: 8, 784>}, {transform_indices = @transform_1, window_bounds = array<i64: 8, 20>}, {pipeline_mode = #tpu.pipeline_mode<synchronous>, transform_indices = @transform_2, window_bounds = array<i64: 784, 400>}, {pipeline_mode = #tpu.pipeline_mode<synchronous>, transform_indices = @transform_3, window_bounds = array<i64: 1, 400>}, {pipeline_mode = #tpu.pipeline_mode<synchronous>, transform_indices = @transform_4, window_bounds = array<i64: 400, 128>}, {pipeline_mode = #tpu.pipeline_mode<synchronous>, transform_indices = @transform_5, window_bounds = array<i64: 1, 128>}, {pipeline_mode = #tpu.pipeline_mode<synchronous>, transform_indices = @transform_6, window_bounds = array<i64: 20, 400>}, {pipeline_mode = #tpu.pipeline_mode<synchronous>, transform_indices = @transform_7, window_bounds = array<i64: 1, 400>}, {pipeline_mode = #tpu.pipeline_mode<synchronous>, transform_indices = @transform_8, window_bounds = array<i64: 400, 784>}, {pipeline_mode = #tpu.pipeline_mode<synchronous>, transform_indices = @transform_9, window_bounds = array<i64: 1, 784>}, {transform_indices = @transform_10, window_bounds = array<i64: 8, 784>}, {transform_indices = @transform_11, window_bounds = array<i64: 8, 128>}]} {
    %c0 = arith.constant 0 : index
    %c0_0 = arith.constant 0 : index
    %0 = vector.load %arg1[%c0, %c0_0] : memref<8x784xbf16, #tpu.memory_space<vmem>>, vector<8x784xbf16>
    %c0_1 = arith.constant 0 : index
    %c0_2 = arith.constant 0 : index
    %1 = vector.load %arg3[%c0_1, %c0_2] : memref<784x400xbf16, #tpu.memory_space<vmem>>, vector<784x400xbf16>
    %cst = arith.constant dense<0.000000e+00> : vector<8x400xf32>
    %2 = tpu.matmul %0, %1, %cst {dimension_numbers = #tpu.dot_dimension_numbers<[1], [0], [0], [1], [0, 0, 1, 1], [], []>} : vector<8x784xbf16>, vector<784x400xbf16>, vector<8x400xf32> -> vector<8x400xf32>
    %c0_3 = arith.constant 0 : index
    %c0_4 = arith.constant 0 : index
    %3 = vector.load %arg4[%c0_3, %c0_4] : memref<1x400xf32, #tpu.memory_space<vmem>>, vector<1x400xf32>
    %4 = vector.broadcast %3 : vector<1x400xf32> to vector<8x400xf32>
    %5 = arith.addf %2, %4 : vector<8x400xf32>
    %cst_5 = arith.constant 0.000000e+00 : f32
    %6 = vector.broadcast %cst_5 : f32 to vector<8x400xf32>
    %7 = arith.maximumf %5, %6 : vector<8x400xf32>
    %8 = arith.truncf %7 : vector<8x400xf32> to vector<8x400xbf16>
    %c0_6 = arith.constant 0 : index
    %c0_7 = arith.constant 0 : index
    %9 = vector.load %arg5[%c0_6, %c0_7] : memref<400x128xbf16, #tpu.memory_space<vmem>>, vector<400x128xbf16>
    %cst_8 = arith.constant dense<0.000000e+00> : vector<8x128xf32>
    %10 = tpu.matmul %8, %9, %cst_8 {dimension_numbers = #tpu.dot_dimension_numbers<[1], [0], [0], [1], [0, 0, 1, 1], [], []>} : vector<8x400xbf16>, vector<400x128xbf16>, vector<8x128xf32> -> vector<8x128xf32>
    %c0_9 = arith.constant 0 : index
    %c0_10 = arith.constant 0 : index
    %11 = vector.load %arg6[%c0_9, %c0_10] : memref<1x128xf32, #tpu.memory_space<vmem>>, vector<1x128xf32>
    %12 = vector.broadcast %11 : vector<1x128xf32> to vector<8x128xf32>
    %13 = arith.addf %10, %12 : vector<8x128xf32>
    %14 = arith.truncf %13 : vector<8x128xf32> to vector<8x128xbf16>
    %c0_11 = arith.constant 0 : index
    %c0_12 = arith.constant 0 : index
    %15 = vector.load %arg12[%c0_11, %c0_12] : memref<8x128xbf16, #tpu.memory_space<vmem>>, vector<8x128xbf16>
    tpu.vector_store %arg12[%c0_11, %c0_12], %14 {strides = array<i32>} : memref<8x128xbf16, #tpu.memory_space<vmem>>, vector<8x128xbf16>,
    %16 = vector.extract_strided_slice %13 {offsets = [0, 0], sizes = [8, 20], strides = [1, 1]} : vector<8x128xf32> to vector<8x20xf32>
    %17 = vector.extract_strided_slice %13 {offsets = [0, 20], sizes = [8, 20], strides = [1, 1]} : vector<8x128xf32> to vector<8x20xf32>
    %cst_13 = arith.constant 5.000000e-01 : f32
    %18 = vector.broadcast %cst_13 : f32 to vector<8x20xf32>
    %19 = arith.mulf %18, %17 : vector<8x20xf32>
    %20 = math.exp %19 : vector<8x20xf32>
    %c0_14 = arith.constant 0 : index
    %c0_15 = arith.constant 0 : index
    %21 = vector.load %arg2[%c0_14, %c0_15] : memref<8x20xf32, #tpu.memory_space<vmem>>, vector<8x20xf32>
    %22 = arith.mulf %21, %20 : vector<8x20xf32>
    %23 = arith.addf %22, %16 : vector<8x20xf32>
    %24 = arith.truncf %23 : vector<8x20xf32> to vector<8x20xbf16>
    %c0_16 = arith.constant 0 : index
    %c0_17 = arith.constant 0 : index
    %25 = vector.load %arg7[%c0_16, %c0_17] : memref<20x400xbf16, #tpu.memory_space<vmem>>, vector<20x400xbf16>
    %cst_18 = arith.constant dense<0.000000e+00> : vector<8x400xf32>
    %26 = tpu.matmul %24, %25, %cst_18 {dimension_numbers = #tpu.dot_dimension_numbers<[1], [0], [0], [1], [0, 0, 1, 1], [], []>} : vector<8x20xbf16>, vector<20x400xbf16>, vector<8x400xf32> -> vector<8x400xf32>
    %c0_19 = arith.constant 0 : index
    %c0_20 = arith.constant 0 : index
    %27 = vector.load %arg8[%c0_19, %c0_20] : memref<1x400xf32, #tpu.memory_space<vmem>>, vector<1x400xf32>
    %28 = vector.broadcast %27 : vector<1x400xf32> to vector<8x400xf32>
    %29 = arith.addf %26, %28 : vector<8x400xf32>
    %cst_21 = arith.constant 0.000000e+00 : f32
    %30 = vector.broadcast %cst_21 : f32 to vector<8x400xf32>
    %31 = arith.maximumf %29, %30 : vector<8x400xf32>
    %32 = arith.truncf %31 : vector<8x400xf32> to vector<8x400xbf16>
    %c0_22 = arith.constant 0 : index
    %c0_23 = arith.constant 0 : index
    %33 = vector.load %arg9[%c0_22, %c0_23] : memref<400x784xbf16, #tpu.memory_space<vmem>>, vector<400x784xbf16>
    %cst_24 = arith.constant dense<0.000000e+00> : vector<8x784xf32>
    %34 = tpu.matmul %32, %33, %cst_24 {dimension_numbers = #tpu.dot_dimension_numbers<[1], [0], [0], [1], [0, 0, 1, 1], [], []>} : vector<8x400xbf16>, vector<400x784xbf16>, vector<8x784xf32> -> vector<8x784xf32>
    %c0_25 = arith.constant 0 : index
    %c0_26 = arith.constant 0 : index
    %35 = vector.load %arg10[%c0_25, %c0_26] : memref<1x784xf32, #tpu.memory_space<vmem>>, vector<1x784xf32>
    %36 = vector.broadcast %35 : vector<1x784xf32> to vector<8x784xf32>
    %37 = arith.addf %34, %36 : vector<8x784xf32>
    %cst_27 = arith.constant 5.000000e-01 : f32
    %38 = vector.broadcast %cst_27 : f32 to vector<8x784xf32>
    %39 = arith.mulf %38, %37 : vector<8x784xf32>
    %40 = math.tanh %39 : vector<8x784xf32>
    %cst_28 = arith.constant 5.000000e-01 : f32
    %41 = vector.broadcast %cst_28 : f32 to vector<8x784xf32>
    %42 = arith.mulf %41, %40 : vector<8x784xf32>
    %cst_29 = arith.constant 5.000000e-01 : f32
    %43 = vector.broadcast %cst_29 : f32 to vector<8x784xf32>
    %44 = arith.addf %42, %43 : vector<8x784xf32>
    %45 = arith.truncf %44 : vector<8x784xf32> to vector<8x784xbf16>
    %c0_30 = arith.constant 0 : index
    %c0_31 = arith.constant 0 : index
    %46 = vector.load %arg11[%c0_30, %c0_31] : memref<8x784xbf16, #tpu.memory_space<vmem>>, vector<8x784xbf16>
    tpu.vector_store %arg11[%c0_30, %c0_31], %45 {strides = array<i32>} : memref<8x784xbf16, #tpu.memory_space<vmem>>, vector<8x784xbf16>,
    return
  }
  func.func @transform_0(%arg0: i32) -> (i32, i32) {
    %c0_i32 = arith.constant 0 : i32
    %c0_i32_0 = arith.constant 0 : i32
    return %arg0, %c0_i32 : i32, i32
  }
  func.func @transform_1(%arg0: i32) -> (i32, i32) {
    %c0_i32 = arith.constant 0 : i32
    %c0_i32_0 = arith.constant 0 : i32
    return %arg0, %c0_i32 : i32, i32
  }
  func.func @transform_2(%arg0: i32) -> (i32, i32) {
    %c0_i32 = arith.constant 0 : i32
    %c0_i32_0 = arith.constant 0 : i32
    %c0_i32_1 = arith.constant 0 : i32
    return %c0_i32, %c0_i32_0 : i32, i32
  }
  func.func @transform_3(%arg0: i32) -> (i32, i32) {
    %c0_i32 = arith.constant 0 : i32
    %c0_i32_0 = arith.constant 0 : i32
    %c0_i32_1 = arith.constant 0 : i32
    return %c0_i32, %c0_i32_0 : i32, i32
  }
  func.func @transform_4(%arg0: i32) -> (i32, i32) {
    %c0_i32 = arith.constant 0 : i32
    %c0_i32_0 = arith.constant 0 : i32
    %c0_i32_1 = arith.constant 0 : i32
    return %c0_i32, %c0_i32_0 : i32, i32
  }
  func.func @transform_5(%arg0: i32) -> (i32, i32) {
    %c0_i32 = arith.constant 0 : i32
    %c0_i32_0 = arith.constant 0 : i32
    %c0_i32_1 = arith.constant 0 : i32
    return %c0_i32, %c0_i32_0 : i32, i32
  }
  func.func @transform_6(%arg0: i32) -> (i32, i32) {
    %c0_i32 = arith.constant 0 : i32
    %c0_i32_0 = arith.constant 0 : i32
    %c0_i32_1 = arith.constant 0 : i32
    return %c0_i32, %c0_i32_0 : i32, i32
  }
  func.func @transform_7(%arg0: i32) -> (i32, i32) {
    %c0_i32 = arith.constant 0 : i32
    %c0_i32_0 = arith.constant 0 : i32
    %c0_i32_1 = arith.constant 0 : i32
    return %c0_i32, %c0_i32_0 : i32, i32
  }
  func.func @transform_8(%arg0: i32) -> (i32, i32) {
    %c0_i32 = arith.constant 0 : i32
    %c0_i32_0 = arith.constant 0 : i32
    %c0_i32_1 = arith.constant 0 : i32
    return %c0_i32, %c0_i32_0 : i32, i32
  }
  func.func @transform_9(%arg0: i32) -> (i32, i32) {
    %c0_i32 = arith.constant 0 : i32
    %c0_i32_0 = arith.constant 0 : i32
    %c0_i32_1 = arith.constant 0 : i32
    return %c0_i32, %c0_i32_0 : i32, i32
  }
  func.func @transform_10(%arg0: i32) -> (i32, i32) {
    %c0_i32 = arith.constant 0 : i32
    %c0_i32_0 = arith.constant 0 : i32
    return %arg0, %c0_i32 : i32, i32
  }
  func.func @transform_11(%arg0: i32) -> (i32, i32) {
    %c0_i32 = arith.constant 0 : i32
    %c0_i32_0 = arith.constant 0 : i32
    return %arg0, %c0_i32 : i32, i32
  }
}

</mosaic_0001>

<bundles_post_ra>
// kernel: tpu_custom_call.1
= control target key start
LH: loop header
LB: loop body
LE: loop exit
PB: predicated region body
PF: predicated region fallthrough
CT: control target
= control target key end

     0   :  { %17 = vsyncpa [#allocation3], 0  ;;  %v4804_v2 = vmov 0   ;;  %vm1266_vm0 = vcmask 130048   ;;  %s6250_s0 = inlined_call_operand.vmem [shape: bf16[8,784], index: 0, kind: input, shape index: {}]   ;;  %s6251_s1 = inlined_call_operand.vmem [shape: f32[8,20], index: 1, kind: input, shape index: {}]   ;;  %s6252_s2 = inlined_call_operand.vmem [shape: bf16[784,400], index: 2, kind: input, shape index: {}]   ;;  %s6253_s3 = inlined_call_operand.vmem [shape: f32[1,400], index: 3, kind: input, shape index: {}]   ;;  %s6254_s4 = inlined_call_operand.vmem [shape: bf16[400,128], index: 4, kind: input, shape index: {}]   ;;  %s6255_s5 = inlined_call_operand.vmem [shape: f32[1,128], index: 5, kind: input, shape index: {}]   ;;  %s6256_s6 = inlined_call_operand.vmem [shape: bf16[20,400], index: 6, kind: input, shape index: {}]   ;;  %s6257_s7 = inlined_call_operand.vmem [shape: f32[1,400], index: 7, kind: input, shape index: {}]   ;;  %s6258_s8 = inlined_call_operand.vmem [shape: bf16[400,784], index: 8, kind: input, shape index: {}]   ;;  %s6259_s9 = inlined_call_operand.vmem [shape: f32[1,784], index: 9, kind: input, shape index: {}]   ;;  %s6260_s10 = inlined_call_operand.hbm [shape: bf16[8,784], index: 10, kind: output, shape index: {0}]   ;;  %s6261_s11 = inlined_call_operand.hbm [shape: bf16[8,128], index: 11, kind: output, shape index: {1}]  }
   0x1   :  { %v4153_v0 = vld [vmem:[%s6252_s2 + $0x4] ss:$16 sps:$4 sm:$0xff]   ;;  %1425 = vmatprep.mubr.bf16.mxu1 %v4804_v2  ;;  %v4157_v3 = vld [vmem:[%s6252_s2] ss:$16 sps:$4 sm:$0xff]   ;;  %v4161_v6 = vld [vmem:[%s6250_s0 + $0x18] ss:$0 sps:$4 sm:$0xff]  }
   0x2   :  { %v4155_v1 = vld [vmem:[%s6252_s2 + $0x604] ss:$16 sps:$4 sm:$0xff]   ;;  %1270 = vmatprep.subr.bf16.mxu0 %v4153_v0  ;;  %v4158_v4 = vld [vmem:[%s6252_s2 + $0x600] ss:$16 sps:$4 sm:$0xff]   ;;  %v4162_v7 = vld [vmem:[%s6252_s2 + $0x8] ss:$16 sps:$4 sm:$0xff]  }
   0x3   :  { %1393 = vmatprep.subr.bf16.mxu1 %v4155_v1  ;;  %v4159_v5 = vld [vmem:[%s6252_s2 + $0x24] ss:$16 sps:$4 sm:$0xff]   ;;  %1271 = vmatpush1.bf16.msra.mxu0 %v4157_v3  ;;  %v4164_v8 = vld [vmem:[%s6252_s2 + $0xc] ss:$16 sps:$4 sm:$0xff]   ;;  %v4165_v9 = vld [vmem:[%s6252_s2 + $0x20] ss:$16 sps:$4 sm:$0xff]  }
   0x4   :  { %1394 = vmatpush1.bf16.msra.mxu1 %v4158_v4  ;;  %1272 = vmatprep.subr.bf16.mxu0 %v4159_v5  ;;  %v4166_v10 = vld [vmem:[%s6252_s2 + $0x44] ss:$16 sps:$4 sm:$0xff]   ;;  %v4168_v11 = vld [vmem:[%s6252_s2 + $0x28] ss:$16 sps:$4 sm:$0xff]   ;;  %v4170_v12 = vld [vmem:[%s6252_s2 + $0x2c] ss:$16 sps:$4 sm:$0xff]  }
   0x5   :  { %1434 = vmatprep.subr.bf16.mxu1 %v4164_v8  ;;  %v4171_v13 = vld [vmem:[%s6252_s2 + $0x40] ss:$16 sps:$4 sm:$0xff]   ;;  %v4172_v14 = vld [vmem:[%s6252_s2 + $0x64] ss:$16 sps:$4 sm:$0xff]   ;;  %v4176_v15 = vld [vmem:[%s6252_s2 + $0x4c] ss:$16 sps:$4 sm:$0xff]  }
   0x6   :  { %v4174_v16 = vld [vmem:[%s6252_s2 + $0x48] ss:$16 sps:$4 sm:$0xff]   ;;  %v4177_v17 = vld [vmem:[%s6252_s2 + $0x60] ss:$16 sps:$4 sm:$0xff]   ;;  %v4178_v18 = vld [vmem:[%s6252_s2 + $0x84] ss:$16 sps:$4 sm:$0xff]  }
   0x7   :  { %3833 = vmatmul.mubr.msk.bf16.vlgmr.msra.gmra.mrb[0].mxu1 %vm1266_vm0, %v4161_v6  ;;  %1273 = vmatpush1.bf16.msra.mxu0 %v4165_v9  ;;  %v4182_v19 = vld [vmem:[%s6252_s2 + $0x6c] ss:$16 sps:$4 sm:$0xff]   ;;  %v4180_v20 = vld [vmem:[%s6252_s2 + $0x68] ss:$16 sps:$4 sm:$0xff]   ;;  %v4183_v21 = vld [vmem:[%s6252_s2 + $0x80] ss:$16 sps:$4 sm:$0xff]  }
   0x8   :  { %1435 = vmatpush1.bf16.msra.mxu1 %v4162_v7  ;;  %1274 = vmatprep.subr.bf16.mxu0 %v4166_v10  ;;  %v4184_v22 = vld [vmem:[%s6252_s2 + $0xa4] ss:$16 sps:$4 sm:$0xff]   ;;  %v4188_v23 = vld [vmem:[%s6252_s2 + $0x8c] ss:$16 sps:$4 sm:$0xff]   ;;  %v4186_v24 = vld [vmem:[%s6252_s2 + $0x88] ss:$16 sps:$4 sm:$0xff]  }
   0x9   :  { %1436 = vmatprep.subr.bf16.mxu1 %v4170_v12  ;;  %v4189_v25 = vld [vmem:[%s6252_s2 + $0xa0] ss:$16 sps:$4 sm:$0xff]   ;;  %v4190_v26 = vld [vmem:[%s6252_s2 + $0xc4] ss:$16 sps:$4 sm:$0xff]   ;;  %v4194_v27 = vld [vmem:[%s6252_s2 + $0xac] ss:$16 sps:$4 sm:$0xff]  }
   0xa   :  { %v4192_v28 = vld [vmem:[%s6252_s2 + $0xa8] ss:$16 sps:$4 sm:$0xff]   ;;  %v4195_v29 = vld [vmem:[%s6252_s2 + $0xc0] ss:$16 sps:$4 sm:$0xff]   ;;  %v4196_v30 = vld [vmem:[%s6252_s2 + $0xe4] ss:$16 sps:$4 sm:$0xff]  }
   0xb   :  { %1275 = vmatpush1.bf16.msra.mxu0 %v4171_v13  ;;  %v4200_v31 = vld [vmem:[%s6252_s2 + $0xcc] ss:$16 sps:$4 sm:$0xff]   ;;  %v4198_v32 = vld [vmem:[%s6252_s2 + $0xc8] ss:$16 sps:$4 sm:$0xff]   ;;  %v4201_v33 = vld [vmem:[%s6252_s2 + $0xe0] ss:$16 sps:$4 sm:$0xff]  }
   0xc   :  { %1437 = vmatpush1.bf16.msra.mxu1 %v4168_v11  ;;  %1276 = vmatprep.subr.bf16.mxu0 %v4172_v14  ;;  %v4202_v34 = vld [vmem:[%s6252_s2 + $0x104] ss:$16 sps:$4 sm:$0xff]   ;;  %v4206_v35 = vld [vmem:[%s6252_s2 + $0xec] ss:$16 sps:$4 sm:$0xff]   ;;  %v4204_v36 = vld [vmem:[%s6252_s2 + $0xe8] ss:$16 sps:$4 sm:$0xff]  }
   0xd   :  { %1438 = vmatprep.subr.bf16.mxu1 %v4176_v15  ;;  %v4207_v37 = vld [vmem:[%s6252_s2 + $0x100] ss:$16 sps:$4 sm:$0xff]   ;;  %v4208_v38 = vld [vmem:[%s6252_s2 + $0x124] ss:$16 sps:$4 sm:$0xff]   ;;  %v4212_v39 = vld [vmem:[%s6252_s2 + $0x10c] ss:$16 sps:$4 sm:$0xff]  }
   0xe   :  { %v4210_v40 = vld [vmem:[%s6252_s2 + $0x108] ss:$16 sps:$4 sm:$0xff]   ;;  %v4213_v41 = vld [vmem:[%s6252_s2 + $0x120] ss:$16 sps:$4 sm:$0xff]   ;;  %v4214_v42 = vld [vmem:[%s6252_s2 + $0x144] ss:$16 sps:$4 sm:$0xff]  }
   0xf   :  { %1277 = vmatpush1.bf16.msra.mxu0 %v4177_v17  ;;  %v4218_v43 = vld [vmem:[%s6252_s2 + $0x12c] ss:$16 sps:$4 sm:$0xff]   ;;  %v4216_v44 = vld [vmem:[%s6252_s2 + $0x128] ss:$16 sps:$4 sm:$0xff]   ;;  %v4219_v45 = vld [vmem:[%s6252_s2 + $0x140] ss:$16 sps:$4 sm:$0xff]  }
  0x10   :  { %1439 = vmatpush1.bf16.msra.mxu1 %v4174_v16  ;;  %1278 = vmatprep.subr.bf16.mxu0 %v4178_v18  ;;  %v4220_v46 = vld [vmem:[%s6252_s2 + $0x164] ss:$16 sps:$4 sm:$0xff]   ;;  %v4224_v47 = vld [vmem:[%s6252_s2 + $0x14c] ss:$16 sps:$4 sm:$0xff]   ;;  %v4222_v48 = vld [vmem:[%s6252_s2 + $0x148] ss:$16 sps:$4 sm:$0xff]  }
  0x11   :  { %1440 = vmatprep.subr.bf16.mxu1 %v4182_v19  ;;  %v40_v49 = vld [vmem:[%s6250_s0] sm:$0xff]  ;;  %v4230_v53 = vld [vmem:[%s6252_s2 + $0x16c] ss:$16 sps:$4 sm:$0xff]   ;;  %v4228_v54 = vld [vmem:[%s6252_s2 + $0x168] ss:$16 sps:$4 sm:$0xff]  }
  0x12   :  { %v4225_v50 = vld [vmem:[%s6252_s2 + $0x160] ss:$16 sps:$4 sm:$0xff]   ;;  %v4226_v51 = vld [vmem:[%s6252_s2 + $0x184] ss:$16 sps:$4 sm:$0xff]   ;;  %v3631_v52 = vcombine.high %v40_v49, %v40_v49  ;;  %v4236_v57 = vld [vmem:[%s6252_s2 + $0x18c] ss:$16 sps:$4 sm:$0xff]   ;;  %v3630_v7 = vcombine.low %v40_v49, %v40_v49 }
  0x13   :  { %1279 = vmatpush1.bf16.msra.mxu0 %v4183_v21  ;;  %v4231_v55 = vld [vmem:[%s6252_s2 + $0x180] ss:$16 sps:$4 sm:$0xff]   ;;  %v4232_v56 = vld [vmem:[%s6252_s2 + $0x1a4] ss:$16 sps:$4 sm:$0xff]   ;;  %v4234_v58 = vld [vmem:[%s6252_s2 + $0x188] ss:$16 sps:$4 sm:$0xff]  }
  0x14   :  { %1441 = vmatpush1.bf16.msra.mxu1 %v4180_v20  ;;  %1280 = vmatprep.subr.bf16.mxu0 %v4184_v22  ;;  %v4237_v59 = vld [vmem:[%s6252_s2 + $0x1a0] ss:$16 sps:$4 sm:$0xff]   ;;  %v4238_v60 = vld [vmem:[%s6252_s2 + $0x1c4] ss:$16 sps:$4 sm:$0xff]   ;;  %v4242_v61 = vld [vmem:[%s6252_s2 + $0x1ac] ss:$16 sps:$4 sm:$0xff]  }
  0x15   :  { %1442 = vmatprep.subr.bf16.mxu1 %v4188_v23  ;;  %1302 = vmatprep.mubr.bf16.mxu0 %v3631_v52  ;;  %v4240_v62 = vld [vmem:[%s6252_s2 + $0x1a8] ss:$16 sps:$4 sm:$0xff]   ;;  %v4243_v63 = vld [vmem:[%s6252_s2 + $0x1c0] ss:$16 sps:$4 sm:$0xff]   ;;  %v4244_v0 = vld [vmem:[%s6252_s2 + $0x1e4] ss:$16 sps:$4 sm:$0xff]  }
  0x16   :  { %1466 = vmatprep.mubr.bf16.mxu1 %v3631_v52  ;;  %v4248_v1 = vld [vmem:[%s6252_s2 + $0x1cc] ss:$16 sps:$4 sm:$0xff]   ;;  %v4246_v3 = vld [vmem:[%s6252_s2 + $0x1c8] ss:$16 sps:$4 sm:$0xff]   ;;  %v4249_v4 = vld [vmem:[%s6252_s2 + $0x1e0] ss:$16 sps:$4 sm:$0xff]  }
  0x17   :  { %1281 = vmatpush1.bf16.msra.mxu0 %v4189_v25  ;;  %v4254_v5 = vld [vmem:[%s6252_s2 + $0x204] ss:$16 sps:$4 sm:$0xff]   ;;  %v4257_v6 = vld [vmem:[%s6252_s2 + $0x1ec] ss:$16 sps:$4 sm:$0xff]   ;;  %v4252_v8 = vld [vmem:[%s6252_s2 + $0x200] ss:$16 sps:$4 sm:$0xff]  }
  0x18   :  { %1443 = vmatpush1.bf16.msra.mxu1 %v4186_v24  ;;  %1282 = vmatprep.subr.bf16.mxu0 %v4190_v26  ;;  %v4255_v9 = vld [vmem:[%s6252_s2 + $0x1e8] ss:$16 sps:$4 sm:$0xff]   ;;  %v4260_v10 = vld [vmem:[%s6252_s2 + $0x224] ss:$16 sps:$4 sm:$0xff]   ;;  %v4263_v11 = vld [vmem:[%s6252_s2 + $0x20c] ss:$16 sps:$4 sm:$0xff]  }
  0x19   :  { %1444 = vmatprep.subr.bf16.mxu1 %v4194_v27  ;;  %v4258_v12 = vld [vmem:[%s6252_s2 + $0x220] ss:$16 sps:$4 sm:$0xff]   ;;  %v4261_v13 = vld [vmem:[%s6252_s2 + $0x208] ss:$16 sps:$4 sm:$0xff]   ;;  %v4266_v14 = vld [vmem:[%s6252_s2 + $0x244] ss:$16 sps:$4 sm:$0xff]  }
  0x1a   :  { %v4269_v15 = vld [vmem:[%s6252_s2 + $0x22c] ss:$16 sps:$4 sm:$0xff]   ;;  %v4264_v16 = vld [vmem:[%s6252_s2 + $0x240] ss:$16 sps:$4 sm:$0xff]   ;;  %v4267_v17 = vld [vmem:[%s6252_s2 + $0x228] ss:$16 sps:$4 sm:$0xff]  }
  0x1b   :  { %1283 = vmatpush1.bf16.msra.mxu0 %v4195_v29  ;;  %v4272_v18 = vld [vmem:[%s6252_s2 + $0x264] ss:$16 sps:$4 sm:$0xff]   ;;  %v4275_v19 = vld [vmem:[%s6252_s2 + $0x24c] ss:$16 sps:$4 sm:$0xff]   ;;  %v4270_v20 = vld [vmem:[%s6252_s2 + $0x260] ss:$16 sps:$4 sm:$0xff]  }
  0x1c   :  { %1445 = vmatpush1.bf16.msra.mxu1 %v4192_v28  ;;  %1284 = vmatprep.subr.bf16.mxu0 %v4196_v30  ;;  %v4273_v21 = vld [vmem:[%s6252_s2 + $0x248] ss:$16 sps:$4 sm:$0xff]   ;;  %v4278_v22 = vld [vmem:[%s6252_s2 + $0x284] ss:$16 sps:$4 sm:$0xff]   ;;  %v4281_v23 = vld [vmem:[%s6252_s2 + $0x26c] ss:$16 sps:$4 sm:$0xff]  }
  0x1d   :  { %1446 = vmatprep.subr.bf16.mxu1 %v4200_v31  ;;  %v4276_v24 = vld [vmem:[%s6252_s2 + $0x280] ss:$16 sps:$4 sm:$0xff]   ;;  %v4279_v25 = vld [vmem:[%s6252_s2 + $0x268] ss:$16 sps:$4 sm:$0xff]   ;;  %v4284_v26 = vld [vmem:[%s6252_s2 + $0x2a4] ss:$16 sps:$4 sm:$0xff]  }
  0x1e   :  { %v4287_v27 = vld [vmem:[%s6252_s2 + $0x28c] ss:$16 sps:$4 sm:$0xff]   ;;  %v4282_v28 = vld [vmem:[%s6252_s2 + $0x2a0] ss:$16 sps:$4 sm:$0xff]   ;;  %v4285_v29 = vld [vmem:[%s6252_s2 + $0x288] ss:$16 sps:$4 sm:$0xff]  }
  0x1f   :  { %1285 = vmatpush1.bf16.msra.mxu0 %v4201_v33  ;;  %v4290_v30 = vld [vmem:[%s6252_s2 + $0x2c4] ss:$16 sps:$4 sm:$0xff]   ;;  %v4293_v31 = vld [vmem:[%s6252_s2 + $0x2ac] ss:$16 sps:$4 sm:$0xff]   ;;  %v4288_v33 = vld [vmem:[%s6252_s2 + $0x2c0] ss:$16 sps:$4 sm:$0xff]  }
  0x20   :  { %1447 = vmatpush1.bf16.msra.mxu1 %v4198_v32  ;;  %1286 = vmatprep.subr.bf16.mxu0 %v4202_v34  ;;  %v5149_v32 = vld [vmem:[%s6250_s0 + $0x8] sm:$0xff]  ;;  %v4320_v52 = vld [vmem:[%s6252_s2 + $0x364] ss:$16 sps:$4 sm:$0xff]  }
  0x21   :  { %1448 = vmatprep.subr.bf16.mxu1 %v4206_v35  ;;  %v4291_v34 = vld [vmem:[%s6252_s2 + $0x2a8] ss:$16 sps:$4 sm:$0xff]   ;;  %v3633_v35 = vcombine.high %v5149_v32, %v5149_v32  ;;  %v4317_v49 = vld [vmem:[%s6252_s2 + $0x32c] ss:$16 sps:$4 sm:$0xff]  }
  0x23   :  { %1287 = vmatpush1.bf16.msra.mxu0 %v4207_v37  ;;  %v4299_v37 = vld [vmem:[%s6252_s2 + $0x2cc] ss:$16 sps:$4 sm:$0xff]  }
  0x24   :  { %1449 = vmatpush1.bf16.msra.mxu1 %v4204_v36  ;;  %1288 = vmatprep.subr.bf16.mxu0 %v4208_v38  ;;  %v4296_v36 = vld [vmem:[%s6252_s2 + $0x2e4] ss:$16 sps:$4 sm:$0xff]   ;;  %v4294_v38 = vld [vmem:[%s6252_s2 + $0x2e0] ss:$16 sps:$4 sm:$0xff]  }
  0x25   :  { %1450 = vmatprep.subr.bf16.mxu1 %v4212_v39  ;;  %v4297_v39 = vld [vmem:[%s6252_s2 + $0x2c8] ss:$16 sps:$4 sm:$0xff]  }
  0x27   :  { %1289 = vmatpush1.bf16.msra.mxu0 %v4213_v41  ;;  %v4305_v41 = vld [vmem:[%s6252_s2 + $0x2ec] ss:$16 sps:$4 sm:$0xff]  }
  0x28   :  { %1451 = vmatpush1.bf16.msra.mxu1 %v4210_v40  ;;  %1290 = vmatprep.subr.bf16.mxu0 %v4214_v42  ;;  %v4302_v40 = vld [vmem:[%s6252_s2 + $0x304] ss:$16 sps:$4 sm:$0xff]   ;;  %v4300_v42 = vld [vmem:[%s6252_s2 + $0x300] ss:$16 sps:$4 sm:$0xff]  }
  0x29   :  { %1452 = vmatprep.subr.bf16.mxu1 %v4218_v43  ;;  %v4303_v43 = vld [vmem:[%s6252_s2 + $0x2e8] ss:$16 sps:$4 sm:$0xff]  }
  0x2b   :  { %1291 = vmatpush1.bf16.msra.mxu0 %v4219_v45  ;;  %v4311_v45 = vld [vmem:[%s6252_s2 + $0x30c] ss:$16 sps:$4 sm:$0xff]  }
  0x2c   :  { %1453 = vmatpush1.bf16.msra.mxu1 %v4216_v44  ;;  %1292 = vmatprep.subr.bf16.mxu0 %v4220_v46  ;;  %v4308_v44 = vld [vmem:[%s6252_s2 + $0x324] ss:$16 sps:$4 sm:$0xff]   ;;  %v4306_v46 = vld [vmem:[%s6252_s2 + $0x320] ss:$16 sps:$4 sm:$0xff]  }
  0x2d   :  { %1454 = vmatprep.subr.bf16.mxu1 %v4224_v47  ;;  %v4309_v47 = vld [vmem:[%s6252_s2 + $0x308] ss:$16 sps:$4 sm:$0xff]  }
  0x2f   :  { %1293 = vmatpush1.bf16.msra.mxu0 %v4225_v50  ;;  %v4312_v50 = vld [vmem:[%s6252_s2 + $0x340] ss:$16 sps:$4 sm:$0xff]  }
  0x30   :  { %1455 = vmatpush1.bf16.msra.mxu1 %v4222_v48  ;;  %1294 = vmatprep.subr.bf16.mxu0 %v4226_v51  ;;  %v4314_v48 = vld [vmem:[%s6252_s2 + $0x344] ss:$16 sps:$4 sm:$0xff]   ;;  %v4315_v51 = vld [vmem:[%s6252_s2 + $0x328] ss:$16 sps:$4 sm:$0xff]  }
  0x31   :  { %1456 = vmatprep.subr.bf16.mxu1 %v4230_v53  ;;  %v4323_v53 = vld [vmem:[%s6252_s2 + $0x34c] ss:$16 sps:$4 sm:$0xff]  }
  0x33   :  { %1295 = vmatpush1.bf16.msra.mxu0 %v4231_v55  ;;  %v4321_v55 = vld [vmem:[%s6252_s2 + $0x348] ss:$16 sps:$4 sm:$0xff]  }
  0x34   :  { %1457 = vmatpush1.bf16.msra.mxu1 %v4228_v54  ;;  %1296 = vmatprep.subr.bf16.mxu0 %v4232_v56  ;;  %v4318_v54 = vld [vmem:[%s6252_s2 + $0x360] ss:$16 sps:$4 sm:$0xff]   ;;  %v4326_v56 = vld [vmem:[%s6252_s2 + $0x384] ss:$16 sps:$4 sm:$0xff]  }
  0x35   :  { %1458 = vmatprep.subr.bf16.mxu1 %v4236_v57  ;;  %v4329_v57 = vld [vmem:[%s6252_s2 + $0x36c] ss:$16 sps:$4 sm:$0xff]  }
  0x37   :  { %1297 = vmatpush1.bf16.msra.mxu0 %v4237_v59  ;;  %v4327_v59 = vld [vmem:[%s6252_s2 + $0x368] ss:$16 sps:$4 sm:$0xff]  }
  0x38   :  { %1459 = vmatpush1.bf16.msra.mxu1 %v4234_v58  ;;  %1298 = vmatprep.subr.bf16.mxu0 %v4238_v60  ;;  %v4324_v58 = vld [vmem:[%s6252_s2 + $0x380] ss:$16 sps:$4 sm:$0xff]   ;;  %v4332_v60 = vld [vmem:[%s6252_s2 + $0x3a4] ss:$16 sps:$4 sm:$0xff]  }
  0x39   :  { %1460 = vmatprep.subr.bf16.mxu1 %v4242_v61  ;;  %v4335_v61 = vld [vmem:[%s6252_s2 + $0x38c] ss:$16 sps:$4 sm:$0xff]  }
  0x3b   :  { %1299 = vmatpush1.bf16.msra.mxu0 %v4243_v63  ;;  %v4333_v63 = vld [vmem:[%s6252_s2 + $0x388] ss:$16 sps:$4 sm:$0xff]  }
  0x3c   :  { %1461 = vmatpush1.bf16.msra.mxu1 %v4240_v62  ;;  %1300 = vmatprep.subr.bf16.mxu0 %v4244_v0  ;;  %v4330_v62 = vld [vmem:[%s6252_s2 + $0x3a0] ss:$16 sps:$4 sm:$0xff]   ;;  %v4338_v0 = vld [vmem:[%s6252_s2 + $0x3c4] ss:$16 sps:$4 sm:$0xff]  }
  0x3d   :  { %1462 = vmatprep.subr.bf16.mxu1 %v4248_v1  ;;  %v4341_v1 = vld [vmem:[%s6252_s2 + $0x3ac] ss:$16 sps:$4 sm:$0xff]  }
  0x3f   :  { %1301 = vmatpush1.bf16.msra.mxu0 %v4249_v4  ;;  %v4339_v4 = vld [vmem:[%s6252_s2 + $0x3a8] ss:$16 sps:$4 sm:$0xff]  }
  0x40   :  { %1463 = vmatpush1.bf16.msra.mxu1 %v4246_v3  ;;  %1311 = vmatprep.subr.bf16.mxu0 %v4254_v5  ;;  %v4336_v3 = vld [vmem:[%s6252_s2 + $0x3c0] ss:$16 sps:$4 sm:$0xff]   ;;  %v4344_v5 = vld [vmem:[%s6252_s2 + $0x3e4] ss:$16 sps:$4 sm:$0xff]  }
  0x41   :  { %1464 = vmatprep.subr.bf16.mxu1 %v4257_v6  ;;  %v4347_v6 = vld [vmem:[%s6252_s2 + $0x3cc] ss:$16 sps:$4 sm:$0xff]  }
  0x42   :  { %1303 = vmatmul.mubr.bf16.vlgmr.msra.gmra.mrb[0].mxu0 %v3630_v7 }
  0x43   :  { %1312 = vmatpush1.bf16.msra.mxu0 %v4252_v8  ;;  %1343 = vmatprep.mubr.bf16.mxu0 %v3633_v35  ;;  %v4345_v8 = vld [vmem:[%s6252_s2 + $0x3c8] ss:$16 sps:$4 sm:$0xff]  }
  0x44   :  { %1465 = vmatpush1.bf16.msra.mxu1 %v4255_v9  ;;  %1313 = vmatprep.subr.bf16.mxu0 %v4260_v10  ;;  %v4352_v9 = vld [vmem:[%s6252_s2 + $0x404] ss:$16 sps:$4 sm:$0xff]   ;;  %v4355_v10 = vld [vmem:[%s6252_s2 + $0x3ec] ss:$16 sps:$4 sm:$0xff]  }
  0x45   :  { %1475 = vmatprep.subr.bf16.mxu1 %v4263_v11  ;;  %v3632_v11 = vcombine.low %v5149_v32, %v5149_v32  ;;  %v4382_v32 = vld [vmem:[%s6252_s2 + $0x4a4] ss:$16 sps:$4 sm:$0xff]  }
  0x47   :  { %1467 = vmatmul.mubr.bf16.vlgmr.msra.gmra.mrb[4].mxu1 %v3630_v7  ;;  %1314 = vmatpush1.bf16.msra.mxu0 %v4258_v12  ;;  %v4342_v7 = vld [vmem:[%s6252_s2 + $0x3e0] ss:$16 sps:$4 sm:$0xff]  }
  0x48   :  { %1476 = vmatpush1.bf16.msra.mxu1 %v4261_v13  ;;  %1315 = vmatprep.subr.bf16.mxu0 %v4266_v14  ;;  %v4350_v12 = vld [vmem:[%s6252_s2 + $0x400] ss:$16 sps:$4 sm:$0xff]   ;;  %v4353_v13 = vld [vmem:[%s6252_s2 + $0x3e8] ss:$16 sps:$4 sm:$0xff]   ;;  %v4358_v14 = vld [vmem:[%s6252_s2 + $0x424] ss:$16 sps:$4 sm:$0xff]  }
  0x49   :  { %1477 = vmatprep.subr.bf16.mxu1 %v4269_v15  ;;  %1507 = vmatprep.mubr.bf16.mxu1 %v3633_v35  ;;  %v4361_v15 = vld [vmem:[%s6252_s2 + $0x40c] ss:$16 sps:$4 sm:$0xff]   ;;  %v4383_v35 = vld [vmem:[%s6252_s2 + $0x488] ss:$16 sps:$4 sm:$0xff]  }
  0x4b   :  { %1316 = vmatpush1.bf16.msra.mxu0 %v4264_v16  ;;  %v5290_v16 = vld [vmem:[%s6250_s0 + $0x10] sm:$0xff] }
  0x4c   :  { %1478 = vmatpush1.bf16.msra.mxu1 %v4267_v17  ;;  %1317 = vmatprep.subr.bf16.mxu0 %v4272_v18  ;;  %v4356_v17 = vld [vmem:[%s6252_s2 + $0x420] ss:$16 sps:$4 sm:$0xff]   ;;  %v3635_v18 = vcombine.high %v5290_v16, %v5290_v16 }
  0x4d   :  { %1479 = vmatprep.subr.bf16.mxu1 %v4275_v19  ;;  %v4359_v19 = vld [vmem:[%s6252_s2 + $0x408] ss:$16 sps:$4 sm:$0xff]  }
  0x4f   :  { %1318 = vmatpush1.bf16.msra.mxu0 %v4270_v20  ;;  %v4364_v20 = vld [vmem:[%s6252_s2 + $0x444] ss:$16 sps:$4 sm:$0xff]  }
  0x50   :  { %1480 = vmatpush1.bf16.msra.mxu1 %v4273_v21  ;;  %1319 = vmatprep.subr.bf16.mxu0 %v4278_v22  ;;  %v4367_v21 = vld [vmem:[%s6252_s2 + $0x42c] ss:$16 sps:$4 sm:$0xff]   ;;  %v4362_v22 = vld [vmem:[%s6252_s2 + $0x440] ss:$16 sps:$4 sm:$0xff]  }
  0x51   :  { %1481 = vmatprep.subr.bf16.mxu1 %v4281_v23  ;;  %v4365_v23 = vld [vmem:[%s6252_s2 + $0x428] ss:$16 sps:$4 sm:$0xff]  }
  0x53   :  { %1320 = vmatpush1.bf16.msra.mxu0 %v4276_v24  ;;  %v4370_v24 = vld [vmem:[%s6252_s2 + $0x464] ss:$16 sps:$4 sm:$0xff]  }
  0x54   :  { %1482 = vmatpush1.bf16.msra.mxu1 %v4279_v25  ;;  %1321 = vmatprep.subr.bf16.mxu0 %v4284_v26  ;;  %v4373_v25 = vld [vmem:[%s6252_s2 + $0x44c] ss:$16 sps:$4 sm:$0xff]   ;;  %v4368_v26 = vld [vmem:[%s6252_s2 + $0x460] ss:$16 sps:$4 sm:$0xff]  }
  0x55   :  { %1483 = vmatprep.subr.bf16.mxu1 %v4287_v27  ;;  %v4371_v27 = vld [vmem:[%s6252_s2 + $0x448] ss:$16 sps:$4 sm:$0xff]  }
  0x57   :  { %1322 = vmatpush1.bf16.msra.mxu0 %v4282_v28  ;;  %v4376_v28 = vld [vmem:[%s6252_s2 + $0x484] ss:$16 sps:$4 sm:$0xff]  }
  0x58   :  { %1484 = vmatpush1.bf16.msra.mxu1 %v4285_v29  ;;  %1323 = vmatprep.subr.bf16.mxu0 %v4290_v30  ;;  %v4379_v29 = vld [vmem:[%s6252_s2 + $0x46c] ss:$16 sps:$4 sm:$0xff]   ;;  %v4374_v30 = vld [vmem:[%s6252_s2 + $0x480] ss:$16 sps:$4 sm:$0xff]  }
  0x59   :  { %1485 = vmatprep.subr.bf16.mxu1 %v4293_v31  ;;  %v4377_v31 = vld [vmem:[%s6252_s2 + $0x468] ss:$16 sps:$4 sm:$0xff]  }
  0x5b   :  { %1324 = vmatpush1.bf16.msra.mxu0 %v4288_v33  ;;  %v4385_v33 = vld [vmem:[%s6252_s2 + $0x48c] ss:$16 sps:$4 sm:$0xff]  }
  0x5c   :  { %1486 = vmatpush1.bf16.msra.mxu1 %v4291_v34  ;;  %1325 = vmatprep.subr.bf16.mxu0 %v4296_v36  ;;  %v4380_v34 = vld [vmem:[%s6252_s2 + $0x4a0] ss:$16 sps:$4 sm:$0xff]   ;;  %v4388_v36 = vld [vmem:[%s6252_s2 + $0x4c4] ss:$16 sps:$4 sm:$0xff]  }
  0x5d   :  { %1487 = vmatprep.subr.bf16.mxu1 %v4299_v37  ;;  %v4391_v37 = vld [vmem:[%s6252_s2 + $0x4ac] ss:$16 sps:$4 sm:$0xff]  }
  0x5f   :  { %1326 = vmatpush1.bf16.msra.mxu0 %v4294_v38  ;;  %v4386_v38 = vld [vmem:[%s6252_s2 + $0x4c0] ss:$16 sps:$4 sm:$0xff]  }
  0x60   :  { %1488 = vmatpush1.bf16.msra.mxu1 %v4297_v39  ;;  %1327 = vmatprep.subr.bf16.mxu0 %v4302_v40  ;;  %v4389_v39 = vld [vmem:[%s6252_s2 + $0x4a8] ss:$16 sps:$4 sm:$0xff]   ;;  %v4394_v40 = vld [vmem:[%s6252_s2 + $0x4e4] ss:$16 sps:$4 sm:$0xff]  }
  0x61   :  { %1489 = vmatprep.subr.bf16.mxu1 %v4305_v41  ;;  %v4397_v41 = vld [vmem:[%s6252_s2 + $0x4cc] ss:$16 sps:$4 sm:$0xff]  }
  0x63   :  { %1328 = vmatpush1.bf16.msra.mxu0 %v4300_v42  ;;  %v4392_v42 = vld [vmem:[%s6252_s2 + $0x4e0] ss:$16 sps:$4 sm:$0xff]  }
  0x64   :  { %1490 = vmatpush1.bf16.msra.mxu1 %v4303_v43  ;;  %1329 = vmatprep.subr.bf16.mxu0 %v4308_v44  ;;  %v4395_v43 = vld [vmem:[%s6252_s2 + $0x4c8] ss:$16 sps:$4 sm:$0xff]   ;;  %v4400_v44 = vld [vmem:[%s6252_s2 + $0x504] ss:$16 sps:$4 sm:$0xff]  }
  0x65   :  { %1491 = vmatprep.subr.bf16.mxu1 %v4311_v45  ;;  %v4403_v45 = vld [vmem:[%s6252_s2 + $0x4ec] ss:$16 sps:$4 sm:$0xff]  }
  0x67   :  { %1330 = vmatpush1.bf16.msra.mxu0 %v4306_v46  ;;  %v4398_v46 = vld [vmem:[%s6252_s2 + $0x500] ss:$16 sps:$4 sm:$0xff]  }
  0x68   :  { %1492 = vmatpush1.bf16.msra.mxu1 %v4309_v47  ;;  %1331 = vmatprep.subr.bf16.mxu0 %v4314_v48  ;;  %v4401_v47 = vld [vmem:[%s6252_s2 + $0x4e8] ss:$16 sps:$4 sm:$0xff]   ;;  %v4406_v48 = vld [vmem:[%s6252_s2 + $0x524] ss:$16 sps:$4 sm:$0xff]  }
  0x69   :  { %1493 = vmatprep.subr.bf16.mxu1 %v4317_v49  ;;  %v4409_v49 = vld [vmem:[%s6252_s2 + $0x50c] ss:$16 sps:$4 sm:$0xff]  }
  0x6b   :  { %1332 = vmatpush1.bf16.msra.mxu0 %v4312_v50  ;;  %v4404_v50 = vld [vmem:[%s6252_s2 + $0x520] ss:$16 sps:$4 sm:$0xff]  }
  0x6c   :  { %1494 = vmatpush1.bf16.msra.mxu1 %v4315_v51  ;;  %1333 = vmatprep.subr.bf16.mxu0 %v4320_v52  ;;  %v4407_v51 = vld [vmem:[%s6252_s2 + $0x508] ss:$16 sps:$4 sm:$0xff]   ;;  %v4412_v52 = vld [vmem:[%s6252_s2 + $0x544] ss:$16 sps:$4 sm:$0xff]  }
  0x6d   :  { %1495 = vmatprep.subr.bf16.mxu1 %v4323_v53  ;;  %v4415_v53 = vld [vmem:[%s6252_s2 + $0x52c] ss:$16 sps:$4 sm:$0xff]  }
  0x6f   :  { %1334 = vmatpush1.bf16.msra.mxu0 %v4318_v54  ;;  %v4410_v54 = vld [vmem:[%s6252_s2 + $0x540] ss:$16 sps:$4 sm:$0xff]  }
  0x70   :  { %1496 = vmatpush1.bf16.msra.mxu1 %v4321_v55  ;;  %1335 = vmatprep.subr.bf16.mxu0 %v4326_v56  ;;  %v4413_v55 = vld [vmem:[%s6252_s2 + $0x528] ss:$16 sps:$4 sm:$0xff]   ;;  %v4418_v56 = vld [vmem:[%s6252_s2 + $0x564] ss:$16 sps:$4 sm:$0xff]  }
  0x71   :  { %1497 = vmatprep.subr.bf16.mxu1 %v4329_v57  ;;  %v4421_v57 = vld [vmem:[%s6252_s2 + $0x54c] ss:$16 sps:$4 sm:$0xff]  }
  0x73   :  { %1336 = vmatpush1.bf16.msra.mxu0 %v4324_v58  ;;  %v4416_v58 = vld [vmem:[%s6252_s2 + $0x560] ss:$16 sps:$4 sm:$0xff]  }
  0x74   :  { %1498 = vmatpush1.bf16.msra.mxu1 %v4327_v59  ;;  %1337 = vmatprep.subr.bf16.mxu0 %v4332_v60  ;;  %v4419_v59 = vld [vmem:[%s6252_s2 + $0x548] ss:$16 sps:$4 sm:$0xff]   ;;  %v4424_v60 = vld [vmem:[%s6252_s2 + $0x584] ss:$16 sps:$4 sm:$0xff]  }
  0x75   :  { %1499 = vmatprep.subr.bf16.mxu1 %v4335_v61  ;;  %v4427_v61 = vld [vmem:[%s6252_s2 + $0x56c] ss:$16 sps:$4 sm:$0xff]  }
  0x77   :  { %1338 = vmatpush1.bf16.msra.mxu0 %v4330_v62  ;;  %v4422_v62 = vld [vmem:[%s6252_s2 + $0x580] ss:$16 sps:$4 sm:$0xff]  }
  0x78   :  { %1500 = vmatpush1.bf16.msra.mxu1 %v4333_v63  ;;  %1339 = vmatprep.subr.bf16.mxu0 %v4338_v0  ;;  %v4425_v63 = vld [vmem:[%s6252_s2 + $0x568] ss:$16 sps:$4 sm:$0xff]   ;;  %v4430_v0 = vld [vmem:[%s6252_s2 + $0x5a4] ss:$16 sps:$4 sm:$0xff]  }
  0x79   :  { %1501 = vmatprep.subr.bf16.mxu1 %v4341_v1  ;;  %v4433_v1 = vld [vmem:[%s6252_s2 + $0x58c] ss:$16 sps:$4 sm:$0xff]  }
  0x7b   :  { %1340 = vmatpush1.bf16.msra.mxu0 %v4336_v3  ;;  %v4428_v3 = vld [vmem:[%s6252_s2 + $0x5a0] ss:$16 sps:$4 sm:$0xff]  }
  0x7c   :  { %1502 = vmatpush1.bf16.msra.mxu1 %v4339_v4  ;;  %1341 = vmatprep.subr.bf16.mxu0 %v4344_v5  ;;  %v4431_v4 = vld [vmem:[%s6252_s2 + $0x588] ss:$16 sps:$4 sm:$0xff]   ;;  %v4436_v5 = vld [vmem:[%s6252_s2 + $0x5c4] ss:$16 sps:$4 sm:$0xff]  }
  0x7d   :  { %1503 = vmatprep.subr.bf16.mxu1 %v4347_v6  ;;  %v4439_v6 = vld [vmem:[%s6252_s2 + $0x5ac] ss:$16 sps:$4 sm:$0xff]  }
  0x7f   :  { %1342 = vmatpush1.bf16.msra.mxu0 %v4342_v7  ;;  %v4434_v7 = vld [vmem:[%s6252_s2 + $0x5c0] ss:$16 sps:$4 sm:$0xff]  }
  0x80   :  { %1504 = vmatpush1.bf16.msra.mxu1 %v4345_v8  ;;  %1352 = vmatprep.subr.bf16.mxu0 %v4352_v9  ;;  %v4437_v8 = vld [vmem:[%s6252_s2 + $0x5a8] ss:$16 sps:$4 sm:$0xff]   ;;  %v4442_v9 = vld [vmem:[%s6252_s2 + $0x5e4] ss:$16 sps:$4 sm:$0xff]  }
  0x81   :  { %1505 = vmatprep.subr.bf16.mxu1 %v4355_v10  ;;  %v4445_v10 = vld [vmem:[%s6252_s2 + $0x5cc] ss:$16 sps:$4 sm:$0xff]  }
  0x82   :  { %1344 = vmatmul.mubr.bf16.vlgmr.msra.gmra.mrb[0].mxu0 %v3632_v11 }
  0x83   :  { %1353 = vmatpush1.bf16.msra.mxu0 %v4350_v12  ;;  %1384 = vmatprep.mubr.bf16.mxu0 %v3635_v18  ;;  %v4443_v12 = vld [vmem:[%s6252_s2 + $0x5c8] ss:$16 sps:$4 sm:$0xff]  }
  0x84   :  { %1506 = vmatpush1.bf16.msra.mxu1 %v4353_v13  ;;  %1354 = vmatprep.subr.bf16.mxu0 %v4358_v14  ;;  %v4450_v13 = vld [vmem:[%s6252_s2 + $0x5ec] ss:$16 sps:$4 sm:$0xff]   ;;  %v4454_v14 = vld [vmem:[%s6254_s4 + $0x40] sm:$0xff]  }
  0x85   :  { %1516 = vmatprep.subr.bf16.mxu1 %v4361_v15  ;;  %v4448_v15 = vld [vmem:[%s6252_s2 + $0x5e8] ss:$16 sps:$4 sm:$0xff]  }
  0x87   :  { %1508 = vmatmul.mubr.bf16.vlgmr.msra.gmra.mrb[4].mxu1 %v3632_v11  ;;  %1355 = vmatpush1.bf16.msra.mxu0 %v4356_v17  ;;  %v4440_v11 = vld [vmem:[%s6252_s2 + $0x5e0] ss:$16 sps:$4 sm:$0xff]  }
  0x88   :  { %1517 = vmatpush1.bf16.msra.mxu1 %v4359_v19  ;;  %1356 = vmatprep.subr.bf16.mxu0 %v4364_v20  ;;  %v4455_v17 = vld [vmem:[%s6254_s4] sm:$0xff]   ;;  %v4453_v19 = vld [vmem:[%s6252_s2 + $0x60c] ss:$16 sps:$4 sm:$0xff]  }
  0x89   :  { %1518 = vmatprep.subr.bf16.mxu1 %v4367_v21  ;;  %1548 = vmatprep.mubr.bf16.mxu1 %v3635_v18  ;;  %v3634_v18 = vcombine.low %v5290_v16, %v5290_v16  ;;  %v4456_v20 = vld [vmem:[%s6254_s4 + $0x48] sm:$0xff]  }
  0x8a   :  { %v4451_v21 = vld [vmem:[%s6252_s2 + $0x608] ss:$16 sps:$4 sm:$0xff]  }
  0x8b   :  { %1357 = vmatpush1.bf16.msra.mxu0 %v4362_v22  ;;  %v4457_v16 = vld [vmem:[%s6254_s4 + $0x8] sm:$0xff]   ;;  %v4458_v22 = vld [vmem:[%s6254_s4 + $0x50] sm:$0xff]  }
  0x8c   :  { %1519 = vmatpush1.bf16.msra.mxu1 %v4365_v23  ;;  %1358 = vmatprep.subr.bf16.mxu0 %v4370_v24  ;;  %v4459_v23 = vld [vmem:[%s6254_s4 + $0x10] sm:$0xff]   ;;  %v4461_v24 = vld [vmem:[%s6254_s4 + $0x58] sm:$0xff]  }
  0x8d   :  { %1520 = vmatprep.subr.bf16.mxu1 %v4373_v25  ;;  %v4462_v25 = vld [vmem:[%s6254_s4 + $0x18] sm:$0xff]  }
  0x8f   :  { %1359 = vmatpush1.bf16.msra.mxu0 %v4368_v26  ;;  %v4464_v26 = vld [vmem:[%s6254_s4 + $0x60] sm:$0xff]  }
  0x90   :  { %1521 = vmatpush1.bf16.msra.mxu1 %v4371_v27  ;;  %1360 = vmatprep.subr.bf16.mxu0 %v4376_v28  ;;  %v4460_v27 = vld [vmem:[%s6254_s4 + $0x80] sm:$0xff]  }
  0x91   :  { %1522 = vmatprep.subr.bf16.mxu1 %v4379_v29  ;;  %v4465_v28 = vld [vmem:[%s6254_s4 + $0x20] sm:$0xff]   ;;  %v4467_v29 = vld [vmem:[%s6254_s4 + $0x68] sm:$0xff]  }
  0x93   :  { %1361 = vmatpush1.bf16.msra.mxu0 %v4374_v30  ;;  %v4463_v30 = vld [vmem:[%s6254_s4 + $0x88] sm:$0xff]  }
  0x94   :  { %1523 = vmatpush1.bf16.msra.mxu1 %v4377_v31  ;;  %1362 = vmatprep.subr.bf16.mxu0 %v4382_v32  ;;  %v4755_v31 = vld [vmem:[%s6250_s0 + $0x18] ss:$0 sps:$4 sm:$0xff]   ;;  %v4466_v32 = vld [vmem:[%s6254_s4 + $0x90] sm:$0xff]  }
  0x95   :  { %1524 = vmatprep.subr.bf16.mxu1 %v4385_v33 }
  0x97   :  { %1363 = vmatpush1.bf16.msra.mxu0 %v4380_v34 }
  0x98   :  { %1525 = vmatpush1.bf16.msra.mxu1 %v4383_v35  ;;  %1364 = vmatprep.subr.bf16.mxu0 %v4388_v36 }
  0x99   :  { %1526 = vmatprep.subr.bf16.mxu1 %v4391_v37 }
  0x9b   :  { %1365 = vmatpush1.bf16.msra.mxu0 %v4386_v38 }
  0x9c   :  { %1527 = vmatpush1.bf16.msra.mxu1 %v4389_v39  ;;  %1366 = vmatprep.subr.bf16.mxu0 %v4394_v40 }
  0x9d   :  { %1528 = vmatprep.subr.bf16.mxu1 %v4397_v41 }
  0x9f   :  { %1367 = vmatpush1.bf16.msra.mxu0 %v4392_v42 }
  0xa0   :  { %1529 = vmatpush1.bf16.msra.mxu1 %v4395_v43  ;;  %1368 = vmatprep.subr.bf16.mxu0 %v4400_v44 }
  0xa1   :  { %1530 = vmatprep.subr.bf16.mxu1 %v4403_v45 }
  0xa3   :  { %1369 = vmatpush1.bf16.msra.mxu0 %v4398_v46 }
  0xa4   :  { %1531 = vmatpush1.bf16.msra.mxu1 %v4401_v47  ;;  %1370 = vmatprep.subr.bf16.mxu0 %v4406_v48 }
  0xa5   :  { %1532 = vmatprep.subr.bf16.mxu1 %v4409_v49 }
  0xa7   :  { %1371 = vmatpush1.bf16.msra.mxu0 %v4404_v50 }
  0xa8   :  { %1533 = vmatpush1.bf16.msra.mxu1 %v4407_v51  ;;  %1372 = vmatprep.subr.bf16.mxu0 %v4412_v52 }
  0xa9   :  { %1534 = vmatprep.subr.bf16.mxu1 %v4415_v53 }
  0xab   :  { %1373 = vmatpush1.bf16.msra.mxu0 %v4410_v54 }
  0xac   :  { %1535 = vmatpush1.bf16.msra.mxu1 %v4413_v55  ;;  %1374 = vmatprep.subr.bf16.mxu0 %v4418_v56 }
  0xad   :  { %1536 = vmatprep.subr.bf16.mxu1 %v4421_v57 }
  0xaf   :  { %1375 = vmatpush1.bf16.msra.mxu0 %v4416_v58 }
  0xb0   :  { %1537 = vmatpush1.bf16.msra.mxu1 %v4419_v59  ;;  %1376 = vmatprep.subr.bf16.mxu0 %v4424_v60 }
  0xb1   :  { %1538 = vmatprep.subr.bf16.mxu1 %v4427_v61 }
  0xb3   :  { %1377 = vmatpush1.bf16.msra.mxu0 %v4422_v62 }
  0xb4   :  { %1539 = vmatpush1.bf16.msra.mxu1 %v4425_v63  ;;  %1378 = vmatprep.subr.bf16.mxu0 %v4430_v0 }
  0xb5   :  { %1540 = vmatprep.subr.bf16.mxu1 %v4433_v1 }
  0xb7   :  { %1379 = vmatpush1.bf16.msra.mxu0 %v4428_v3 }
  0xb8   :  { %1541 = vmatpush1.bf16.msra.mxu1 %v4431_v4  ;;  %1380 = vmatprep.subr.bf16.mxu0 %v4436_v5 }
  0xb9   :  { %1542 = vmatprep.subr.bf16.mxu1 %v4439_v6 }
  0xbb   :  { %1381 = vmatpush1.bf16.msra.mxu0 %v4434_v7 }
  0xbc   :  { %1543 = vmatpush1.bf16.msra.mxu1 %v4437_v8  ;;  %1382 = vmatprep.subr.bf16.mxu0 %v4442_v9 }
  0xbd   :  { %1544 = vmatprep.subr.bf16.mxu1 %v4445_v10 }
  0xbf   :  { %1383 = vmatpush1.bf16.msra.mxu0 %v4440_v11 }
  0xc0   :  { %1545 = vmatpush1.bf16.msra.mxu1 %v4443_v12  ;;  %4061 = vmatprep.subr.bf16.mxu0 %v4454_v14 }
  0xc1   :  { %1546 = vmatprep.subr.bf16.mxu1 %v4450_v13 }
  0xc2   :  { %1385 = vmatmul.mubr.bf16.vlgmr.msra.gmra.mrb[0].mxu0 %v3634_v18 }
  0xc3   :  { %4062 = vmatpush3.bf16.msra.mxu0 %v4455_v17 }
  0xc4   :  { %1547 = vmatpush1.bf16.msra.mxu1 %v4448_v15  ;;  %4063 = vmatprep.subr.bf16.mxu0 %v4456_v20 }
  0xc5   :  { %1557 = vmatprep.subr.bf16.mxu1 %v4453_v19 }
  0xc7   :  { %1549 = vmatmul.mubr.bf16.vlgmr.msra.gmra.mrb[4].mxu1 %v3634_v18  ;;  %4064 = vmatpush3.bf16.msra.mxu0 %v4457_v16 }
  0xc8   :  { %1558 = vmatpush1.bf16.msra.mxu1 %v4451_v21  ;;  %1589 = vmatprep.mubr.bf16.mxu1 %v4804_v2 }
  0xc9   :  { %1856 = vmatprep.subr.bf16.mxu1 %v4804_v2  ;;  %4065 = vmatprep.subr.bf16.mxu0 %v4458_v22 }
  0xcb   :  { %4066 = vmatpush3.bf16.msra.mxu0 %v4459_v23 }
  0xcc   :  { %4067 = vmatprep.subr.bf16.mxu0 %v4461_v24 }
  0xcf   :  { %4068 = vmatpush3.bf16.msra.mxu0 %v4462_v25 }
  0xd0   :  { %4069 = vmatprep.subr.bf16.mxu0 %v4464_v26 }
  0xd3   :  { %3834 = vmatmul.mubr.msk.bf16.vlgmr.msra.gmra.mrb[4].mxu1 %vm1266_vm0, %v4755_v31  ;;  %4070 = vmatpush3.bf16.msra.mxu0 %v4465_v28 }
  0xd4   :  { %1857 = vmatpush1.bf16.msra.mxu1 %v4460_v27  ;;  %4071 = vmatprep.subr.bf16.mxu0 %v4467_v29 }
  0xd5   :  { %1858 = vmatprep.subr.bf16.mxu1 %v4804_v2 }
  0xd8   :  { %1859 = vmatpush1.bf16.msra.mxu1 %v4463_v30 }
  0xd9   :  { %1860 = vmatprep.subr.bf16.mxu1 %v4804_v2 }
  0xda   :  { %v1427_v33 = vpop.f32.mrb[0].mxu1 }
  0xdb   :  { %v1429_v34 = vpop.f32.mrb[1].mxu1 }
  0xdc   :  { %v1431_v35 = vpop.f32.mrb[2].mxu1  ;;  %1861 = vmatpush1.bf16.msra.mxu1 %v4466_v32 }
  0xdd   :  { %v1432_v36 = vpop.f32.mrb[3].mxu1  ;;  %1862 = vmatprep.subr.bf16.mxu1 %v4804_v2 }
  0xde   :  { %18 = vsyncpa [#allocation5], 0  ;;  %v4468_v37 = vld [vmem:[%s6254_s4 + $0x28] sm:$0xff]   ;;  %v4469_v38 = vld [vmem:[%s6254_s4 + $0x98] sm:$0xff]   ;;  %v242_v48 = vlaneseq  ;;  %vm1971_vm1 = vcmask 1041408   ;;  %s4805_s17 = smov 108  }
  0xdf   :  { %4072 = vmatpush3.bf16.msra.mxu0 %v4468_v37  ;;  %v4470_v39 = vld [vmem:[%s6254_s4 + $0x70] sm:$0xff]   ;;  %v4472_v41 = vld [vmem:[%s6254_s4 + $0xa0] sm:$0xff]   ;;  %v4473_v42 = vld [vmem:[%s6254_s4 + $0x78] sm:$0xff]   ;;  %vm1967_vm2 = vcmask 162816   ;;  %s4806_s30 = smov [#allocation4]  }
  0xe0   :  { %1863 = vmatpush1.bf16.msra.mxu1 %v4469_v38  ;;  %v4471_v40 = vld [vmem:[%s6254_s4 + $0x30] sm:$0xff]   ;;  %4073 = vmatprep.subr.bf16.mxu0 %v4470_v39  ;;  %v4474_v43 = vld [vmem:[%s6254_s4 + $0x38] sm:$0xff]   ;;  %v4475_v44 = vld [vmem:[%s6254_s4 + $0xa8] sm:$0xff]   ;;  %v5571_v49 = vshrl.u32 %v242_v48, 7 }
  0xe1   :  { %1864 = vmatprep.subr.bf16.mxu1 %v4804_v2  ;;  %v4476_v45 = vld [vmem:[%s6254_s4 + $0xb0] sm:$0xff]   ;;  %v4477_v46 = vld [vmem:[%s6254_s4 + $0xb8] sm:$0xff]   ;;  %v4478_v47 = vld [vmem:[%s6254_s4 + $0xc0] sm:$0xff]  }
  0xe2   :  { %v5574_v50 = vsub.s32 0, %v5571_v49  ;;  %v240_v51 = vld [vmem:[%s6253_s3] sm:$0xf]  ;;  %v5580_v52 = vsub.s32 1, %v5571_v49  ;;  %v5585_v4 = vsub.s32 2, %v5571_v49  ;;  %v5588_v5 = vsub.s32 3, %v5571_v49 }
  0xe3   :  { %4074 = vmatpush3.bf16.msra.mxu0 %v4471_v40  ;;  %v4479_v19 = vld [vmem:[%s6256_s6] ss:$16 sps:$4 sm:$0xff]   ;;  %v4481_v20 = vld [vmem:[%s6256_s6 + $0x4] ss:$16 sps:$4 sm:$0xff]   ;;  %v4486_v39 = vld [vmem:[%s6256_s6 + $0xc] ss:$16 sps:$4 sm:$0xff]  }
  0xe4   :  { %1865 = vmatpush1.bf16.msra.mxu1 %v4472_v41  ;;  %4075 = vmatprep.subr.bf16.mxu0 %v4473_v42  ;;  %v245_v53 = vrot.slane %v240_v51, %v5574_v50  ;;  %v249_v54 = vrot.slane %v240_v51, %v5580_v52  ;;  %v253_v6 = vrot.slane %v240_v51, %v5585_v4  ;;  %v3835_v25 = vld [vmem:[%s6255_s5] ss:$0 sm:$0xff]  ;;  %v4507_v48 = vld [vmem:[%s6258_s8 + $0xa8] ss:$28 sps:$4 sm:$0xff]  }
  0xe5   :  { %1866 = vmatprep.subr.bf16.mxu1 %v4804_v2  ;;  %v257_v7 = vrot.slane %v240_v51, %v5588_v5  ;;  %v4489_v41 = vld [vmem:[%s6258_s8] ss:$28 sps:$4 sm:$0xff]  }
  0xe6   :  { %v4491_v42 = vld [vmem:[%s6258_s8 + $0x4] ss:$28 sps:$4 sm:$0xff]  }
  0xe7   :  { %4076 = vmatpush3.bf16.msra.mxu0 %v4474_v43  ;;  %v4497_v43 = vld [vmem:[%s6258_s8 + $0x3c] ss:$28 sps:$4 sm:$0xff]   ;;  %v4515_v51 = vld [vmem:[%s6258_s8 + $0xe4] ss:$28 sps:$4 sm:$0xff]  }
  0xe8   :  { %1867 = vmatpush1.bf16.msra.mxu1 %v4475_v44  ;;  %3214 = vmatprep.subr.bf16.mxu0 %v4491_v42  ;;  %v4495_v44 = vld [vmem:[%s6258_s8 + $0x38] ss:$28 sps:$4 sm:$0xff]  }
  0xe9   :  { %1868 = vmatprep.subr.bf16.mxu1 %v4804_v2  ;;  %v4552_v42 = vld [vmem:[%s6258_s8 + $0x238] ss:$28 sps:$4 sm:$0xff]  }
  0xec   :  { %1869 = vmatpush1.bf16.msra.mxu1 %v4476_v45  ;;  %v4503_v45 = vld [vmem:[%s6258_s8 + $0x74] ss:$28 sps:$4 sm:$0xff]  }
  0xed   :  { %1870 = vmatprep.subr.bf16.mxu1 %v4804_v2 }
  0xf0   :  { %1871 = vmatpush1.bf16.msra.mxu1 %v4477_v46  ;;  %v4501_v46 = vld [vmem:[%s6258_s8 + $0x70] ss:$28 sps:$4 sm:$0xff]  }
  0xf1   :  { %1872 = vmatprep.subr.bf16.mxu1 %v4804_v2 }
  0xf4   :  { %1873 = vmatpush1.bf16.msra.mxu1 %v4478_v47  ;;  %v4509_v47 = vld [vmem:[%s6258_s8 + $0xac] ss:$28 sps:$4 sm:$0xff]  }
  0xf5   :  { %1984 = vmatprep.subr.bf16.mxu1 %v4481_v20 }
 0x195   :  { %v1386_v55 = vpop.f32.mrb[0].mxu0 }
 0x196   :  { %v4105_v56 = vadd.f32 %v1386_v55, %v245_v53  ;;  %v1388_v57 = vpop.f32.mrb[1].mxu0  ;;  %v4513_v53 = vld [vmem:[%s6258_s8 + $0xe0] ss:$28 sps:$4 sm:$0xff]   ;;  %v4519_v55 = vld [vmem:[%s6258_s8 + $0x118] ss:$28 sps:$4 sm:$0xff]  }
 0x197   :  { %v4107_v58 = vadd.f32 %v1388_v57, %v249_v54  ;;  %v1390_v59 = vpop.f32.mrb[2].mxu0  ;;  %v4521_v54 = vld [vmem:[%s6258_s8 + $0x11c] ss:$28 sps:$4 sm:$0xff]   ;;  %v4525_v57 = vld [vmem:[%s6258_s8 + $0x150] ss:$28 sps:$4 sm:$0xff]  }
 0x198   :  { %v4106_v60 = vadd.f32 %v4105_v56, %v1427_v33  ;;  %v1391_v61 = vpop.f32.mrb[3].mxu0  ;;  %v4527_v56 = vld [vmem:[%s6258_s8 + $0x154] ss:$28 sps:$4 sm:$0xff]   ;;  %v4531_v59 = vld [vmem:[%s6258_s8 + $0x188] ss:$28 sps:$4 sm:$0xff]  }
 0x199   :  { %v4108_v62 = vadd.f32 %v4107_v58, %v1429_v34  ;;  %v1913_v34 = vld [vmem:[%s6256_s6 + $0x20] sm:$0x33]  ;;  %v4533_v58 = vld [vmem:[%s6258_s8 + $0x18c] ss:$28 sps:$4 sm:$0xff]  }
 0x19a   :  { %v1598_v63 = vmax.f32 %v4106_v60, 0.0  ;;  %v3867_v36 = vcombine.high %v1913_v34, %v1913_v34  ;;  %v3866_v37 = vcombine.low %v1913_v34, %v1913_v34  ;;  %v4539_v60 = vld [vmem:[%s6258_s8 + $0x1c4] ss:$28 sps:$4 sm:$0xff]   ;;  %v4528_v34 = vld [vmem:[%s6258_s8 + $0x158] ss:$28 sps:$4 sm:$0xff]  }
 0x19b   :  { %v1599_v0 = vmax.f32 %v4108_v62, 0.0  ;;  %v4537_v61 = vld [vmem:[%s6258_s8 + $0x1c0] ss:$28 sps:$4 sm:$0xff]  }
 0x19c   :  { %v1602_v3 = vpack.c.bf16 %v1598_v63, %v1598_v63  ;;  %v1973_v38 = vsel %vm1971_vm1, %v3866_v37, 0  ;;  %v4545_v62 = vld [vmem:[%s6258_s8 + $0x1fc] ss:$28 sps:$4 sm:$0xff]   ;;  %v4542_v37 = vld [vmem:[%s6258_s8 + $0x1cc] ss:$28 sps:$4 sm:$0xff]  }
 0x19d   :  { %v1603_v1 = vpack.c.bf16 %v1599_v0, %v1599_v0  ;;  %v4543_v63 = vld [vmem:[%s6258_s8 + $0x1f8] ss:$28 sps:$4 sm:$0xff]  }
 0x19e   :  { %v4551_v0 = vld [vmem:[%s6258_s8 + $0x234] ss:$28 sps:$4 sm:$0xff]  }
 0x19f   :  { %1848 = vmatprep.mubr.bf16.mxu0 %v1603_v1  ;;  %v4549_v1 = vld [vmem:[%s6258_s8 + $0x230] ss:$28 sps:$4 sm:$0xff]  }
 0x1a0   :  { %1849 = vmatmul.mubr.bf16.vlgmr.msra.gmra.mrb[4].mxu0 %v1602_v3  ;;  %v4557_v3 = vld [vmem:[%s6258_s8 + $0x26c] ss:$28 sps:$4 sm:$0xff]  }
 0x1a1   :  { %3215 = vmatpush1.bf16.msra.mxu0 %v4489_v41  ;;  %v4554_v41 = vld [vmem:[%s6258_s8 + $0x23c] ss:$28 sps:$4 sm:$0xff]  }
 0x1a2   :  { %3216 = vmatprep.subr.bf16.mxu0 %v4497_v43  ;;  %v4560_v43 = vld [vmem:[%s6258_s8 + $0x274] ss:$28 sps:$4 sm:$0xff]  }
 0x1a5   :  { %3217 = vmatpush1.bf16.msra.mxu0 %v4495_v44  ;;  %v4558_v44 = vld [vmem:[%s6258_s8 + $0x270] ss:$28 sps:$4 sm:$0xff]  }
 0x1a6   :  { %v1591_v8 = vpop.f32.mrb[4].mxu1  ;;  %3218 = vmatprep.subr.bf16.mxu0 %v4503_v45  ;;  %v4566_v45 = vld [vmem:[%s6258_s8 + $0x2ac] ss:$28 sps:$4 sm:$0xff]  }
 0x1a7   :  { %v4109_v9 = vadd.f32 %v1591_v8, %v253_v6  ;;  %v1593_v10 = vpop.f32.mrb[5].mxu1  ;;  %v4555_v6 = vld [vmem:[%s6258_s8 + $0x268] ss:$28 sps:$4 sm:$0xff]   ;;  %v4561_v8 = vld [vmem:[%s6258_s8 + $0x2a0] ss:$28 sps:$4 sm:$0xff]  }
 0x1a8   :  { %v4110_v11 = vadd.f32 %v1593_v10, %v257_v7  ;;  %v1595_v12 = vpop.f32.mrb[6].mxu1  ;;  %v4563_v7 = vld [vmem:[%s6258_s8 + $0x2a4] ss:$28 sps:$4 sm:$0xff]   ;;  %v4567_v10 = vld [vmem:[%s6258_s8 + $0x2d8] ss:$28 sps:$4 sm:$0xff]  }
 0x1a9   :  { %v1600_v13 = vmax.f32 %v4109_v9, 0.0  ;;  %v1596_v14 = vpop.f32.mrb[7].mxu1  ;;  %3219 = vmatpush1.bf16.msra.mxu0 %v4501_v46  ;;  %v4569_v9 = vld [vmem:[%s6258_s8 + $0x2dc] ss:$28 sps:$4 sm:$0xff]   ;;  %v4564_v46 = vld [vmem:[%s6258_s8 + $0x2a8] ss:$28 sps:$4 sm:$0xff]  }
 0x1aa   :  { %v1601_v15 = vmax.f32 %v4110_v11, 0.0  ;;  %3220 = vmatprep.subr.bf16.mxu0 %v4509_v47  ;;  %v1901_v11 = vld [vmem:[%s6251_s1] sm:$0xff]  ;;  %v1914_v14 = vld [vmem:[%s6256_s6 + $0x28] sm:$0x33] }
 0x1ab   :  { %v1604_v18 = vpack.c.bf16 %v1600_v13, %v1600_v13  ;;  %v3868_v20 = vcombine.low %v1914_v14, %v1914_v14  ;;  %v4572_v47 = vld [vmem:[%s6258_s8 + $0x2e4] ss:$28 sps:$4 sm:$0xff]  }
 0x1ac   :  { %v1605_v17 = vpack.c.bf16 %v1601_v15, %v1601_v15 }
 0x1ad   :  { %3221 = vmatpush1.bf16.msra.mxu0 %v4507_v48  ;;  %v4570_v48 = vld [vmem:[%s6258_s8 + $0x2e0] ss:$28 sps:$4 sm:$0xff]  }
 0x1ae   :  { %3861 = vmatprep.mubr.msk.bf16.mxu1 %vm1266_vm0, %v1605_v17  ;;  %3222 = vmatprep.subr.bf16.mxu0 %v4515_v51  ;;  %v4484_v17 = vld [vmem:[%s6256_s6 + $0x8] ss:$16 sps:$4 sm:$0xff]   ;;  %v4575_v51 = vld [vmem:[%s6258_s8 + $0x314] ss:$28 sps:$4 sm:$0xff]   ;;  %s3618_s6 = sshll.u32 %s4806_s30, 4  ;;  %s3619_s6 = int_to_ptr.vmem [resolvable:$true] %s3618_s6 }
 0x1af   :  { %1889 = vmatmul.mubr.bf16.vlgmr.msra.gmra.mrb[8].mxu1 %v1604_v18  ;;  %p4761_p1 = scmp.lt.s32.totalorder %s3619_s6, %s3619_s6 }
 0x1b0   :  { %2016 = vmatprep.mubr.bf16.mxu1 %v4804_v2  ;;  %1985 = vmatpush1.bf16.msra.mxu1 %v4479_v19  ;;  %v3869_v19 = vcombine.high %v1914_v14, %v1914_v14  ;;  %v4588_v14 = vld [vmem:[%s6258_s8 + $0x388] ss:$28 sps:$4 sm:$0xff]  }
 0x1b1   :  { %3870 = vmatprep.subr.msk.bf16.mxu1 %vm1971_vm1, %v3867_v36  ;;  %3223 = vmatpush1.bf16.msra.mxu0 %v4513_v53  ;;  %v4534_v36 = vld [vmem:[%s6258_s8 + $0x190] ss:$28 sps:$4 sm:$0xff]   ;;  %v4578_v53 = vld [vmem:[%s6258_s8 + $0x31c] ss:$28 sps:$4 sm:$0xff]  }
 0x1b2   :  { %3224 = vmatprep.subr.bf16.mxu0 %v4521_v54  ;;  %v4573_v54 = vld [vmem:[%s6258_s8 + $0x310] ss:$28 sps:$4 sm:$0xff]  }
 0x1b4   :  { %1987 = vmatpush1.bf16.msra.mxu1 %v1973_v38  ;;  %v4540_v38 = vld [vmem:[%s6258_s8 + $0x1c8] ss:$28 sps:$4 sm:$0xff]  }
 0x1b5   :  { %2025 = vmatprep.subr.bf16.mxu1 %v4486_v39  ;;  %3225 = vmatpush1.bf16.msra.mxu0 %v4519_v55  ;;  %v4548_v39 = vld [vmem:[%s6258_s8 + $0x204] ss:$28 sps:$4 sm:$0xff]   ;;  %v4576_v55 = vld [vmem:[%s6258_s8 + $0x318] ss:$28 sps:$4 sm:$0xff]  }
 0x1b6   :  { %3226 = vmatprep.subr.bf16.mxu0 %v4527_v56  ;;  %v4581_v56 = vld [vmem:[%s6258_s8 + $0x34c] ss:$28 sps:$4 sm:$0xff]  }
 0x1b9   :  { %3227 = vmatpush1.bf16.msra.mxu0 %v4525_v57  ;;  %v4584_v57 = vld [vmem:[%s6258_s8 + $0x354] ss:$28 sps:$4 sm:$0xff]  }
 0x1ba   :  { %3228 = vmatprep.subr.bf16.mxu0 %v4533_v58  ;;  %v4579_v58 = vld [vmem:[%s6258_s8 + $0x348] ss:$28 sps:$4 sm:$0xff]  }
 0x1bd   :  { %3229 = vmatpush1.bf16.msra.mxu0 %v4531_v59  ;;  %v4582_v59 = vld [vmem:[%s6258_s8 + $0x350] ss:$28 sps:$4 sm:$0xff]  }
 0x1be   :  { %3230 = vmatprep.subr.bf16.mxu0 %v4539_v60  ;;  %v4587_v60 = vld [vmem:[%s6258_s8 + $0x384] ss:$28 sps:$4 sm:$0xff]  }
 0x1c1   :  { %3231 = vmatpush1.bf16.msra.mxu0 %v4537_v61  ;;  %v4590_v61 = vld [vmem:[%s6258_s8 + $0x38c] ss:$28 sps:$4 sm:$0xff]  }
 0x1c2   :  { %3232 = vmatprep.subr.bf16.mxu0 %v4545_v62  ;;  %v5830_v62 = vld [vmem:[%s6257_s7] sm:$0xf] }
 0x1c5   :  { %3233 = vmatpush1.bf16.msra.mxu0 %v4543_v63  ;;  %v1920_v63 = vrot.slane %v5830_v62, %v5574_v50 }
 0x1c6   :  { %3234 = vmatprep.subr.bf16.mxu0 %v4551_v0  ;;  %v1924_v0 = vrot.slane %v5830_v62, %v5580_v52 }
 0x1c9   :  { %3235 = vmatpush1.bf16.msra.mxu0 %v4549_v1 }
 0x1ca   :  { %3236 = vmatprep.subr.bf16.mxu0 %v4557_v3 }
 0x1cd   :  { %3237 = vmatpush1.bf16.msra.mxu0 %v4555_v6 }
 0x1ce   :  { %3238 = vmatprep.subr.bf16.mxu0 %v4563_v7 }
 0x1d1   :  { %3239 = vmatpush1.bf16.msra.mxu0 %v4561_v8 }
 0x1d2   :  { %3240 = vmatprep.subr.bf16.mxu0 %v4569_v9 }
 0x1d5   :  { %3241 = vmatpush1.bf16.msra.mxu0 %v4567_v10 }
 0x1d6   :  { %3242 = vmatprep.subr.bf16.mxu0 %v4575_v51  ;;  %v4629_v51 = vld [vmem:[%s6258_s8 + $0x50c] ss:$28 sps:$4 sm:$0xff]  }
 0x1d9   :  { %3243 = vmatpush1.bf16.msra.mxu0 %v4573_v54  ;;  %v4627_v54 = vld [vmem:[%s6258_s8 + $0x508] ss:$28 sps:$4 sm:$0xff]  }
 0x1da   :  { %3244 = vmatprep.subr.bf16.mxu0 %v4581_v56 }
 0x1dd   :  { %3245 = vmatpush1.bf16.msra.mxu0 %v4579_v58  ;;  %v4638_v58 = vld [vmem:[%s6258_s8 + $0x54c] ss:$28 sps:$4 sm:$0xff]  }
 0x1de   :  { %3255 = vmatprep.subr.bf16.mxu0 %v4587_v60  ;;  %v4636_v60 = vld [vmem:[%s6258_s8 + $0x548] ss:$28 sps:$4 sm:$0xff]  }
 0x273   :  { %v4077_v21 = vpop.f32.mrb[4].mxu0 }
 0x274   :  { %v4078_v16 = vpop.f32.mrb[5].mxu0 }
 0x275   :  { %v4079_v22 = vadd.f32 %v4078_v16, %v4077_v21  ;;  %v4080_v23 = vpop.f32.mrb[6].mxu0  ;;  %v1979_v21 = vsel %vm1971_vm1, %v3868_v20, 0  ;;  %v4494_v16 = vld [vmem:[%s6258_s8 + $0xc] ss:$28 sps:$4 sm:$0xff]  }
 0x276   :  { %v4081_v24 = vpop.f32.mrb[7].mxu0  ;;  %v4500_v23 = vld [vmem:[%s6258_s8 + $0x44] ss:$28 sps:$4 sm:$0xff]  }
 0x277   :  { %v1851_v26 = vadd.f32 %v4079_v22, %v3835_v25  ;;  %v4492_v22 = vld [vmem:[%s6258_s8 + $0x8] ss:$28 sps:$4 sm:$0xff]   ;;  %v4498_v24 = vld [vmem:[%s6258_s8 + $0x40] ss:$28 sps:$4 sm:$0xff]  }
 0x278   :  { %v4506_v25 = vld [vmem:[%s6258_s8 + $0x7c] ss:$28 sps:$4 sm:$0xff]  }
 0x282   :  { %v1890_v27 = vpop.f32.mrb[8].mxu1 }
 0x283   :  { %v5603_v28 = vadd.f32 %v1890_v27, %v1851_v26  ;;  %v1892_v29 = vpop.f32.mrb[9].mxu1  ;;  %v4504_v26 = vld [vmem:[%s6258_s8 + $0x78] ss:$28 sps:$4 sm:$0xff]  }
 0x284   :  { %v1893_v30 = vpop.f32.mrb[10].mxu1  ;;  %v4512_v27 = vld [vmem:[%s6258_s8 + $0xb4] ss:$28 sps:$4 sm:$0xff]   ;;  %v4518_v29 = vld [vmem:[%s6258_s8 + $0xec] ss:$28 sps:$4 sm:$0xff]  }
 0x285   :  { %v1898_v31 = vmul.f32 0.5, %v5603_v28  ;;  %v1894_v32 = vpop.f32.mrb[11].mxu1  ;;  %v1896_v33 = vpack.c.bf16 %v5603_v28, %v5603_v28  ;;  %v4516_v30 = vld [vmem:[%s6258_s8 + $0xe8] ss:$28 sps:$4 sm:$0xff]  }
 0x286   :  { %v4522_v32 = vld [vmem:[%s6258_s8 + $0x120] ss:$28 sps:$4 sm:$0xff]  }
 0x287   :  { %v1899_v35 = vmul.f32 1.442695, %v1898_v31  ;;  %1897 = vst [vmem:[#allocation4] sm:$0xf] %v1896_v33  ;;  %v4524_v31 = vld [vmem:[%s6258_s8 + $0x124] ss:$28 sps:$4 sm:$0xff]  }
 0x288   :  { %v4530_v33 = vld [vmem:[%s6258_s8 + $0x15c] ss:$28 sps:$4 sm:$0xff]  }
 0x289   :  { %4739 = vpow2.f32 %v1899_v35  ;;  %v4536_v35 = vld [vmem:[%s6258_s8 + $0x194] ss:$28 sps:$4 sm:$0xff]  }
 0x293   :  { %v4740_v40 = vpop.eup %4739 }
 0x294   :  { %1903 = vrot.lane.b32.xlu0 %v4740_v40, %s4805_s17  ;;  %v4546_v40 = vld [vmem:[%s6258_s8 + $0x200] ss:$28 sps:$4 sm:$0xff]  }
 0x306   :  { %v1904_v12 = vpop.permute.xlu0 %1903 }
 0x307   :  { %v1906_v13 = vmul.f32 %v1904_v12, %v1901_v11 }
 0x309   :  { %v1907_v15 = vadd.f32 %v1906_v13, %v5603_v28  ;;  %v4510_v28 = vld [vmem:[%s6258_s8 + $0xb0] ss:$28 sps:$4 sm:$0xff]   ;;  %v4585_v13 = vld [vmem:[%s6258_s8 + $0x380] ss:$28 sps:$4 sm:$0xff]  }
 0x30b   :  { %v1908_v18 = vpack.c.bf16 %v1907_v15, %v1907_v15  ;;  %v1932_v15 = vrot.slane %v5830_v62, %v5588_v5 }
 0x30d   :  { %3871 = vmatmul.mubr.msk.bf16.vlgmr.msra.gmra.mrb[12].mxu1 %vm1967_vm2, %v1908_v18 }
 0x30e   :  { %2026 = vmatpush1.bf16.msra.mxu1 %v4484_v17  ;;  %2057 = vmatprep.mubr.bf16.mxu1 %v4804_v2 }
 0x30f   :  { %3872 = vmatprep.subr.msk.bf16.mxu1 %vm1971_vm1, %v3869_v19  ;;  %v4596_v19 = vld [vmem:[%s6258_s8 + $0x3c4] ss:$28 sps:$4 sm:$0xff]  }
 0x312   :  { %2028 = vmatpush1.bf16.msra.mxu1 %v1979_v21 }
 0x313   :  { %3296 = vmatprep.subr.bf16.mxu1 %v4494_v16 }
 0x315   :  { %3873 = vmatmul.mubr.msk.bf16.vlgmr.msra.gmra.mrb[16].mxu1 %vm1967_vm2, %v1908_v18  ;;  %v4593_v18 = vld [vmem:[%s6258_s8 + $0x3bc] ss:$28 sps:$4 sm:$0xff]  }
 0x316   :  { %3297 = vmatpush1.bf16.msra.mxu1 %v4492_v22 }
 0x317   :  { %3298 = vmatprep.subr.bf16.mxu1 %v4500_v23  ;;  %v4591_v23 = vld [vmem:[%s6258_s8 + $0x3b8] ss:$28 sps:$4 sm:$0xff]  }
 0x31a   :  { %3299 = vmatpush1.bf16.msra.mxu1 %v4498_v24  ;;  %v4594_v24 = vld [vmem:[%s6258_s8 + $0x3c0] ss:$28 sps:$4 sm:$0xff]  }
 0x31b   :  { %3300 = vmatprep.subr.bf16.mxu1 %v4506_v25 }
 0x31e   :  { %3301 = vmatpush1.bf16.msra.mxu1 %v4504_v26  ;;  %v4599_v26 = vld [vmem:[%s6258_s8 + $0x3f4] ss:$28 sps:$4 sm:$0xff]  }
 0x31f   :  { %3302 = vmatprep.subr.bf16.mxu1 %v4512_v27  ;;  %v4602_v27 = vld [vmem:[%s6258_s8 + $0x3fc] ss:$28 sps:$4 sm:$0xff]  }
 0x322   :  { %3303 = vmatpush1.bf16.msra.mxu1 %v4510_v28 }
 0x323   :  { %3304 = vmatprep.subr.bf16.mxu1 %v4518_v29 }
 0x326   :  { %3305 = vmatpush1.bf16.msra.mxu1 %v4516_v30  ;;  %v4597_v30 = vld [vmem:[%s6258_s8 + $0x3f0] ss:$28 sps:$4 sm:$0xff]  }
 0x327   :  { %3306 = vmatprep.subr.bf16.mxu1 %v4524_v31  ;;  %v4600_v31 = vld [vmem:[%s6258_s8 + $0x3f8] ss:$28 sps:$4 sm:$0xff]  }
 0x32a   :  { %3307 = vmatpush1.bf16.msra.mxu1 %v4522_v32  ;;  %v4605_v32 = vld [vmem:[%s6258_s8 + $0x42c] ss:$28 sps:$4 sm:$0xff]  }
 0x32b   :  { %3308 = vmatprep.subr.bf16.mxu1 %v4530_v33  ;;  %v4608_v33 = vld [vmem:[%s6258_s8 + $0x434] ss:$28 sps:$4 sm:$0xff]  }
 0x32e   :  { %3309 = vmatpush1.bf16.msra.mxu1 %v4528_v34  ;;  %v4603_v34 = vld [vmem:[%s6258_s8 + $0x428] ss:$28 sps:$4 sm:$0xff]  }
 0x32f   :  { %3310 = vmatprep.subr.bf16.mxu1 %v4536_v35  ;;  %v4606_v35 = vld [vmem:[%s6258_s8 + $0x430] ss:$28 sps:$4 sm:$0xff]  }
 0x332   :  { %3311 = vmatpush1.bf16.msra.mxu1 %v4534_v36  ;;  %v4611_v36 = vld [vmem:[%s6258_s8 + $0x464] ss:$28 sps:$4 sm:$0xff]  }
 0x333   :  { %3312 = vmatprep.subr.bf16.mxu1 %v4542_v37  ;;  %v4614_v37 = vld [vmem:[%s6258_s8 + $0x46c] ss:$28 sps:$4 sm:$0xff]  }
 0x336   :  { %3313 = vmatpush1.bf16.msra.mxu1 %v4540_v38  ;;  %v4609_v38 = vld [vmem:[%s6258_s8 + $0x460] ss:$28 sps:$4 sm:$0xff]  }
 0x337   :  { %3314 = vmatprep.subr.bf16.mxu1 %v4548_v39  ;;  %v4612_v39 = vld [vmem:[%s6258_s8 + $0x468] ss:$28 sps:$4 sm:$0xff]  }
 0x33a   :  { %3315 = vmatpush1.bf16.msra.mxu1 %v4546_v40  ;;  %v4617_v40 = vld [vmem:[%s6258_s8 + $0x49c] ss:$28 sps:$4 sm:$0xff]  }
 0x33b   :  { %3316 = vmatprep.subr.bf16.mxu1 %v4554_v41  ;;  %v4620_v41 = vld [vmem:[%s6258_s8 + $0x4a4] ss:$28 sps:$4 sm:$0xff]  }
 0x33e   :  { %3317 = vmatpush1.bf16.msra.mxu1 %v4552_v42  ;;  %v4615_v42 = vld [vmem:[%s6258_s8 + $0x498] ss:$28 sps:$4 sm:$0xff]  }
 0x33f   :  { %3318 = vmatprep.subr.bf16.mxu1 %v4560_v43  ;;  %v4618_v43 = vld [vmem:[%s6258_s8 + $0x4a0] ss:$28 sps:$4 sm:$0xff]  }
 0x342   :  { %3319 = vmatpush1.bf16.msra.mxu1 %v4558_v44  ;;  %v4623_v44 = vld [vmem:[%s6258_s8 + $0x4d4] ss:$28 sps:$4 sm:$0xff]  }
 0x343   :  { %3320 = vmatprep.subr.bf16.mxu1 %v4566_v45  ;;  %v4626_v45 = vld [vmem:[%s6258_s8 + $0x4dc] ss:$28 sps:$4 sm:$0xff]  }
 0x346   :  { %3321 = vmatpush1.bf16.msra.mxu1 %v4564_v46  ;;  %v4621_v46 = vld [vmem:[%s6258_s8 + $0x4d0] ss:$28 sps:$4 sm:$0xff]  }
 0x347   :  { %3322 = vmatprep.subr.bf16.mxu1 %v4572_v47  ;;  %v4624_v47 = vld [vmem:[%s6258_s8 + $0x4d8] ss:$28 sps:$4 sm:$0xff]  }
 0x34a   :  { %3323 = vmatpush1.bf16.msra.mxu1 %v4570_v48  ;;  %v1928_v48 = vrot.slane %v5830_v62, %v5585_v4  ;;  %v4641_v62 = vld [vmem:[%s6258_s8 + $0x14] ss:$28 sps:$4 sm:$0xff]  }
 0x34b   :  { %3324 = vmatprep.subr.bf16.mxu1 %v4578_v53  ;;  %v4632_v53 = vld [vmem:[%s6258_s8 + $0x514] ss:$28 sps:$4 sm:$0xff]  }
 0x34e   :  { %3325 = vmatpush1.bf16.msra.mxu1 %v4576_v55  ;;  %v4630_v55 = vld [vmem:[%s6258_s8 + $0x510] ss:$28 sps:$4 sm:$0xff]  }
 0x34f   :  { %3326 = vmatprep.subr.bf16.mxu1 %v4584_v57  ;;  %v4635_v57 = vld [vmem:[%s6258_s8 + $0x544] ss:$28 sps:$4 sm:$0xff]  }
 0x352   :  { %3327 = vmatpush1.bf16.msra.mxu1 %v4582_v59  ;;  %v4633_v59 = vld [vmem:[%s6258_s8 + $0x540] ss:$28 sps:$4 sm:$0xff]  }
 0x353   :  { %3337 = vmatprep.subr.bf16.mxu1 %v4590_v61 }
 0x3e0   :  { %v2018_v1 = vpop.f32.mrb[12].mxu1 }
 0x3e1   :  { %v2019_v3 = vadd.f32 %v2018_v1, %v1920_v63  ;;  %v2020_v6 = vpop.f32.mrb[13].mxu1  ;;  %v4642_v63 = vld [vmem:[%s6258_s8 + $0x1d8] ss:$28 sps:$4 sm:$0xff]  }
 0x3e2   :  { %v2021_v7 = vadd.f32 %v2020_v6, %v1924_v0  ;;  %v2022_v8 = vpop.f32.mrb[14].mxu1  ;;  %v4639_v0 = vld [vmem:[%s6258_s8 + $0x10] ss:$28 sps:$4 sm:$0xff]  }
 0x3e3   :  { %v2066_v9 = vmax.f32 %v2019_v3, 0.0  ;;  %v2023_v10 = vpop.f32.mrb[15].mxu1  ;;  %v4643_v3 = vld [vmem:[%s6258_s8 + $0x18] ss:$28 sps:$4 sm:$0xff]   ;;  %v4646_v6 = vld [vmem:[%s6258_s8 + $0x4c] ss:$28 sps:$4 sm:$0xff]  }
 0x3e4   :  { %v2067_v11 = vmax.f32 %v2021_v7, 0.0  ;;  %v4647_v7 = vld [vmem:[%s6258_s8 + $0x210] ss:$28 sps:$4 sm:$0xff]   ;;  %v4644_v8 = vld [vmem:[%s6258_s8 + $0x48] ss:$28 sps:$4 sm:$0xff]  }
 0x3e5   :  { %v5846_v17 = vpack.c.bf16 %v2066_v9, %v2066_v9  ;;  %v4648_v9 = vld [vmem:[%s6258_s8 + $0x50] ss:$28 sps:$4 sm:$0xff]   ;;  %v4651_v10 = vld [vmem:[%s6258_s8 + $0x84] ss:$28 sps:$4 sm:$0xff]  }
 0x3e6   :  { %v5836_v12 = vpack.c.bf16 %v2067_v11, %v2067_v11  ;;  %v4652_v11 = vld [vmem:[%s6258_s8 + $0x248] ss:$28 sps:$4 sm:$0xff]  }
 0x3e8   :  { %v5854_v20 = vpop.f32.mrb[16].mxu1  ;;  %3246 = vmatprep.mubr.bf16.mxu0 %v5836_v12  ;;  %3328 = vmatprep.mubr.bf16.mxu1 %v5836_v12 }
 0x3e9   :  { %v2061_v21 = vpop.f32.mrb[17].mxu1  ;;  %3247 = vmatmul.mubr.bf16.vlgmr.msra.gmra.mrb[8].mxu0 %v5846_v17  ;;  %3329 = vmatmul.mubr.bf16.vlgmr.msra.gmra.mrb[20].mxu1 %v5846_v17  ;;  %v2060_v56 = vadd.f32 %v5854_v20, %v1928_v48  ;;  %v4661_v20 = vld [vmem:[%s6258_s8 + $0xf4] ss:$28 sps:$4 sm:$0xff]  }
 0x3ea   :  { %v2062_v16 = vadd.f32 %v2061_v21, %v1932_v15  ;;  %3256 = vmatpush1.bf16.msra.mxu0 %v4585_v13  ;;  %3338 = vmatpush1.bf16.msra.mxu1 %v4588_v14  ;;  %v2063_v22 = vpop.f32.mrb[18].mxu1  ;;  %v4649_v13 = vld [vmem:[%s6258_s8 + $0x80] ss:$28 sps:$4 sm:$0xff]   ;;  %v4662_v21 = vld [vmem:[%s6258_s8 + $0x2b8] ss:$28 sps:$4 sm:$0xff]  }
 0x3eb   :  { %v2064_v25 = vpop.f32.mrb[19].mxu1  ;;  %3257 = vmatprep.subr.bf16.mxu0 %v4593_v18  ;;  %3339 = vmatprep.subr.bf16.mxu1 %v4596_v19  ;;  %v2068_v61 = vmax.f32 %v2060_v56, 0.0  ;;  %v4656_v14 = vld [vmem:[%s6258_s8 + $0xbc] ss:$28 sps:$4 sm:$0xff]   ;;  %v4697_v48 = vld [vmem:[%s6258_s8 + $0x2b4] ss:$28 sps:$4 sm:$0xff]  }
 0x3ec   :  { %v2069_v28 = vmax.f32 %v2062_v16, 0.0  ;;  %v4657_v15 = vld [vmem:[%s6258_s8 + $0x280] ss:$28 sps:$4 sm:$0xff]   ;;  %v4654_v18 = vld [vmem:[%s6258_s8 + $0xb8] ss:$28 sps:$4 sm:$0xff]  }
 0x3ed   :  { %v5968_v1 = vpack.c.bf16 %v2068_v61, %v2068_v61  ;;  %v4658_v19 = vld [vmem:[%s6258_s8 + $0xc0] ss:$28 sps:$4 sm:$0xff]   ;;  %v4659_v16 = vld [vmem:[%s6258_s8 + $0xf0] ss:$28 sps:$4 sm:$0xff]   ;;  %v4663_v22 = vld [vmem:[%s6258_s8 + $0xf8] ss:$28 sps:$4 sm:$0xff]  }
 0x3ee   :  { %v5872_v29 = vpack.c.bf16 %v2069_v28, %v2069_v28  ;;  %3258 = vmatpush1.bf16.msra.mxu0 %v4591_v23  ;;  %3340 = vmatpush1.bf16.msra.mxu1 %v4594_v24  ;;  %v4666_v23 = vld [vmem:[%s6258_s8 + $0x12c] ss:$28 sps:$4 sm:$0xff]   ;;  %v4707_v61 = vld [vmem:[%s6258_s8 + $0x358] ss:$28 sps:$4 sm:$0xff]  }
 0x3ef   :  { %3259 = vmatprep.subr.bf16.mxu0 %v4599_v26  ;;  %3341 = vmatprep.subr.bf16.mxu1 %v4602_v27  ;;  %v4667_v24 = vld [vmem:[%s6258_s8 + $0x2f0] ss:$28 sps:$4 sm:$0xff]   ;;  %v4664_v25 = vld [vmem:[%s6258_s8 + $0x128] ss:$28 sps:$4 sm:$0xff]  }
 0x3f0   :  { %4049 = vmatprep.mubr.msk.bf16.mxu0 %vm1266_vm0, %v5872_v29  ;;  %4050 = vmatprep.mubr.msk.bf16.mxu1 %vm1266_vm0, %v5872_v29  ;;  %v4668_v26 = vld [vmem:[%s6258_s8 + $0x130] ss:$28 sps:$4 sm:$0xff]   ;;  %v4671_v27 = vld [vmem:[%s6258_s8 + $0x164] ss:$28 sps:$4 sm:$0xff]  }
 0x3f1   :  { %v4672_v28 = vld [vmem:[%s6258_s8 + $0x328] ss:$28 sps:$4 sm:$0xff]   ;;  %v4702_v56 = vld [vmem:[%s6258_s8 + $0x4b0] ss:$28 sps:$4 sm:$0xff]  }
 0x3f2   :  { %3260 = vmatpush1.bf16.msra.mxu0 %v4597_v30  ;;  %3342 = vmatpush1.bf16.msra.mxu1 %v4600_v31  ;;  %v4669_v30 = vld [vmem:[%s6258_s8 + $0x160] ss:$28 sps:$4 sm:$0xff]   ;;  %v4673_v31 = vld [vmem:[%s6258_s8 + $0x168] ss:$28 sps:$4 sm:$0xff]  }
 0x3f3   :  { %3261 = vmatprep.subr.bf16.mxu0 %v4605_v32  ;;  %3343 = vmatprep.subr.bf16.mxu1 %v4608_v33  ;;  %v4676_v32 = vld [vmem:[%s6258_s8 + $0x19c] ss:$28 sps:$4 sm:$0xff]  }
 0x3f4   :  { %v4677_v33 = vld [vmem:[%s6258_s8 + $0x360] ss:$28 sps:$4 sm:$0xff]  }
 0x3f6   :  { %3262 = vmatpush1.bf16.msra.mxu0 %v4603_v34  ;;  %3344 = vmatpush1.bf16.msra.mxu1 %v4606_v35  ;;  %v4674_v34 = vld [vmem:[%s6258_s8 + $0x198] ss:$28 sps:$4 sm:$0xff]   ;;  %v4678_v35 = vld [vmem:[%s6258_s8 + $0x1a0] ss:$28 sps:$4 sm:$0xff]  }
 0x3f7   :  { %3263 = vmatprep.subr.bf16.mxu0 %v4611_v36  ;;  %3345 = vmatprep.subr.bf16.mxu1 %v4614_v37  ;;  %v4681_v36 = vld [vmem:[%s6258_s8 + $0x1d4] ss:$28 sps:$4 sm:$0xff]  }
 0x3f8   :  { %v4679_v37 = vld [vmem:[%s6258_s8 + $0x1d0] ss:$28 sps:$4 sm:$0xff]  }
 0x3fa   :  { %3264 = vmatpush1.bf16.msra.mxu0 %v4609_v38  ;;  %3346 = vmatpush1.bf16.msra.mxu1 %v4612_v39  ;;  %v4682_v38 = vld [vmem:[%s6258_s8 + $0x398] ss:$28 sps:$4 sm:$0xff]   ;;  %v4685_v39 = vld [vmem:[%s6258_s8 + $0x20c] ss:$28 sps:$4 sm:$0xff]  }
 0x3fb   :  { %3265 = vmatprep.subr.bf16.mxu0 %v4617_v40  ;;  %3347 = vmatprep.subr.bf16.mxu1 %v4620_v41  ;;  %v4683_v40 = vld [vmem:[%s6258_s8 + $0x208] ss:$28 sps:$4 sm:$0xff]   ;;  %v4686_v41 = vld [vmem:[%s6258_s8 + $0x3d0] ss:$28 sps:$4 sm:$0xff]  }
 0x3fe   :  { %3266 = vmatpush1.bf16.msra.mxu0 %v4615_v42  ;;  %3348 = vmatpush1.bf16.msra.mxu1 %v4618_v43  ;;  %v4689_v42 = vld [vmem:[%s6258_s8 + $0x244] ss:$28 sps:$4 sm:$0xff]  }
 0x3ff   :  { %3267 = vmatprep.subr.bf16.mxu0 %v4623_v44  ;;  %3349 = vmatprep.subr.bf16.mxu1 %v4626_v45  ;;  %v4687_v43 = vld [vmem:[%s6258_s8 + $0x240] ss:$28 sps:$4 sm:$0xff]   ;;  %v4690_v44 = vld [vmem:[%s6258_s8 + $0x408] ss:$28 sps:$4 sm:$0xff]  }
 0x400   :  { %v4693_v45 = vld [vmem:[%s6258_s8 + $0x27c] ss:$28 sps:$4 sm:$0xff]  }
 0x402   :  { %3268 = vmatpush1.bf16.msra.mxu0 %v4621_v46  ;;  %3350 = vmatpush1.bf16.msra.mxu1 %v4624_v47  ;;  %v4691_v46 = vld [vmem:[%s6258_s8 + $0x278] ss:$28 sps:$4 sm:$0xff]   ;;  %v4694_v47 = vld [vmem:[%s6258_s8 + $0x440] ss:$28 sps:$4 sm:$0xff]  }
 0x403   :  { %3269 = vmatprep.subr.bf16.mxu0 %v4629_v51  ;;  %3351 = vmatprep.subr.bf16.mxu1 %v4632_v53  ;;  %v4695_v51 = vld [vmem:[%s6258_s8 + $0x2b0] ss:$28 sps:$4 sm:$0xff]   ;;  %v4698_v53 = vld [vmem:[%s6258_s8 + $0x478] ss:$28 sps:$4 sm:$0xff]  }
 0x406   :  { %3270 = vmatpush1.bf16.msra.mxu0 %v4627_v54  ;;  %3352 = vmatpush1.bf16.msra.mxu1 %v4630_v55  ;;  %v4701_v54 = vld [vmem:[%s6258_s8 + $0x2ec] ss:$28 sps:$4 sm:$0xff]  }
 0x407   :  { %3271 = vmatprep.subr.bf16.mxu0 %v4635_v57  ;;  %3353 = vmatprep.subr.bf16.mxu1 %v4638_v58  ;;  %v4699_v55 = vld [vmem:[%s6258_s8 + $0x2e8] ss:$28 sps:$4 sm:$0xff]   ;;  %v4703_v58 = vld [vmem:[%s6258_s8 + $0x320] ss:$28 sps:$4 sm:$0xff]  }
 0x408   :  { %v4705_v57 = vld [vmem:[%s6258_s8 + $0x324] ss:$28 sps:$4 sm:$0xff]  }
 0x40a   :  { %3272 = vmatpush1.bf16.msra.mxu0 %v4633_v59  ;;  %3354 = vmatpush1.bf16.msra.mxu1 %v4636_v60  ;;  %v4706_v59 = vld [vmem:[%s6258_s8 + $0x4e8] ss:$28 sps:$4 sm:$0xff]   ;;  %v4709_v60 = vld [vmem:[%s6258_s8 + $0x35c] ss:$28 sps:$4 sm:$0xff]  }
 0x40b   :  { %3378 = vmatprep.subr.bf16.mxu0 %v4641_v62  ;;  %4083 = vmatprep.subr.bf16.mxu1 %v4642_v63  ;;  %v4710_v62 = vld [vmem:[%s6258_s8 + $0x520] ss:$28 sps:$4 sm:$0xff]   ;;  %v4713_v63 = vld [vmem:[%s6258_s8 + $0x394] ss:$28 sps:$4 sm:$0xff]  }
 0x40d   :  { %3288 = vmatmul.mubr.bf16.vlgmr.msra.gmra.mrb[8].mxu0 %v5968_v1  ;;  %3370 = vmatmul.mubr.bf16.vlgmr.msra.gmra.mrb[20].mxu1 %v5968_v1 }
 0x40e   :  { %3379 = vmatpush1.bf16.msra.mxu0 %v4639_v0  ;;  %3410 = vmatprep.mubr.bf16.mxu0 %v5836_v12  ;;  %v4711_v0 = vld [vmem:[%s6258_s8 + $0x390] ss:$28 sps:$4 sm:$0xff]  }
 0x40f   :  { %4084 = vmatpush3.bf16.msra.mxu1 %v4643_v3  ;;  %3492 = vmatprep.mubr.bf16.mxu1 %v5836_v12  ;;  %v4653_v12 = vld [vmem:[%s6258_s8 + $0x88] ss:$28 sps:$4 sm:$0xff]   ;;  %v4714_v3 = vld [vmem:[%s6258_s8 + $0x558] ss:$28 sps:$4 sm:$0xff]  }
 0x410   :  { %3380 = vmatprep.subr.bf16.mxu0 %v4646_v6  ;;  %4085 = vmatprep.subr.bf16.mxu1 %v4647_v7  ;;  %v4717_v6 = vld [vmem:[%s6258_s8 + $0x3cc] ss:$28 sps:$4 sm:$0xff]  }
 0x411   :  { %v4715_v7 = vld [vmem:[%s6258_s8 + $0x3c8] ss:$28 sps:$4 sm:$0xff]  }
 0x412   :  { %3381 = vmatpush1.bf16.msra.mxu0 %v4644_v8  ;;  %v4720_v8 = vld [vmem:[%s6258_s8 + $0x404] ss:$28 sps:$4 sm:$0xff]  }
 0x413   :  { %4086 = vmatpush3.bf16.msra.mxu1 %v4648_v9  ;;  %3382 = vmatprep.subr.bf16.mxu0 %v4651_v10  ;;  %v4726_v9 = vld [vmem:[%s6258_s8 + $0x474] ss:$28 sps:$4 sm:$0xff]  }
 0x414   :  { %4087 = vmatprep.subr.bf16.mxu1 %v4652_v11  ;;  %v4724_v10 = vld [vmem:[%s6258_s8 + $0x470] ss:$28 sps:$4 sm:$0xff]  }
 0x415   :  { %v4729_v11 = vld [vmem:[%s6258_s8 + $0x4ac] ss:$28 sps:$4 sm:$0xff]  }
 0x416   :  { %3383 = vmatpush1.bf16.msra.mxu0 %v4649_v13  ;;  %v4727_v13 = vld [vmem:[%s6258_s8 + $0x4a8] ss:$28 sps:$4 sm:$0xff]  }
 0x417   :  { %4088 = vmatpush3.bf16.msra.mxu1 %v4653_v12  ;;  %3384 = vmatprep.subr.bf16.mxu0 %v4656_v14  ;;  %v4732_v12 = vld [vmem:[%s6258_s8 + $0x4e4] ss:$28 sps:$4 sm:$0xff]  }
 0x418   :  { %4089 = vmatprep.subr.bf16.mxu1 %v4657_v15  ;;  %v4730_v14 = vld [vmem:[%s6258_s8 + $0x4e0] ss:$28 sps:$4 sm:$0xff]  }
 0x419   :  { %v4735_v15 = vld [vmem:[%s6258_s8 + $0x51c] ss:$28 sps:$4 sm:$0xff]  }
 0x41a   :  { %3385 = vmatpush1.bf16.msra.mxu0 %v4654_v18  ;;  %v4733_v18 = vld [vmem:[%s6258_s8 + $0x518] ss:$28 sps:$4 sm:$0xff]  }
 0x41b   :  { %4090 = vmatpush3.bf16.msra.mxu1 %v4658_v19  ;;  %3386 = vmatprep.subr.bf16.mxu0 %v4661_v20  ;;  %v4738_v19 = vld [vmem:[%s6258_s8 + $0x554] ss:$28 sps:$4 sm:$0xff]  }
 0x41c   :  { %4091 = vmatprep.subr.bf16.mxu1 %v4662_v21  ;;  %v4736_v20 = vld [vmem:[%s6258_s8 + $0x550] ss:$28 sps:$4 sm:$0xff]   ;;  %v6210_v21 = vld [vmem:[%s6259_s9] sm:$0x7f] }
 0x41e   :  { %3387 = vmatpush1.bf16.msra.mxu0 %v4659_v16  ;;  %v2279_v16 = vrot.slane %v6210_v21, %v5574_v50 }
 0x41f   :  { %4092 = vmatpush3.bf16.msra.mxu1 %v4663_v22  ;;  %3388 = vmatprep.subr.bf16.mxu0 %v4666_v23  ;;  %v2287_v22 = vrot.slane %v6210_v21, %v5585_v4  ;;  %v2283_v23 = vrot.slane %v6210_v21, %v5580_v52 }
 0x420   :  { %4093 = vmatprep.subr.bf16.mxu1 %v4667_v24 }
 0x422   :  { %3389 = vmatpush1.bf16.msra.mxu0 %v4664_v25 }
 0x423   :  { %4094 = vmatpush3.bf16.msra.mxu1 %v4668_v26  ;;  %3390 = vmatprep.subr.bf16.mxu0 %v4671_v27 }
 0x424   :  { %4095 = vmatprep.subr.bf16.mxu1 %v4672_v28 }
 0x426   :  { %3391 = vmatpush1.bf16.msra.mxu0 %v4669_v30 }
 0x427   :  { %4096 = vmatpush3.bf16.msra.mxu1 %v4673_v31  ;;  %3392 = vmatprep.subr.bf16.mxu0 %v4676_v32 }
 0x428   :  { %4097 = vmatprep.subr.bf16.mxu1 %v4677_v33 }
 0x42a   :  { %3393 = vmatpush1.bf16.msra.mxu0 %v4674_v34 }
 0x42b   :  { %4098 = vmatpush3.bf16.msra.mxu1 %v4678_v35  ;;  %3394 = vmatprep.subr.bf16.mxu0 %v4681_v36 }
 0x42c   :  { %3500 = vmatprep.subr.bf16.mxu1 %v4804_v2 }
 0x42e   :  { %3493 = vmatmul.mubr.bf16.vlgmr.msra.gmra.mrb[24].mxu1 %v5846_v17  ;;  %3395 = vmatpush1.bf16.msra.mxu0 %v4679_v37 }
 0x42f   :  { %3501 = vmatpush1.bf16.msra.mxu1 %v4682_v38  ;;  %4052 = vmatprep.mubr.msk.bf16.mxu1 %vm1266_vm0, %v5872_v29 }
 0x430   :  { %3396 = vmatprep.subr.bf16.mxu0 %v4685_v39  ;;  %3502 = vmatprep.subr.bf16.mxu1 %v4804_v2 }
 0x432   :  { %3397 = vmatpush1.bf16.msra.mxu0 %v4683_v40 }
 0x433   :  { %3503 = vmatpush1.bf16.msra.mxu1 %v4686_v41  ;;  %3398 = vmatprep.subr.bf16.mxu0 %v4689_v42 }
 0x434   :  { %3504 = vmatprep.subr.bf16.mxu1 %v4804_v2 }
 0x436   :  { %3399 = vmatpush1.bf16.msra.mxu0 %v4687_v43 }
 0x437   :  { %3505 = vmatpush1.bf16.msra.mxu1 %v4690_v44  ;;  %3400 = vmatprep.subr.bf16.mxu0 %v4693_v45 }
 0x438   :  { %3506 = vmatprep.subr.bf16.mxu1 %v4804_v2 }
 0x43a   :  { %3401 = vmatpush1.bf16.msra.mxu0 %v4691_v46 }
 0x43b   :  { %3507 = vmatpush1.bf16.msra.mxu1 %v4694_v47  ;;  %3402 = vmatprep.subr.bf16.mxu0 %v4697_v48 }
 0x43c   :  { %3508 = vmatprep.subr.bf16.mxu1 %v4804_v2 }
 0x43e   :  { %3403 = vmatpush1.bf16.msra.mxu0 %v4695_v51 }
 0x43f   :  { %3509 = vmatpush1.bf16.msra.mxu1 %v4698_v53  ;;  %3404 = vmatprep.subr.bf16.mxu0 %v4701_v54 }
 0x440   :  { %3510 = vmatprep.subr.bf16.mxu1 %v4804_v2 }
 0x442   :  { %3405 = vmatpush1.bf16.msra.mxu0 %v4699_v55 }
 0x443   :  { %3511 = vmatpush1.bf16.msra.mxu1 %v4702_v56  ;;  %3406 = vmatprep.subr.bf16.mxu0 %v4705_v57 }
 0x444   :  { %3512 = vmatprep.subr.bf16.mxu1 %v4804_v2 }
 0x446   :  { %3407 = vmatpush1.bf16.msra.mxu0 %v4703_v58 }
 0x447   :  { %3513 = vmatpush1.bf16.msra.mxu1 %v4706_v59  ;;  %3408 = vmatprep.subr.bf16.mxu0 %v4709_v60 }
 0x448   :  { %3514 = vmatprep.subr.bf16.mxu1 %v4804_v2 }
 0x44a   :  { %3409 = vmatpush1.bf16.msra.mxu0 %v4707_v61 }
 0x44b   :  { %3515 = vmatpush1.bf16.msra.mxu1 %v4710_v62  ;;  %3419 = vmatprep.subr.bf16.mxu0 %v4713_v63 }
 0x44c   :  { %3516 = vmatprep.subr.bf16.mxu1 %v4804_v2  ;;  %v4718_v2 = vld [vmem:[%s6258_s8 + $0x400] ss:$28 sps:$4 sm:$0xff]  }
 0x44d   :  { %3411 = vmatmul.mubr.bf16.vlgmr.msra.gmra.mrb[12].mxu0 %v5846_v17  ;;  %v4723_v17 = vld [vmem:[%s6258_s8 + $0x43c] ss:$28 sps:$4 sm:$0xff]  }
 0x44e   :  { %3420 = vmatpush1.bf16.msra.mxu0 %v4711_v0  ;;  %4051 = vmatprep.mubr.msk.bf16.mxu0 %vm1266_vm0, %v5872_v29  ;;  %v4721_v29 = vld [vmem:[%s6258_s8 + $0x438] ss:$28 sps:$4 sm:$0xff]   ;;  %s4756_s8 = scalar_lea.vmem %s3619_s6, 64 }
 0x44f   :  { %3517 = vmatpush1.bf16.msra.mxu1 %v4714_v3  ;;  %3421 = vmatprep.subr.bf16.mxu0 %v4717_v6  ;;  %p4757_p0 = scmp.ne.s32.totalorder %s3619_s6, %s4756_s8  ;;  %p4762_p2 = scmp.lt.s32.totalorder %s4756_s8, %s4756_s8 }
 0x451   :  { %p4763_p3 = por %p4762_p2, %p4761_p1 }
 0x452   :  { %3533 = vmatmul.mubr.bf16.vlgmr.msra.gmra.mrb[28].mxu1 %v5968_v1  ;;  %3422 = vmatpush1.bf16.msra.mxu0 %v4715_v7 }
 0x453   :  { %3423 = vmatprep.subr.bf16.mxu0 %v4720_v8  ;;  %p4764_p4 = pnand %p4763_p3, %p4757_p0 }
 0x456   :  { %3424 = vmatpush1.bf16.msra.mxu0 %v4718_v2 }
 0x457   :  { %3425 = vmatprep.subr.bf16.mxu0 %v4723_v17 }
 0x45a   :  { %3426 = vmatpush1.bf16.msra.mxu0 %v4721_v29 }
 0x45b   :  { %3427 = vmatprep.subr.bf16.mxu0 %v4726_v9 }
 0x45e   :  { %3428 = vmatpush1.bf16.msra.mxu0 %v4724_v10 }
 0x45f   :  { %3429 = vmatprep.subr.bf16.mxu0 %v4729_v11 }
 0x462   :  { %3430 = vmatpush1.bf16.msra.mxu0 %v4727_v13 }
 0x463   :  { %3431 = vmatprep.subr.bf16.mxu0 %v4732_v12 }
 0x466   :  { %3432 = vmatpush1.bf16.msra.mxu0 %v4730_v14 }
 0x467   :  { %3433 = vmatprep.subr.bf16.mxu0 %v4735_v15 }
 0x46a   :  { %3434 = vmatpush1.bf16.msra.mxu0 %v4733_v18 }
 0x46b   :  { %3435 = vmatprep.subr.bf16.mxu0 %v4738_v19 }
 0x46e   :  { %3436 = vmatpush1.bf16.msra.mxu0 %v4736_v20 }
 0x471   :  { %3452 = vmatmul.mubr.bf16.vlgmr.msra.gmra.mrb[12].mxu0 %v5968_v1  ;;  %v2291_v1 = vrot.slane %v6210_v21, %v5588_v5 }
 0x472   :  { %4767 = shalt.err (!%p4764_p4)
}
 0x473   :  { %s4768_s13 = scalar_lea.hbm %s6261_s11, 64 }
 0x474   :  { %p4769_p5 = scmp.ne.s32.totalorder %s6261_s11, %s4768_s13  ;;  %p4772_p6 = scmp.lt.u32.totalorder %s4768_s13, %s6261_s11 }
 0x476   :  { %p4774_p7 = pnand %p4772_p6, %p4769_p5 }
 0x478   :  { %4777 = shalt.err (!%p4774_p7)
}
 0x479   :  { %3621 = dma.vmem_to_hbm [thread:$0]  %s3619_s6, 64, %s6261_s11, [#allocation5]   ;;  %v2302_v59 = vsub.s32 6, %v5571_v49  ;;  %vm3600_vm3 = vcmask 125952   ;;  %v2294_v9 = vsub.s32 4, %v5571_v49  ;;  %v2298_v10 = vsub.s32 5, %v5571_v49 }
 0x47a   :  { %s4807_s11 = smov [#allocation2]  }
 0x47b   :  { %v2303_v60 = vrot.slane %v6210_v21, %v2302_v59  ;;  %v2295_v11 = vrot.slane %v6210_v21, %v2294_v9  ;;  %v2299_v13 = vrot.slane %v6210_v21, %v2298_v10  ;;  %s3608_s19 = sshll.u32 %s4807_s11, 4  ;;  %s3609_s19 = int_to_ptr.vmem [resolvable:$true] %s3608_s19 }
 0x47c   :  { %s4778_s20 = scalar_lea.vmem %s3609_s19, 448  ;;  %p4783_p9 = scmp.lt.s32.totalorder %s3609_s19, %s3609_s19 }
 0x47d   :  { %p4779_p8 = scmp.ne.s32.totalorder %s3609_s19, %s4778_s20  ;;  %p4784_p10 = scmp.lt.s32.totalorder %s4778_s20, %s4778_s20 }
 0x47f   :  { %p4785_p11 = por %p4784_p10, %p4783_p9 }
 0x481   :  { %p4786_p12 = pnand %p4785_p11, %p4779_p8 }
 0x4e0   :  { %v3289_v50 = vpop.f32.mrb[8].mxu0  ;;  %v3371_v52 = vpop.f32.mrb[20].mxu1 }
 0x4e1   :  { %v4111_v4 = vadd.f32 %v3289_v50, %v2279_v16  ;;  %v4113_v5 = vadd.f32 %v3371_v52, %v2287_v22  ;;  %v3291_v24 = vpop.f32.mrb[9].mxu0  ;;  %v3373_v25 = vpop.f32.mrb[21].mxu1 }
 0x4e2   :  { %v4112_v26 = vadd.f32 %v3291_v24, %v2283_v23  ;;  %v4114_v27 = vadd.f32 %v3373_v25, %v2291_v1  ;;  %v3293_v28 = vpop.f32.mrb[10].mxu0  ;;  %v3375_v30 = vpop.f32.mrb[22].mxu1 }
 0x4e3   :  { %v3540_v31 = vmul.f32 0.5, %v4111_v4  ;;  %v3542_v32 = vmul.f32 0.5, %v4113_v5  ;;  %v3294_v33 = vpop.f32.mrb[11].mxu0  ;;  %v3376_v34 = vpop.f32.mrb[23].mxu1 }
 0x4e4   :  { %v3541_v35 = vmul.f32 0.5, %v4112_v26  ;;  %v3543_v36 = vmul.f32 0.5, %v4114_v27 }
 0x4e5   :  { %4741 = vtanh.f32 %v3540_v31 }
 0x4e6   :  { %4743 = vtanh.f32 %v3542_v32 }
 0x4e7   :  { %4745 = vtanh.f32 %v3541_v35 }
 0x4e8   :  { %4747 = vtanh.f32 %v3543_v36 }
 0x4ef   :  { %v4742_v37 = vpop.eup %4741 }
 0x4f0   :  { %v4744_v38 = vpop.eup %4743  ;;  %v3554_v39 = vmul.f32 0.5, %v4742_v37 }
 0x4f1   :  { %v4746_v40 = vpop.eup %4745  ;;  %v3556_v41 = vmul.f32 0.5, %v4744_v38 }
 0x4f2   :  { %v4748_v42 = vpop.eup %4747  ;;  %v3561_v43 = vadd.f32 0.5, %v3554_v39  ;;  %v3555_v44 = vmul.f32 0.5, %v4746_v40 }
 0x4f3   :  { %v3563_v45 = vadd.f32 0.5, %v3556_v41  ;;  %v3557_v46 = vmul.f32 0.5, %v4748_v42 }
 0x4f4   :  { %v3562_v47 = vadd.f32 0.5, %v3555_v44 }
 0x4f5   :  { %v3564_v48 = vadd.f32 0.5, %v3557_v46 }
 0x4f6   :  { %v4057_v51 = vpack.c.bf16 %v3562_v47, %v3561_v43 }
 0x4f7   :  { %v4058_v53 = vpack.c.bf16 %v3564_v48, %v3563_v45 }
 0x4f8   :  { %3597 = vst [vmem:[#allocation2] sm:$0xff] %v4057_v51 }
 0x4f9   :  { %3598 = vst [vmem:[#allocation2 + $0x8] sm:$0xff] %v4058_v53 }
 0x501   :  { %v4099_v54 = vpop.f32.mrb[24].mxu1 }
 0x502   :  { %v4100_v55 = vpop.f32.mrb[25].mxu1 }
 0x503   :  { %v4101_v56 = vadd.f32 %v4100_v55, %v4099_v54  ;;  %v4102_v57 = vpop.f32.mrb[26].mxu1 }
 0x504   :  { %v4103_v58 = vpop.f32.mrb[27].mxu1 }
 0x505   :  { %v3495_v61 = vadd.f32 %v4101_v56, %v2303_v60 }
 0x525   :  { %v3534_v62 = vpop.f32.mrb[28].mxu1 }
 0x526   :  { %v3535_v63 = vadd.f32 %v3534_v62, %v3495_v61  ;;  %v3536_v0 = vpop.f32.mrb[29].mxu1 }
 0x527   :  { %v3537_v3 = vpop.f32.mrb[30].mxu1 }
 0x528   :  { %v3546_v6 = vmul.f32 0.5, %v3535_v63  ;;  %v3538_v7 = vpop.f32.mrb[31].mxu1 }
 0x52a   :  { %4749 = vtanh.f32 %v3546_v6 }
 0x534   :  { %v4750_v8 = vpop.eup %4749 }
 0x535   :  { %v3560_v2 = vmul.f32 0.5, %v4750_v8 }
 0x537   :  { %v3567_v17 = vadd.f32 0.5, %v3560_v2 }
 0x539   :  { %v4060_v29 = vpack.c.bf16 %v3567_v17, %v3567_v17 }
 0x53b   :  { %3601 = vst.msk [vmem:[#allocation2 + $0x18] sm:$0xf] %vm3600_vm3, %v4060_v29 }
 0x544   :  { %v3453_v12 = vpop.f32.mrb[12].mxu0 }
 0x545   :  { %v4115_v14 = vadd.f32 %v3453_v12, %v2295_v11  ;;  %v3455_v15 = vpop.f32.mrb[13].mxu0 }
 0x546   :  { %v4116_v18 = vadd.f32 %v3455_v15, %v2299_v13  ;;  %v3457_v19 = vpop.f32.mrb[14].mxu0 }
 0x547   :  { %v3544_v20 = vmul.f32 0.5, %v4115_v14  ;;  %v3458_v16 = vpop.f32.mrb[15].mxu0 }
 0x548   :  { %v3545_v22 = vmul.f32 0.5, %v4116_v18 }
 0x549   :  { %4751 = vtanh.f32 %v3544_v20 }
 0x54a   :  { %4753 = vtanh.f32 %v3545_v22 }
 0x553   :  { %v4752_v23 = vpop.eup %4751 }
 0x554   :  { %v4754_v1 = vpop.eup %4753  ;;  %v3558_v50 = vmul.f32 0.5, %v4752_v23 }
 0x555   :  { %v3559_v52 = vmul.f32 0.5, %v4754_v1 }
 0x556   :  { %v3565_v4 = vadd.f32 0.5, %v3558_v50 }
 0x557   :  { %v3566_v49 = vadd.f32 0.5, %v3559_v52 }
 0x559   :  { %v4059_v5 = vpack.c.bf16 %v3566_v49, %v3565_v4 }
 0x55b   :  { %3599 = vst [vmem:[#allocation2 + $0x10] sm:$0xff] %v4059_v5 }
 0x55c   :  { %4789 = shalt.err (!%p4786_p12)
}
 0x55d   :  { %s4790_s23 = scalar_lea.hbm %s6260_s10, 448 }
 0x55e   :  { %p4791_p13 = scmp.ne.s32.totalorder %s6260_s10, %s4790_s23  ;;  %p4794_p0 = scmp.lt.u32.totalorder %s4790_s23, %s6260_s10 }
 0x560   :  { %p4796_p1 = pnand %p4794_p0, %p4791_p13 }
 0x562   :  { %4799 = shalt.err (!%p4796_p1)
}
 0x563   :  { %3611 = dma.vmem_to_hbm [thread:$0]  %s3609_s19, 448, %s6260_s10, [#allocation3]  }
 0x564   :  { %4800 = dma.done.wait [#allocation3], 448  }
 0x565   :  { %4801 = vsyncadd [#allocation3], 4294966848 }
 0x566   :  { %4802 = dma.done.wait [#allocation5], 64  }
 0x567   :  { %4803 = vsyncadd [#allocation5], 4294967232 }
 0x568   :  { %3628 = vsyncpa [#allocation3], 1 }
 0x569   :  { %3629 = vsyncpa [#allocation5], 1 }

// kernel: tpu_custom_call.1
= control target key start
LH: loop header
LB: loop body
LE: loop exit
PB: predicated region body
PF: predicated region fallthrough
CT: control target
= control target key end

     0   :  { %17 = vsyncpa [#allocation3], 0  ;;  %v4804_v2 = vmov 0   ;;  %vm1266_vm0 = vcmask 130048   ;;  %s6250_s0 = inlined_call_operand.vmem [shape: bf16[8,784], index: 0, kind: input, shape index: {}]   ;;  %s6251_s1 = inlined_call_operand.vmem [shape: f32[8,20], index: 1, kind: input, shape index: {}]   ;;  %s6252_s2 = inlined_call_operand.vmem [shape: bf16[784,400], index: 2, kind: input, shape index: {}]   ;;  %s6253_s3 = inlined_call_operand.vmem [shape: f32[1,400], index: 3, kind: input, shape index: {}]   ;;  %s6254_s4 = inlined_call_operand.vmem [shape: bf16[400,128], index: 4, kind: input, shape index: {}]   ;;  %s6255_s5 = inlined_call_operand.vmem [shape: f32[1,128], index: 5, kind: input, shape index: {}]   ;;  %s6256_s6 = inlined_call_operand.vmem [shape: bf16[20,400], index: 6, kind: input, shape index: {}]   ;;  %s6257_s7 = inlined_call_operand.vmem [shape: f32[1,400], index: 7, kind: input, shape index: {}]   ;;  %s6258_s8 = inlined_call_operand.vmem [shape: bf16[400,784], index: 8, kind: input, shape index: {}]   ;;  %s6259_s9 = inlined_call_operand.vmem [shape: f32[1,784], index: 9, kind: input, shape index: {}]   ;;  %s6260_s10 = inlined_call_operand.hbm [shape: bf16[8,784], index: 10, kind: output, shape index: {0}]   ;;  %s6261_s11 = inlined_call_operand.hbm [shape: bf16[8,128], index: 11, kind: output, shape index: {1}]  }
   0x1   :  { %v4153_v0 = vld [vmem:[%s6252_s2 + $0x4] ss:$16 sps:$4 sm:$0xff]   ;;  %1425 = vmatprep.mubr.bf16.mxu1 %v4804_v2  ;;  %v4157_v3 = vld [vmem:[%s6252_s2] ss:$16 sps:$4 sm:$0xff]   ;;  %v4161_v6 = vld [vmem:[%s6250_s0 + $0x18] ss:$0 sps:$4 sm:$0xff]  }
   0x2   :  { %v4155_v1 = vld [vmem:[%s6252_s2 + $0x604] ss:$16 sps:$4 sm:$0xff]   ;;  %1270 = vmatprep.subr.bf16.mxu0 %v4153_v0  ;;  %v4158_v4 = vld [vmem:[%s6252_s2 + $0x600] ss:$16 sps:$4 sm:$0xff]   ;;  %v4162_v7 = vld [vmem:[%s6252_s2 + $0x8] ss:$16 sps:$4 sm:$0xff]  }
   0x3   :  { %1393 = vmatprep.subr.bf16.mxu1 %v4155_v1  ;;  %v4159_v5 = vld [vmem:[%s6252_s2 + $0x24] ss:$16 sps:$4 sm:$0xff]   ;;  %1271 = vmatpush1.bf16.msra.mxu0 %v4157_v3  ;;  %v4164_v8 = vld [vmem:[%s6252_s2 + $0xc] ss:$16 sps:$4 sm:$0xff]   ;;  %v4165_v9 = vld [vmem:[%s6252_s2 + $0x20] ss:$16 sps:$4 sm:$0xff]  }
   0x4   :  { %1394 = vmatpush1.bf16.msra.mxu1 %v4158_v4  ;;  %1272 = vmatprep.subr.bf16.mxu0 %v4159_v5  ;;  %v4166_v10 = vld [vmem:[%s6252_s2 + $0x44] ss:$16 sps:$4 sm:$0xff]   ;;  %v4168_v11 = vld [vmem:[%s6252_s2 + $0x28] ss:$16 sps:$4 sm:$0xff]   ;;  %v4170_v12 = vld [vmem:[%s6252_s2 + $0x2c] ss:$16 sps:$4 sm:$0xff]  }
   0x5   :  { %1434 = vmatprep.subr.bf16.mxu1 %v4164_v8  ;;  %v4171_v13 = vld [vmem:[%s6252_s2 + $0x40] ss:$16 sps:$4 sm:$0xff]   ;;  %v4172_v14 = vld [vmem:[%s6252_s2 + $0x64] ss:$16 sps:$4 sm:$0xff]   ;;  %v4176_v15 = vld [vmem:[%s6252_s2 + $0x4c] ss:$16 sps:$4 sm:$0xff]  }
   0x6   :  { %v4174_v16 = vld [vmem:[%s6252_s2 + $0x48] ss:$16 sps:$4 sm:$0xff]   ;;  %v4177_v17 = vld [vmem:[%s6252_s2 + $0x60] ss:$16 sps:$4 sm:$0xff]   ;;  %v4178_v18 = vld [vmem:[%s6252_s2 + $0x84] ss:$16 sps:$4 sm:$0xff]  }
   0x7   :  { %3833 = vmatmul.mubr.msk.bf16.vlgmr.msra.gmra.mrb[0].mxu1 %vm1266_vm0, %v4161_v6  ;;  %1273 = vmatpush1.bf16.msra.mxu0 %v4165_v9  ;;  %v4182_v19 = vld [vmem:[%s6252_s2 + $0x6c] ss:$16 sps:$4 sm:$0xff]   ;;  %v4180_v20 = vld [vmem:[%s6252_s2 + $0x68] ss:$16 sps:$4 sm:$0xff]   ;;  %v4183_v21 = vld [vmem:[%s6252_s2 + $0x80] ss:$16 sps:$4 sm:$0xff]  }
   0x8   :  { %1435 = vmatpush1.bf16.msra.mxu1 %v4162_v7  ;;  %1274 = vmatprep.subr.bf16.mxu0 %v4166_v10  ;;  %v4184_v22 = vld [vmem:[%s6252_s2 + $0xa4] ss:$16 sps:$4 sm:$0xff]   ;;  %v4188_v23 = vld [vmem:[%s6252_s2 + $0x8c] ss:$16 sps:$4 sm:$0xff]   ;;  %v4186_v24 = vld [vmem:[%s6252_s2 + $0x88] ss:$16 sps:$4 sm:$0xff]  }
   0x9   :  { %1436 = vmatprep.subr.bf16.mxu1 %v4170_v12  ;;  %v4189_v25 = vld [vmem:[%s6252_s2 + $0xa0] ss:$16 sps:$4 sm:$0xff]   ;;  %v4190_v26 = vld [vmem:[%s6252_s2 + $0xc4] ss:$16 sps:$4 sm:$0xff]   ;;  %v4194_v27 = vld [vmem:[%s6252_s2 + $0xac] ss:$16 sps:$4 sm:$0xff]  }
   0xa   :  { %v4192_v28 = vld [vmem:[%s6252_s2 + $0xa8] ss:$16 sps:$4 sm:$0xff]   ;;  %v4195_v29 = vld [vmem:[%s6252_s2 + $0xc0] ss:$16 sps:$4 sm:$0xff]   ;;  %v4196_v30 = vld [vmem:[%s6252_s2 + $0xe4] ss:$16 sps:$4 sm:$0xff]  }
   0xb   :  { %1275 = vmatpush1.bf16.msra.mxu0 %v4171_v13  ;;  %v4200_v31 = vld [vmem:[%s6252_s2 + $0xcc] ss:$16 sps:$4 sm:$0xff]   ;;  %v4198_v32 = vld [vmem:[%s6252_s2 + $0xc8] ss:$16 sps:$4 sm:$0xff]   ;;  %v4201_v33 = vld [vmem:[%s6252_s2 + $0xe0] ss:$16 sps:$4 sm:$0xff]  }
   0xc   :  { %1437 = vmatpush1.bf16.msra.mxu1 %v4168_v11  ;;  %1276 = vmatprep.subr.bf16.mxu0 %v4172_v14  ;;  %v4202_v34 = vld [vmem:[%s6252_s2 + $0x104] ss:$16 sps:$4 sm:$0xff]   ;;  %v4206_v35 = vld [vmem:[%s6252_s2 + $0xec] ss:$16 sps:$4 sm:$0xff]   ;;  %v4204_v36 = vld [vmem:[%s6252_s2 + $0xe8] ss:$16 sps:$4 sm:$0xff]  }
   0xd   :  { %1438 = vmatprep.subr.bf16.mxu1 %v4176_v15  ;;  %v4207_v37 = vld [vmem:[%s6252_s2 + $0x100] ss:$16 sps:$4 sm:$0xff]   ;;  %v4208_v38 = vld [vmem:[%s6252_s2 + $0x124] ss:$16 sps:$4 sm:$0xff]   ;;  %v4212_v39 = vld [vmem:[%s6252_s2 + $0x10c] ss:$16 sps:$4 sm:$0xff]  }
   0xe   :  { %v4210_v40 = vld [vmem:[%s6252_s2 + $0x108] ss:$16 sps:$4 sm:$0xff]   ;;  %v4213_v41 = vld [vmem:[%s6252_s2 + $0x120] ss:$16 sps:$4 sm:$0xff]   ;;  %v4214_v42 = vld [vmem:[%s6252_s2 + $0x144] ss:$16 sps:$4 sm:$0xff]  }
   0xf   :  { %1277 = vmatpush1.bf16.msra.mxu0 %v4177_v17  ;;  %v4218_v43 = vld [vmem:[%s6252_s2 + $0x12c] ss:$16 sps:$4 sm:$0xff]   ;;  %v4216_v44 = vld [vmem:[%s6252_s2 + $0x128] ss:$16 sps:$4 sm:$0xff]   ;;  %v4219_v45 = vld [vmem:[%s6252_s2 + $0x140] ss:$16 sps:$4 sm:$0xff]  }
  0x10   :  { %1439 = vmatpush1.bf16.msra.mxu1 %v4174_v16  ;;  %1278 = vmatprep.subr.bf16.mxu0 %v4178_v18  ;;  %v4220_v46 = vld [vmem:[%s6252_s2 + $0x164] ss:$16 sps:$4 sm:$0xff]   ;;  %v4224_v47 = vld [vmem:[%s6252_s2 + $0x14c] ss:$16 sps:$4 sm:$0xff]   ;;  %v4222_v48 = vld [vmem:[%s6252_s2 + $0x148] ss:$16 sps:$4 sm:$0xff]  }
  0x11   :  { %1440 = vmatprep.subr.bf16.mxu1 %v4182_v19  ;;  %v40_v49 = vld [vmem:[%s6250_s0] sm:$0xff]  ;;  %v4230_v53 = vld [vmem:[%s6252_s2 + $0x16c] ss:$16 sps:$4 sm:$0xff]   ;;  %v4228_v54 = vld [vmem:[%s6252_s2 + $0x168] ss:$16 sps:$4 sm:$0xff]  }
  0x12   :  { %v4225_v50 = vld [vmem:[%s6252_s2 + $0x160] ss:$16 sps:$4 sm:$0xff]   ;;  %v4226_v51 = vld [vmem:[%s6252_s2 + $0x184] ss:$16 sps:$4 sm:$0xff]   ;;  %v3631_v52 = vcombine.high %v40_v49, %v40_v49  ;;  %v4236_v57 = vld [vmem:[%s6252_s2 + $0x18c] ss:$16 sps:$4 sm:$0xff]   ;;  %v3630_v7 = vcombine.low %v40_v49, %v40_v49 }
  0x13   :  { %1279 = vmatpush1.bf16.msra.mxu0 %v4183_v21  ;;  %v4231_v55 = vld [vmem:[%s6252_s2 + $0x180] ss:$16 sps:$4 sm:$0xff]   ;;  %v4232_v56 = vld [vmem:[%s6252_s2 + $0x1a4] ss:$16 sps:$4 sm:$0xff]   ;;  %v4234_v58 = vld [vmem:[%s6252_s2 + $0x188] ss:$16 sps:$4 sm:$0xff]  }
  0x14   :  { %1441 = vmatpush1.bf16.msra.mxu1 %v4180_v20  ;;  %1280 = vmatprep.subr.bf16.mxu0 %v4184_v22  ;;  %v4237_v59 = vld [vmem:[%s6252_s2 + $0x1a0] ss:$16 sps:$4 sm:$0xff]   ;;  %v4238_v60 = vld [vmem:[%s6252_s2 + $0x1c4] ss:$16 sps:$4 sm:$0xff]   ;;  %v4242_v61 = vld [vmem:[%s6252_s2 + $0x1ac] ss:$16 sps:$4 sm:$0xff]  }
  0x15   :  { %1442 = vmatprep.subr.bf16.mxu1 %v4188_v23  ;;  %1302 = vmatprep.mubr.bf16.mxu0 %v3631_v52  ;;  %v4240_v62 = vld [vmem:[%s6252_s2 + $0x1a8] ss:$16 sps:$4 sm:$0xff]   ;;  %v4243_v63 = vld [vmem:[%s6252_s2 + $0x1c0] ss:$16 sps:$4 sm:$0xff]   ;;  %v4244_v0 = vld [vmem:[%s6252_s2 + $0x1e4] ss:$16 sps:$4 sm:$0xff]  }
  0x16   :  { %1466 = vmatprep.mubr.bf16.mxu1 %v3631_v52  ;;  %v4248_v1 = vld [vmem:[%s6252_s2 + $0x1cc] ss:$16 sps:$4 sm:$0xff]   ;;  %v4246_v3 = vld [vmem:[%s6252_s2 + $0x1c8] ss:$16 sps:$4 sm:$0xff]   ;;  %v4249_v4 = vld [vmem:[%s6252_s2 + $0x1e0] ss:$16 sps:$4 sm:$0xff]  }
  0x17   :  { %1281 = vmatpush1.bf16.msra.mxu0 %v4189_v25  ;;  %v4254_v5 = vld [vmem:[%s6252_s2 + $0x204] ss:$16 sps:$4 sm:$0xff]   ;;  %v4257_v6 = vld [vmem:[%s6252_s2 + $0x1ec] ss:$16 sps:$4 sm:$0xff]   ;;  %v4252_v8 = vld [vmem:[%s6252_s2 + $0x200] ss:$16 sps:$4 sm:$0xff]  }
  0x18   :  { %1443 = vmatpush1.bf16.msra.mxu1 %v4186_v24  ;;  %1282 = vmatprep.subr.bf16.mxu0 %v4190_v26  ;;  %v4255_v9 = vld [vmem:[%s6252_s2 + $0x1e8] ss:$16 sps:$4 sm:$0xff]   ;;  %v4260_v10 = vld [vmem:[%s6252_s2 + $0x224] ss:$16 sps:$4 sm:$0xff]   ;;  %v4263_v11 = vld [vmem:[%s6252_s2 + $0x20c] ss:$16 sps:$4 sm:$0xff]  }
  0x19   :  { %1444 = vmatprep.subr.bf16.mxu1 %v4194_v27  ;;  %v4258_v12 = vld [vmem:[%s6252_s2 + $0x220] ss:$16 sps:$4 sm:$0xff]   ;;  %v4261_v13 = vld [vmem:[%s6252_s2 + $0x208] ss:$16 sps:$4 sm:$0xff]   ;;  %v4266_v14 = vld [vmem:[%s6252_s2 + $0x244] ss:$16 sps:$4 sm:$0xff]  }
  0x1a   :  { %v4269_v15 = vld [vmem:[%s6252_s2 + $0x22c] ss:$16 sps:$4 sm:$0xff]   ;;  %v4264_v16 = vld [vmem:[%s6252_s2 + $0x240] ss:$16 sps:$4 sm:$0xff]   ;;  %v4267_v17 = vld [vmem:[%s6252_s2 + $0x228] ss:$16 sps:$4 sm:$0xff]  }
  0x1b   :  { %1283 = vmatpush1.bf16.msra.mxu0 %v4195_v29  ;;  %v4272_v18 = vld [vmem:[%s6252_s2 + $0x264] ss:$16 sps:$4 sm:$0xff]   ;;  %v4275_v19 = vld [vmem:[%s6252_s2 + $0x24c] ss:$16 sps:$4 sm:$0xff]   ;;  %v4270_v20 = vld [vmem:[%s6252_s2 + $0x260] ss:$16 sps:$4 sm:$0xff]  }
  0x1c   :  { %1445 = vmatpush1.bf16.msra.mxu1 %v4192_v28  ;;  %1284 = vmatprep.subr.bf16.mxu0 %v4196_v30  ;;  %v4273_v21 = vld [vmem:[%s6252_s2 + $0x248] ss:$16 sps:$4 sm:$0xff]   ;;  %v4278_v22 = vld [vmem:[%s6252_s2 + $0x284] ss:$16 sps:$4 sm:$0xff]   ;;  %v4281_v23 = vld [vmem:[%s6252_s2 + $0x26c] ss:$16 sps:$4 sm:$0xff]  }
  0x1d   :  { %1446 = vmatprep.subr.bf16.mxu1 %v4200_v31  ;;  %v4276_v24 = vld [vmem:[%s6252_s2 + $0x280] ss:$16 sps:$4 sm:$0xff]   ;;  %v4279_v25 = vld [vmem:[%s6252_s2 + $0x268] ss:$16 sps:$4 sm:$0xff]   ;;  %v4284_v26 = vld [vmem:[%s6252_s2 + $0x2a4] ss:$16 sps:$4 sm:$0xff]  }
  0x1e   :  { %v4287_v27 = vld [vmem:[%s6252_s2 + $0x28c] ss:$16 sps:$4 sm:$0xff]   ;;  %v4282_v28 = vld [vmem:[%s6252_s2 + $0x2a0] ss:$16 sps:$4 sm:$0xff]   ;;  %v4285_v29 = vld [vmem:[%s6252_s2 + $0x288] ss:$16 sps:$4 sm:$0xff]  }
  0x1f   :  { %1285 = vmatpush1.bf16.msra.mxu0 %v4201_v33  ;;  %v4290_v30 = vld [vmem:[%s6252_s2 + $0x2c4] ss:$16 sps:$4 sm:$0xff]   ;;  %v4293_v31 = vld [vmem:[%s6252_s2 + $0x2ac] ss:$16 sps:$4 sm:$0xff]   ;;  %v4288_v33 = vld [vmem:[%s6252_s2 + $0x2c0] ss:$16 sps:$4 sm:$0xff]  }
  0x20   :  { %1447 = vmatpush1.bf16.msra.mxu1 %v4198_v32  ;;  %1286 = vmatprep.subr.bf16.mxu0 %v4202_v34  ;;  %v5149_v32 = vld [vmem:[%s6250_s0 + $0x8] sm:$0xff]  ;;  %v4320_v52 = vld [vmem:[%s6252_s2 + $0x364] ss:$16 sps:$4 sm:$0xff]  }
  0x21   :  { %1448 = vmatprep.subr.bf16.mxu1 %v4206_v35  ;;  %v4291_v34 = vld [vmem:[%s6252_s2 + $0x2a8] ss:$16 sps:$4 sm:$0xff]   ;;  %v3633_v35 = vcombine.high %v5149_v32, %v5149_v32  ;;  %v4317_v49 = vld [vmem:[%s6252_s2 + $0x32c] ss:$16 sps:$4 sm:$0xff]  }
  0x23   :  { %1287 = vmatpush1.bf16.msra.mxu0 %v4207_v37  ;;  %v4299_v37 = vld [vmem:[%s6252_s2 + $0x2cc] ss:$16 sps:$4 sm:$0xff]  }
  0x24   :  { %1449 = vmatpush1.bf16.msra.mxu1 %v4204_v36  ;;  %1288 = vmatprep.subr.bf16.mxu0 %v4208_v38  ;;  %v4296_v36 = vld [vmem:[%s6252_s2 + $0x2e4] ss:$16 sps:$4 sm:$0xff]   ;;  %v4294_v38 = vld [vmem:[%s6252_s2 + $0x2e0] ss:$16 sps:$4 sm:$0xff]  }
  0x25   :  { %1450 = vmatprep.subr.bf16.mxu1 %v4212_v39  ;;  %v4297_v39 = vld [vmem:[%s6252_s2 + $0x2c8] ss:$16 sps:$4 sm:$0xff]  }
  0x27   :  { %1289 = vmatpush1.bf16.msra.mxu0 %v4213_v41  ;;  %v4305_v41 = vld [vmem:[%s6252_s2 + $0x2ec] ss:$16 sps:$4 sm:$0xff]  }
  0x28   :  { %1451 = vmatpush1.bf16.msra.mxu1 %v4210_v40  ;;  %1290 = vmatprep.subr.bf16.mxu0 %v4214_v42  ;;  %v4302_v40 = vld [vmem:[%s6252_s2 + $0x304] ss:$16 sps:$4 sm:$0xff]   ;;  %v4300_v42 = vld [vmem:[%s6252_s2 + $0x300] ss:$16 sps:$4 sm:$0xff]  }
  0x29   :  { %1452 = vmatprep.subr.bf16.mxu1 %v4218_v43  ;;  %v4303_v43 = vld [vmem:[%s6252_s2 + $0x2e8] ss:$16 sps:$4 sm:$0xff]  }
  0x2b   :  { %1291 = vmatpush1.bf16.msra.mxu0 %v4219_v45  ;;  %v4311_v45 = vld [vmem:[%s6252_s2 + $0x30c] ss:$16 sps:$4 sm:$0xff]  }
  0x2c   :  { %1453 = vmatpush1.bf16.msra.mxu1 %v4216_v44  ;;  %1292 = vmatprep.subr.bf16.mxu0 %v4220_v46  ;;  %v4308_v44 = vld [vmem:[%s6252_s2 + $0x324] ss:$16 sps:$4 sm:$0xff]   ;;  %v4306_v46 = vld [vmem:[%s6252_s2 + $0x320] ss:$16 sps:$4 sm:$0xff]  }
  0x2d   :  { %1454 = vmatprep.subr.bf16.mxu1 %v4224_v47  ;;  %v4309_v47 = vld [vmem:[%s6252_s2 + $0x308] ss:$16 sps:$4 sm:$0xff]  }
  0x2f   :  { %1293 = vmatpush1.bf16.msra.mxu0 %v4225_v50  ;;  %v4312_v50 = vld [vmem:[%s6252_s2 + $0x340] ss:$16 sps:$4 sm:$0xff]  }
  0x30   :  { %1455 = vmatpush1.bf16.msra.mxu1 %v4222_v48  ;;  %1294 = vmatprep.subr.bf16.mxu0 %v4226_v51  ;;  %v4314_v48 = vld [vmem:[%s6252_s2 + $0x344] ss:$16 sps:$4 sm:$0xff]   ;;  %v4315_v51 = vld [vmem:[%s6252_s2 + $0x328] ss:$16 sps:$4 sm:$0xff]  }
  0x31   :  { %1456 = vmatprep.subr.bf16.mxu1 %v4230_v53  ;;  %v4323_v53 = vld [vmem:[%s6252_s2 + $0x34c] ss:$16 sps:$4 sm:$0xff]  }
  0x33   :  { %1295 = vmatpush1.bf16.msra.mxu0 %v4231_v55  ;;  %v4321_v55 = vld [vmem:[%s6252_s2 + $0x348] ss:$16 sps:$4 sm:$0xff]  }
  0x34   :  { %1457 = vmatpush1.bf16.msra.mxu1 %v4228_v54  ;;  %1296 = vmatprep.subr.bf16.mxu0 %v4232_v56  ;;  %v4318_v54 = vld [vmem:[%s6252_s2 + $0x360] ss:$16 sps:$4 sm:$0xff]   ;;  %v4326_v56 = vld [vmem:[%s6252_s2 + $0x384] ss:$16 sps:$4 sm:$0xff]  }
  0x35   :  { %1458 = vmatprep.subr.bf16.mxu1 %v4236_v57  ;;  %v4329_v57 = vld [vmem:[%s6252_s2 + $0x36c] ss:$16 sps:$4 sm:$0xff]  }
  0x37   :  { %1297 = vmatpush1.bf16.msra.mxu0 %v4237_v59  ;;  %v4327_v59 = vld [vmem:[%s6252_s2 + $0x368] ss:$16 sps:$4 sm:$0xff]  }
  0x38   :  { %1459 = vmatpush1.bf16.msra.mxu1 %v4234_v58  ;;  %1298 = vmatprep.subr.bf16.mxu0 %v4238_v60  ;;  %v4324_v58 = vld [vmem:[%s6252_s2 + $0x380] ss:$16 sps:$4 sm:$0xff]   ;;  %v4332_v60 = vld [vmem:[%s6252_s2 + $0x3a4] ss:$16 sps:$4 sm:$0xff]  }
  0x39   :  { %1460 = vmatprep.subr.bf16.mxu1 %v4242_v61  ;;  %v4335_v61 = vld [vmem:[%s6252_s2 + $0x38c] ss:$16 sps:$4 sm:$0xff]  }
  0x3b   :  { %1299 = vmatpush1.bf16.msra.mxu0 %v4243_v63  ;;  %v4333_v63 = vld [vmem:[%s6252_s2 + $0x388] ss:$16 sps:$4 sm:$0xff]  }
  0x3c   :  { %1461 = vmatpush1.bf16.msra.mxu1 %v4240_v62  ;;  %1300 = vmatprep.subr.bf16.mxu0 %v4244_v0  ;;  %v4330_v62 = vld [vmem:[%s6252_s2 + $0x3a0] ss:$16 sps:$4 sm:$0xff]   ;;  %v4338_v0 = vld [vmem:[%s6252_s2 + $0x3c4] ss:$16 sps:$4 sm:$0xff]  }
  0x3d   :  { %1462 = vmatprep.subr.bf16.mxu1 %v4248_v1  ;;  %v4341_v1 = vld [vmem:[%s6252_s2 + $0x3ac] ss:$16 sps:$4 sm:$0xff]  }
  0x3f   :  { %1301 = vmatpush1.bf16.msra.mxu0 %v4249_v4  ;;  %v4339_v4 = vld [vmem:[%s6252_s2 + $0x3a8] ss:$16 sps:$4 sm:$0xff]  }
  0x40   :  { %1463 = vmatpush1.bf16.msra.mxu1 %v4246_v3  ;;  %1311 = vmatprep.subr.bf16.mxu0 %v4254_v5  ;;  %v4336_v3 = vld [vmem:[%s6252_s2 + $0x3c0] ss:$16 sps:$4 sm:$0xff]   ;;  %v4344_v5 = vld [vmem:[%s6252_s2 + $0x3e4] ss:$16 sps:$4 sm:$0xff]  }
  0x41   :  { %1464 = vmatprep.subr.bf16.mxu1 %v4257_v6  ;;  %v4347_v6 = vld [vmem:[%s6252_s2 + $0x3cc] ss:$16 sps:$4 sm:$0xff]  }
  0x42   :  { %1303 = vmatmul.mubr.bf16.vlgmr.msra.gmra.mrb[0].mxu0 %v3630_v7 }
  0x43   :  { %1312 = vmatpush1.bf16.msra.mxu0 %v4252_v8  ;;  %1343 = vmatprep.mubr.bf16.mxu0 %v3633_v35  ;;  %v4345_v8 = vld [vmem:[%s6252_s2 + $0x3c8] ss:$16 sps:$4 sm:$0xff]  }
  0x44   :  { %1465 = vmatpush1.bf16.msra.mxu1 %v4255_v9  ;;  %1313 = vmatprep.subr.bf16.mxu0 %v4260_v10  ;;  %v4352_v9 = vld [vmem:[%s6252_s2 + $0x404] ss:$16 sps:$4 sm:$0xff]   ;;  %v4355_v10 = vld [vmem:[%s6252_s2 + $0x3ec] ss:$16 sps:$4 sm:$0xff]  }
  0x45   :  { %1475 = vmatprep.subr.bf16.mxu1 %v4263_v11  ;;  %v3632_v11 = vcombine.low %v5149_v32, %v5149_v32  ;;  %v4382_v32 = vld [vmem:[%s6252_s2 + $0x4a4] ss:$16 sps:$4 sm:$0xff]  }
  0x47   :  { %1467 = vmatmul.mubr.bf16.vlgmr.msra.gmra.mrb[4].mxu1 %v3630_v7  ;;  %1314 = vmatpush1.bf16.msra.mxu0 %v4258_v12  ;;  %v4342_v7 = vld [vmem:[%s6252_s2 + $0x3e0] ss:$16 sps:$4 sm:$0xff]  }
  0x48   :  { %1476 = vmatpush1.bf16.msra.mxu1 %v4261_v13  ;;  %1315 = vmatprep.subr.bf16.mxu0 %v4266_v14  ;;  %v4350_v12 = vld [vmem:[%s6252_s2 + $0x400] ss:$16 sps:$4 sm:$0xff]   ;;  %v4353_v13 = vld [vmem:[%s6252_s2 + $0x3e8] ss:$16 sps:$4 sm:$0xff]   ;;  %v4358_v14 = vld [vmem:[%s6252_s2 + $0x424] ss:$16 sps:$4 sm:$0xff]  }
  0x49   :  { %1477 = vmatprep.subr.bf16.mxu1 %v4269_v15  ;;  %1507 = vmatprep.mubr.bf16.mxu1 %v3633_v35  ;;  %v4361_v15 = vld [vmem:[%s6252_s2 + $0x40c] ss:$16 sps:$4 sm:$0xff]   ;;  %v4383_v35 = vld [vmem:[%s6252_s2 + $0x488] ss:$16 sps:$4 sm:$0xff]  }
  0x4b   :  { %1316 = vmatpush1.bf16.msra.mxu0 %v4264_v16  ;;  %v5290_v16 = vld [vmem:[%s6250_s0 + $0x10] sm:$0xff] }
  0x4c   :  { %1478 = vmatpush1.bf16.msra.mxu1 %v4267_v17  ;;  %1317 = vmatprep.subr.bf16.mxu0 %v4272_v18  ;;  %v4356_v17 = vld [vmem:[%s6252_s2 + $0x420] ss:$16 sps:$4 sm:$0xff]   ;;  %v3635_v18 = vcombine.high %v5290_v16, %v5290_v16 }
  0x4d   :  { %1479 = vmatprep.subr.bf16.mxu1 %v4275_v19  ;;  %v4359_v19 = vld [vmem:[%s6252_s2 + $0x408] ss:$16 sps:$4 sm:$0xff]  }
  0x4f   :  { %1318 = vmatpush1.bf16.msra.mxu0 %v4270_v20  ;;  %v4364_v20 = vld [vmem:[%s6252_s2 + $0x444] ss:$16 sps:$4 sm:$0xff]  }
  0x50   :  { %1480 = vmatpush1.bf16.msra.mxu1 %v4273_v21  ;;  %1319 = vmatprep.subr.bf16.mxu0 %v4278_v22  ;;  %v4367_v21 = vld [vmem:[%s6252_s2 + $0x42c] ss:$16 sps:$4 sm:$0xff]   ;;  %v4362_v22 = vld [vmem:[%s6252_s2 + $0x440] ss:$16 sps:$4 sm:$0xff]  }
  0x51   :  { %1481 = vmatprep.subr.bf16.mxu1 %v4281_v23  ;;  %v4365_v23 = vld [vmem:[%s6252_s2 + $0x428] ss:$16 sps:$4 sm:$0xff]  }
  0x53   :  { %1320 = vmatpush1.bf16.msra.mxu0 %v4276_v24  ;;  %v4370_v24 = vld [vmem:[%s6252_s2 + $0x464] ss:$16 sps:$4 sm:$0xff]  }
  0x54   :  { %1482 = vmatpush1.bf16.msra.mxu1 %v4279_v25  ;;  %1321 = vmatprep.subr.bf16.mxu0 %v4284_v26  ;;  %v4373_v25 = vld [vmem:[%s6252_s2 + $0x44c] ss:$16 sps:$4 sm:$0xff]   ;;  %v4368_v26 = vld [vmem:[%s6252_s2 + $0x460] ss:$16 sps:$4 sm:$0xff]  }
  0x55   :  { %1483 = vmatprep.subr.bf16.mxu1 %v4287_v27  ;;  %v4371_v27 = vld [vmem:[%s6252_s2 + $0x448] ss:$16 sps:$4 sm:$0xff]  }
  0x57   :  { %1322 = vmatpush1.bf16.msra.mxu0 %v4282_v28  ;;  %v4376_v28 = vld [vmem:[%s6252_s2 + $0x484] ss:$16 sps:$4 sm:$0xff]  }
  0x58   :  { %1484 = vmatpush1.bf16.msra.mxu1 %v4285_v29  ;;  %1323 = vmatprep.subr.bf16.mxu0 %v4290_v30  ;;  %v4379_v29 = vld [vmem:[%s6252_s2 + $0x46c] ss:$16 sps:$4 sm:$0xff]   ;;  %v4374_v30 = vld [vmem:[%s6252_s2 + $0x480] ss:$16 sps:$4 sm:$0xff]  }
  0x59   :  { %1485 = vmatprep.subr.bf16.mxu1 %v4293_v31  ;;  %v4377_v31 = vld [vmem:[%s6252_s2 + $0x468] ss:$16 sps:$4 sm:$0xff]  }
  0x5b   :  { %1324 = vmatpush1.bf16.msra.mxu0 %v4288_v33  ;;  %v4385_v33 = vld [vmem:[%s6252_s2 + $0x48c] ss:$16 sps:$4 sm:$0xff]  }
  0x5c   :  { %1486 = vmatpush1.bf16.msra.mxu1 %v4291_v34  ;;  %1325 = vmatprep.subr.bf16.mxu0 %v4296_v36  ;;  %v4380_v34 = vld [vmem:[%s6252_s2 + $0x4a0] ss:$16 sps:$4 sm:$0xff]   ;;  %v4388_v36 = vld [vmem:[%s6252_s2 + $0x4c4] ss:$16 sps:$4 sm:$0xff]  }
  0x5d   :  { %1487 = vmatprep.subr.bf16.mxu1 %v4299_v37  ;;  %v4391_v37 = vld [vmem:[%s6252_s2 + $0x4ac] ss:$16 sps:$4 sm:$0xff]  }
  0x5f   :  { %1326 = vmatpush1.bf16.msra.mxu0 %v4294_v38  ;;  %v4386_v38 = vld [vmem:[%s6252_s2 + $0x4c0] ss:$16 sps:$4 sm:$0xff]  }
  0x60   :  { %1488 = vmatpush1.bf16.msra.mxu1 %v4297_v39  ;;  %1327 = vmatprep.subr.bf16.mxu0 %v4302_v40  ;;  %v4389_v39 = vld [vmem:[%s6252_s2 + $0x4a8] ss:$16 sps:$4 sm:$0xff]   ;;  %v4394_v40 = vld [vmem:[%s6252_s2 + $0x4e4] ss:$16 sps:$4 sm:$0xff]  }
  0x61   :  { %1489 = vmatprep.subr.bf16.mxu1 %v4305_v41  ;;  %v4397_v41 = vld [vmem:[%s6252_s2 + $0x4cc] ss:$16 sps:$4 sm:$0xff]  }
  0x63   :  { %1328 = vmatpush1.bf16.msra.mxu0 %v4300_v42  ;;  %v4392_v42 = vld [vmem:[%s6252_s2 + $0x4e0] ss:$16 sps:$4 sm:$0xff]  }
  0x64   :  { %1490 = vmatpush1.bf16.msra.mxu1 %v4303_v43  ;;  %1329 = vmatprep.subr.bf16.mxu0 %v4308_v44  ;;  %v4395_v43 = vld [vmem:[%s6252_s2 + $0x4c8] ss:$16 sps:$4 sm:$0xff]   ;;  %v4400_v44 = vld [vmem:[%s6252_s2 + $0x504] ss:$16 sps:$4 sm:$0xff]  }
  0x65   :  { %1491 = vmatprep.subr.bf16.mxu1 %v4311_v45  ;;  %v4403_v45 = vld [vmem:[%s6252_s2 + $0x4ec] ss:$16 sps:$4 sm:$0xff]  }
  0x67   :  { %1330 = vmatpush1.bf16.msra.mxu0 %v4306_v46  ;;  %v4398_v46 = vld [vmem:[%s6252_s2 + $0x500] ss:$16 sps:$4 sm:$0xff]  }
  0x68   :  { %1492 = vmatpush1.bf16.msra.mxu1 %v4309_v47  ;;  %1331 = vmatprep.subr.bf16.mxu0 %v4314_v48  ;;  %v4401_v47 = vld [vmem:[%s6252_s2 + $0x4e8] ss:$16 sps:$4 sm:$0xff]   ;;  %v4406_v48 = vld [vmem:[%s6252_s2 + $0x524] ss:$16 sps:$4 sm:$0xff]  }
  0x69   :  { %1493 = vmatprep.subr.bf16.mxu1 %v4317_v49  ;;  %v4409_v49 = vld [vmem:[%s6252_s2 + $0x50c] ss:$16 sps:$4 sm:$0xff]  }
  0x6b   :  { %1332 = vmatpush1.bf16.msra.mxu0 %v4312_v50  ;;  %v4404_v50 = vld [vmem:[%s6252_s2 + $0x520] ss:$16 sps:$4 sm:$0xff]  }
  0x6c   :  { %1494 = vmatpush1.bf16.msra.mxu1 %v4315_v51  ;;  %1333 = vmatprep.subr.bf16.mxu0 %v4320_v52  ;;  %v4407_v51 = vld [vmem:[%s6252_s2 + $0x508] ss:$16 sps:$4 sm:$0xff]   ;;  %v4412_v52 = vld [vmem:[%s6252_s2 + $0x544] ss:$16 sps:$4 sm:$0xff]  }
  0x6d   :  { %1495 = vmatprep.subr.bf16.mxu1 %v4323_v53  ;;  %v4415_v53 = vld [vmem:[%s6252_s2 + $0x52c] ss:$16 sps:$4 sm:$0xff]  }
  0x6f   :  { %1334 = vmatpush1.bf16.msra.mxu0 %v4318_v54  ;;  %v4410_v54 = vld [vmem:[%s6252_s2 + $0x540] ss:$16 sps:$4 sm:$0xff]  }
  0x70   :  { %1496 = vmatpush1.bf16.msra.mxu1 %v4321_v55  ;;  %1335 = vmatprep.subr.bf16.mxu0 %v4326_v56  ;;  %v4413_v55 = vld [vmem:[%s6252_s2 + $0x528] ss:$16 sps:$4 sm:$0xff]   ;;  %v4418_v56 = vld [vmem:[%s6252_s2 + $0x564] ss:$16 sps:$4 sm:$0xff]  }
  0x71   :  { %1497 = vmatprep.subr.bf16.mxu1 %v4329_v57  ;;  %v4421_v57 = vld [vmem:[%s6252_s2 + $0x54c] ss:$16 sps:$4 sm:$0xff]  }
  0x73   :  { %1336 = vmatpush1.bf16.msra.mxu0 %v4324_v58  ;;  %v4416_v58 = vld [vmem:[%s6252_s2 + $0x560] ss:$16 sps:$4 sm:$0xff]  }
  0x74   :  { %1498 = vmatpush1.bf16.msra.mxu1 %v4327_v59  ;;  %1337 = vmatprep.subr.bf16.mxu0 %v4332_v60  ;;  %v4419_v59 = vld [vmem:[%s6252_s2 + $0x548] ss:$16 sps:$4 sm:$0xff]   ;;  %v4424_v60 = vld [vmem:[%s6252_s2 + $0x584] ss:$16 sps:$4 sm:$0xff]  }
  0x75   :  { %1499 = vmatprep.subr.bf16.mxu1 %v4335_v61  ;;  %v4427_v61 = vld [vmem:[%s6252_s2 + $0x56c] ss:$16 sps:$4 sm:$0xff]  }
  0x77   :  { %1338 = vmatpush1.bf16.msra.mxu0 %v4330_v62  ;;  %v4422_v62 = vld [vmem:[%s6252_s2 + $0x580] ss:$16 sps:$4 sm:$0xff]  }
  0x78   :  { %1500 = vmatpush1.bf16.msra.mxu1 %v4333_v63  ;;  %1339 = vmatprep.subr.bf16.mxu0 %v4338_v0  ;;  %v4425_v63 = vld [vmem:[%s6252_s2 + $0x568] ss:$16 sps:$4 sm:$0xff]   ;;  %v4430_v0 = vld [vmem:[%s6252_s2 + $0x5a4] ss:$16 sps:$4 sm:$0xff]  }
  0x79   :  { %1501 = vmatprep.subr.bf16.mxu1 %v4341_v1  ;;  %v4433_v1 = vld [vmem:[%s6252_s2 + $0x58c] ss:$16 sps:$4 sm:$0xff]  }
  0x7b   :  { %1340 = vmatpush1.bf16.msra.mxu0 %v4336_v3  ;;  %v4428_v3 = vld [vmem:[%s6252_s2 + $0x5a0] ss:$16 sps:$4 sm:$0xff]  }
  0x7c   :  { %1502 = vmatpush1.bf16.msra.mxu1 %v4339_v4  ;;  %1341 = vmatprep.subr.bf16.mxu0 %v4344_v5  ;;  %v4431_v4 = vld [vmem:[%s6252_s2 + $0x588] ss:$16 sps:$4 sm:$0xff]   ;;  %v4436_v5 = vld [vmem:[%s6252_s2 + $0x5c4] ss:$16 sps:$4 sm:$0xff]  }
  0x7d   :  { %1503 = vmatprep.subr.bf16.mxu1 %v4347_v6  ;;  %v4439_v6 = vld [vmem:[%s6252_s2 + $0x5ac] ss:$16 sps:$4 sm:$0xff]  }
  0x7f   :  { %1342 = vmatpush1.bf16.msra.mxu0 %v4342_v7  ;;  %v4434_v7 = vld [vmem:[%s6252_s2 + $0x5c0] ss:$16 sps:$4 sm:$0xff]  }
  0x80   :  { %1504 = vmatpush1.bf16.msra.mxu1 %v4345_v8  ;;  %1352 = vmatprep.subr.bf16.mxu0 %v4352_v9  ;;  %v4437_v8 = vld [vmem:[%s6252_s2 + $0x5a8] ss:$16 sps:$4 sm:$0xff]   ;;  %v4442_v9 = vld [vmem:[%s6252_s2 + $0x5e4] ss:$16 sps:$4 sm:$0xff]  }
  0x81   :  { %1505 = vmatprep.subr.bf16.mxu1 %v4355_v10  ;;  %v4445_v10 = vld [vmem:[%s6252_s2 + $0x5cc] ss:$16 sps:$4 sm:$0xff]  }
  0x82   :  { %1344 = vmatmul.mubr.bf16.vlgmr.msra.gmra.mrb[0].mxu0 %v3632_v11 }
  0x83   :  { %1353 = vmatpush1.bf16.msra.mxu0 %v4350_v12  ;;  %1384 = vmatprep.mubr.bf16.mxu0 %v3635_v18  ;;  %v4443_v12 = vld [vmem:[%s6252_s2 + $0x5c8] ss:$16 sps:$4 sm:$0xff]  }
  0x84   :  { %1506 = vmatpush1.bf16.msra.mxu1 %v4353_v13  ;;  %1354 = vmatprep.subr.bf16.mxu0 %v4358_v14  ;;  %v4450_v13 = vld [vmem:[%s6252_s2 + $0x5ec] ss:$16 sps:$4 sm:$0xff]   ;;  %v4454_v14 = vld [vmem:[%s6254_s4 + $0x40] sm:$0xff]  }
  0x85   :  { %1516 = vmatprep.subr.bf16.mxu1 %v4361_v15  ;;  %v4448_v15 = vld [vmem:[%s6252_s2 + $0x5e8] ss:$16 sps:$4 sm:$0xff]  }
  0x87   :  { %1508 = vmatmul.mubr.bf16.vlgmr.msra.gmra.mrb[4].mxu1 %v3632_v11  ;;  %1355 = vmatpush1.bf16.msra.mxu0 %v4356_v17  ;;  %v4440_v11 = vld [vmem:[%s6252_s2 + $0x5e0] ss:$16 sps:$4 sm:$0xff]  }
  0x88   :  { %1517 = vmatpush1.bf16.msra.mxu1 %v4359_v19  ;;  %1356 = vmatprep.subr.bf16.mxu0 %v4364_v20  ;;  %v4455_v17 = vld [vmem:[%s6254_s4] sm:$0xff]   ;;  %v4453_v19 = vld [vmem:[%s6252_s2 + $0x60c] ss:$16 sps:$4 sm:$0xff]  }
  0x89   :  { %1518 = vmatprep.subr.bf16.mxu1 %v4367_v21  ;;  %1548 = vmatprep.mubr.bf16.mxu1 %v3635_v18  ;;  %v3634_v18 = vcombine.low %v5290_v16, %v5290_v16  ;;  %v4456_v20 = vld [vmem:[%s6254_s4 + $0x48] sm:$0xff]  }
  0x8a   :  { %v4451_v21 = vld [vmem:[%s6252_s2 + $0x608] ss:$16 sps:$4 sm:$0xff]  }
  0x8b   :  { %1357 = vmatpush1.bf16.msra.mxu0 %v4362_v22  ;;  %v4457_v16 = vld [vmem:[%s6254_s4 + $0x8] sm:$0xff]   ;;  %v4458_v22 = vld [vmem:[%s6254_s4 + $0x50] sm:$0xff]  }
  0x8c   :  { %1519 = vmatpush1.bf16.msra.mxu1 %v4365_v23  ;;  %1358 = vmatprep.subr.bf16.mxu0 %v4370_v24  ;;  %v4459_v23 = vld [vmem:[%s6254_s4 + $0x10] sm:$0xff]   ;;  %v4461_v24 = vld [vmem:[%s6254_s4 + $0x58] sm:$0xff]  }
  0x8d   :  { %1520 = vmatprep.subr.bf16.mxu1 %v4373_v25  ;;  %v4462_v25 = vld [vmem:[%s6254_s4 + $0x18] sm:$0xff]  }
  0x8f   :  { %1359 = vmatpush1.bf16.msra.mxu0 %v4368_v26  ;;  %v4464_v26 = vld [vmem:[%s6254_s4 + $0x60] sm:$0xff]  }
  0x90   :  { %1521 = vmatpush1.bf16.msra.mxu1 %v4371_v27  ;;  %1360 = vmatprep.subr.bf16.mxu0 %v4376_v28  ;;  %v4460_v27 = vld [vmem:[%s6254_s4 + $0x80] sm:$0xff]  }
  0x91   :  { %1522 = vmatprep.subr.bf16.mxu1 %v4379_v29  ;;  %v4465_v28 = vld [vmem:[%s6254_s4 + $0x20] sm:$0xff]   ;;  %v4467_v29 = vld [vmem:[%s6254_s4 + $0x68] sm:$0xff]  }
  0x93   :  { %1361 = vmatpush1.bf16.msra.mxu0 %v4374_v30  ;;  %v4463_v30 = vld [vmem:[%s6254_s4 + $0x88] sm:$0xff]  }
  0x94   :  { %1523 = vmatpush1.bf16.msra.mxu1 %v4377_v31  ;;  %1362 = vmatprep.subr.bf16.mxu0 %v4382_v32  ;;  %v4755_v31 = vld [vmem:[%s6250_s0 + $0x18] ss:$0 sps:$4 sm:$0xff]   ;;  %v4466_v32 = vld [vmem:[%s6254_s4 + $0x90] sm:$0xff]  }
  0x95   :  { %1524 = vmatprep.subr.bf16.mxu1 %v4385_v33 }
  0x97   :  { %1363 = vmatpush1.bf16.msra.mxu0 %v4380_v34 }
  0x98   :  { %1525 = vmatpush1.bf16.msra.mxu1 %v4383_v35  ;;  %1364 = vmatprep.subr.bf16.mxu0 %v4388_v36 }
  0x99   :  { %1526 = vmatprep.subr.bf16.mxu1 %v4391_v37 }
  0x9b   :  { %1365 = vmatpush1.bf16.msra.mxu0 %v4386_v38 }
  0x9c   :  { %1527 = vmatpush1.bf16.msra.mxu1 %v4389_v39  ;;  %1366 = vmatprep.subr.bf16.mxu0 %v4394_v40 }
  0x9d   :  { %1528 = vmatprep.subr.bf16.mxu1 %v4397_v41 }
  0x9f   :  { %1367 = vmatpush1.bf16.msra.mxu0 %v4392_v42 }
  0xa0   :  { %1529 = vmatpush1.bf16.msra.mxu1 %v4395_v43  ;;  %1368 = vmatprep.subr.bf16.mxu0 %v4400_v44 }
  0xa1   :  { %1530 = vmatprep.subr.bf16.mxu1 %v4403_v45 }
  0xa3   :  { %1369 = vmatpush1.bf16.msra.mxu0 %v4398_v46 }
  0xa4   :  { %1531 = vmatpush1.bf16.msra.mxu1 %v4401_v47  ;;  %1370 = vmatprep.subr.bf16.mxu0 %v4406_v48 }
  0xa5   :  { %1532 = vmatprep.subr.bf16.mxu1 %v4409_v49 }
  0xa7   :  { %1371 = vmatpush1.bf16.msra.mxu0 %v4404_v50 }
  0xa8   :  { %1533 = vmatpush1.bf16.msra.mxu1 %v4407_v51  ;;  %1372 = vmatprep.subr.bf16.mxu0 %v4412_v52 }
  0xa9   :  { %1534 = vmatprep.subr.bf16.mxu1 %v4415_v53 }
  0xab   :  { %1373 = vmatpush1.bf16.msra.mxu0 %v4410_v54 }
  0xac   :  { %1535 = vmatpush1.bf16.msra.mxu1 %v4413_v55  ;;  %1374 = vmatprep.subr.bf16.mxu0 %v4418_v56 }
  0xad   :  { %1536 = vmatprep.subr.bf16.mxu1 %v4421_v57 }
  0xaf   :  { %1375 = vmatpush1.bf16.msra.mxu0 %v4416_v58 }
  0xb0   :  { %1537 = vmatpush1.bf16.msra.mxu1 %v4419_v59  ;;  %1376 = vmatprep.subr.bf16.mxu0 %v4424_v60 }
  0xb1   :  { %1538 = vmatprep.subr.bf16.mxu1 %v4427_v61 }
  0xb3   :  { %1377 = vmatpush1.bf16.msra.mxu0 %v4422_v62 }
  0xb4   :  { %1539 = vmatpush1.bf16.msra.mxu1 %v4425_v63  ;;  %1378 = vmatprep.subr.bf16.mxu0 %v4430_v0 }
  0xb5   :  { %1540 = vmatprep.subr.bf16.mxu1 %v4433_v1 }
  0xb7   :  { %1379 = vmatpush1.bf16.msra.mxu0 %v4428_v3 }
  0xb8   :  { %1541 = vmatpush1.bf16.msra.mxu1 %v4431_v4  ;;  %1380 = vmatprep.subr.bf16.mxu0 %v4436_v5 }
  0xb9   :  { %1542 = vmatprep.subr.bf16.mxu1 %v4439_v6 }
  0xbb   :  { %1381 = vmatpush1.bf16.msra.mxu0 %v4434_v7 }
  0xbc   :  { %1543 = vmatpush1.bf16.msra.mxu1 %v4437_v8  ;;  %1382 = vmatprep.subr.bf16.mxu0 %v4442_v9 }
  0xbd   :  { %1544 = vmatprep.subr.bf16.mxu1 %v4445_v10 }
  0xbf   :  { %1383 = vmatpush1.bf16.msra.mxu0 %v4440_v11 }
  0xc0   :  { %1545 = vmatpush1.bf16.msra.mxu1 %v4443_v12  ;;  %4061 = vmatprep.subr.bf16.mxu0 %v4454_v14 }
  0xc1   :  { %1546 = vmatprep.subr.bf16.mxu1 %v4450_v13 }
  0xc2   :  { %1385 = vmatmul.mubr.bf16.vlgmr.msra.gmra.mrb[0].mxu0 %v3634_v18 }
  0xc3   :  { %4062 = vmatpush3.bf16.msra.mxu0 %v4455_v17 }
  0xc4   :  { %1547 = vmatpush1.bf16.msra.mxu1 %v4448_v15  ;;  %4063 = vmatprep.subr.bf16.mxu0 %v4456_v20 }
  0xc5   :  { %1557 = vmatprep.subr.bf16.mxu1 %v4453_v19 }
  0xc7   :  { %1549 = vmatmul.mubr.bf16.vlgmr.msra.gmra.mrb[4].mxu1 %v3634_v18  ;;  %4064 = vmatpush3.bf16.msra.mxu0 %v4457_v16 }
  0xc8   :  { %1558 = vmatpush1.bf16.msra.mxu1 %v4451_v21  ;;  %1589 = vmatprep.mubr.bf16.mxu1 %v4804_v2 }
  0xc9   :  { %1856 = vmatprep.subr.bf16.mxu1 %v4804_v2  ;;  %4065 = vmatprep.subr.bf16.mxu0 %v4458_v22 }
  0xcb   :  { %4066 = vmatpush3.bf16.msra.mxu0 %v4459_v23 }
  0xcc   :  { %4067 = vmatprep.subr.bf16.mxu0 %v4461_v24 }
  0xcf   :  { %4068 = vmatpush3.bf16.msra.mxu0 %v4462_v25 }
  0xd0   :  { %4069 = vmatprep.subr.bf16.mxu0 %v4464_v26 }
  0xd3   :  { %3834 = vmatmul.mubr.msk.bf16.vlgmr.msra.gmra.mrb[4].mxu1 %vm1266_vm0, %v4755_v31  ;;  %4070 = vmatpush3.bf16.msra.mxu0 %v4465_v28 }
  0xd4   :  { %1857 = vmatpush1.bf16.msra.mxu1 %v4460_v27  ;;  %4071 = vmatprep.subr.bf16.mxu0 %v4467_v29 }
  0xd5   :  { %1858 = vmatprep.subr.bf16.mxu1 %v4804_v2 }
  0xd8   :  { %1859 = vmatpush1.bf16.msra.mxu1 %v4463_v30 }
  0xd9   :  { %1860 = vmatprep.subr.bf16.mxu1 %v4804_v2 }
  0xda   :  { %v1427_v33 = vpop.f32.mrb[0].mxu1 }
  0xdb   :  { %v1429_v34 = vpop.f32.mrb[1].mxu1 }
  0xdc   :  { %v1431_v35 = vpop.f32.mrb[2].mxu1  ;;  %1861 = vmatpush1.bf16.msra.mxu1 %v4466_v32 }
  0xdd   :  { %v1432_v36 = vpop.f32.mrb[3].mxu1  ;;  %1862 = vmatprep.subr.bf16.mxu1 %v4804_v2 }
  0xde   :  { %18 = vsyncpa [#allocation5], 0  ;;  %v4468_v37 = vld [vmem:[%s6254_s4 + $0x28] sm:$0xff]   ;;  %v4469_v38 = vld [vmem:[%s6254_s4 + $0x98] sm:$0xff]   ;;  %v242_v48 = vlaneseq  ;;  %vm1971_vm1 = vcmask 1041408   ;;  %s4805_s17 = smov 108  }
  0xdf   :  { %4072 = vmatpush3.bf16.msra.mxu0 %v4468_v37  ;;  %v4470_v39 = vld [vmem:[%s6254_s4 + $0x70] sm:$0xff]   ;;  %v4472_v41 = vld [vmem:[%s6254_s4 + $0xa0] sm:$0xff]   ;;  %v4473_v42 = vld [vmem:[%s6254_s4 + $0x78] sm:$0xff]   ;;  %vm1967_vm2 = vcmask 162816   ;;  %s4806_s30 = smov [#allocation4]  }
  0xe0   :  { %1863 = vmatpush1.bf16.msra.mxu1 %v4469_v38  ;;  %v4471_v40 = vld [vmem:[%s6254_s4 + $0x30] sm:$0xff]   ;;  %4073 = vmatprep.subr.bf16.mxu0 %v4470_v39  ;;  %v4474_v43 = vld [vmem:[%s6254_s4 + $0x38] sm:$0xff]   ;;  %v4475_v44 = vld [vmem:[%s6254_s4 + $0xa8] sm:$0xff]   ;;  %v5571_v49 = vshrl.u32 %v242_v48, 7 }
  0xe1   :  { %1864 = vmatprep.subr.bf16.mxu1 %v4804_v2  ;;  %v4476_v45 = vld [vmem:[%s6254_s4 + $0xb0] sm:$0xff]   ;;  %v4477_v46 = vld [vmem:[%s6254_s4 + $0xb8] sm:$0xff]   ;;  %v4478_v47 = vld [vmem:[%s6254_s4 + $0xc0] sm:$0xff]  }
  0xe2   :  { %v5574_v50 = vsub.s32 0, %v5571_v49  ;;  %v240_v51 = vld [vmem:[%s6253_s3] sm:$0xf]  ;;  %v5580_v52 = vsub.s32 1, %v5571_v49  ;;  %v5585_v4 = vsub.s32 2, %v5571_v49  ;;  %v5588_v5 = vsub.s32 3, %v5571_v49 }
  0xe3   :  { %4074 = vmatpush3.bf16.msra.mxu0 %v4471_v40  ;;  %v4479_v19 = vld [vmem:[%s6256_s6] ss:$16 sps:$4 sm:$0xff]   ;;  %v4481_v20 = vld [vmem:[%s6256_s6 + $0x4] ss:$16 sps:$4 sm:$0xff]   ;;  %v4486_v39 = vld [vmem:[%s6256_s6 + $0xc] ss:$16 sps:$4 sm:$0xff]  }
  0xe4   :  { %1865 = vmatpush1.bf16.msra.mxu1 %v4472_v41  ;;  %4075 = vmatprep.subr.bf16.mxu0 %v4473_v42  ;;  %v245_v53 = vrot.slane %v240_v51, %v5574_v50  ;;  %v249_v54 = vrot.slane %v240_v51, %v5580_v52  ;;  %v253_v6 = vrot.slane %v240_v51, %v5585_v4  ;;  %v3835_v25 = vld [vmem:[%s6255_s5] ss:$0 sm:$0xff]  ;;  %v4507_v48 = vld [vmem:[%s6258_s8 + $0xa8] ss:$28 sps:$4 sm:$0xff]  }
  0xe5   :  { %1866 = vmatprep.subr.bf16.mxu1 %v4804_v2  ;;  %v257_v7 = vrot.slane %v240_v51, %v5588_v5  ;;  %v4489_v41 = vld [vmem:[%s6258_s8] ss:$28 sps:$4 sm:$0xff]  }
  0xe6   :  { %v4491_v42 = vld [vmem:[%s6258_s8 + $0x4] ss:$28 sps:$4 sm:$0xff]  }
  0xe7   :  { %4076 = vmatpush3.bf16.msra.mxu0 %v4474_v43  ;;  %v4497_v43 = vld [vmem:[%s6258_s8 + $0x3c] ss:$28 sps:$4 sm:$0xff]   ;;  %v4515_v51 = vld [vmem:[%s6258_s8 + $0xe4] ss:$28 sps:$4 sm:$0xff]  }
  0xe8   :  { %1867 = vmatpush1.bf16.msra.mxu1 %v4475_v44  ;;  %3214 = vmatprep.subr.bf16.mxu0 %v4491_v42  ;;  %v4495_v44 = vld [vmem:[%s6258_s8 + $0x38] ss:$28 sps:$4 sm:$0xff]  }
  0xe9   :  { %1868 = vmatprep.subr.bf16.mxu1 %v4804_v2  ;;  %v4552_v42 = vld [vmem:[%s6258_s8 + $0x238] ss:$28 sps:$4 sm:$0xff]  }
  0xec   :  { %1869 = vmatpush1.bf16.msra.mxu1 %v4476_v45  ;;  %v4503_v45 = vld [vmem:[%s6258_s8 + $0x74] ss:$28 sps:$4 sm:$0xff]  }
  0xed   :  { %1870 = vmatprep.subr.bf16.mxu1 %v4804_v2 }
  0xf0   :  { %1871 = vmatpush1.bf16.msra.mxu1 %v4477_v46  ;;  %v4501_v46 = vld [vmem:[%s6258_s8 + $0x70] ss:$28 sps:$4 sm:$0xff]  }
  0xf1   :  { %1872 = vmatprep.subr.bf16.mxu1 %v4804_v2 }
  0xf4   :  { %1873 = vmatpush1.bf16.msra.mxu1 %v4478_v47  ;;  %v4509_v47 = vld [vmem:[%s6258_s8 + $0xac] ss:$28 sps:$4 sm:$0xff]  }
  0xf5   :  { %1984 = vmatprep.subr.bf16.mxu1 %v4481_v20 }
 0x195   :  { %v1386_v55 = vpop.f32.mrb[0].mxu0 }
 0x196   :  { %v4105_v56 = vadd.f32 %v1386_v55, %v245_v53  ;;  %v1388_v57 = vpop.f32.mrb[1].mxu0  ;;  %v4513_v53 = vld [vmem:[%s6258_s8 + $0xe0] ss:$28 sps:$4 sm:$0xff]   ;;  %v4519_v55 = vld [vmem:[%s6258_s8 + $0x118] ss:$28 sps:$4 sm:$0xff]  }
 0x197   :  { %v4107_v58 = vadd.f32 %v1388_v57, %v249_v54  ;;  %v1390_v59 = vpop.f32.mrb[2].mxu0  ;;  %v4521_v54 = vld [vmem:[%s6258_s8 + $0x11c] ss:$28 sps:$4 sm:$0xff]   ;;  %v4525_v57 = vld [vmem:[%s6258_s8 + $0x150] ss:$28 sps:$4 sm:$0xff]  }
 0x198   :  { %v4106_v60 = vadd.f32 %v4105_v56, %v1427_v33  ;;  %v1391_v61 = vpop.f32.mrb[3].mxu0  ;;  %v4527_v56 = vld [vmem:[%s6258_s8 + $0x154] ss:$28 sps:$4 sm:$0xff]   ;;  %v4531_v59 = vld [vmem:[%s6258_s8 + $0x188] ss:$28 sps:$4 sm:$0xff]  }
 0x199   :  { %v4108_v62 = vadd.f32 %v4107_v58, %v1429_v34  ;;  %v1913_v34 = vld [vmem:[%s6256_s6 + $0x20] sm:$0x33]  ;;  %v4533_v58 = vld [vmem:[%s6258_s8 + $0x18c] ss:$28 sps:$4 sm:$0xff]  }
 0x19a   :  { %v1598_v63 = vmax.f32 %v4106_v60, 0.0  ;;  %v3867_v36 = vcombine.high %v1913_v34, %v1913_v34  ;;  %v3866_v37 = vcombine.low %v1913_v34, %v1913_v34  ;;  %v4539_v60 = vld [vmem:[%s6258_s8 + $0x1c4] ss:$28 sps:$4 sm:$0xff]   ;;  %v4528_v34 = vld [vmem:[%s6258_s8 + $0x158] ss:$28 sps:$4 sm:$0xff]  }
 0x19b   :  { %v1599_v0 = vmax.f32 %v4108_v62, 0.0  ;;  %v4537_v61 = vld [vmem:[%s6258_s8 + $0x1c0] ss:$28 sps:$4 sm:$0xff]  }
 0x19c   :  { %v1602_v3 = vpack.c.bf16 %v1598_v63, %v1598_v63  ;;  %v1973_v38 = vsel %vm1971_vm1, %v3866_v37, 0  ;;  %v4545_v62 = vld [vmem:[%s6258_s8 + $0x1fc] ss:$28 sps:$4 sm:$0xff]   ;;  %v4542_v37 = vld [vmem:[%s6258_s8 + $0x1cc] ss:$28 sps:$4 sm:$0xff]  }
 0x19d   :  { %v1603_v1 = vpack.c.bf16 %v1599_v0, %v1599_v0  ;;  %v4543_v63 = vld [vmem:[%s6258_s8 + $0x1f8] ss:$28 sps:$4 sm:$0xff]  }
 0x19e   :  { %v4551_v0 = vld [vmem:[%s6258_s8 + $0x234] ss:$28 sps:$4 sm:$0xff]  }
 0x19f   :  { %1848 = vmatprep.mubr.bf16.mxu0 %v1603_v1  ;;  %v4549_v1 = vld [vmem:[%s6258_s8 + $0x230] ss:$28 sps:$4 sm:$0xff]  }
 0x1a0   :  { %1849 = vmatmul.mubr.bf16.vlgmr.msra.gmra.mrb[4].mxu0 %v1602_v3  ;;  %v4557_v3 = vld [vmem:[%s6258_s8 + $0x26c] ss:$28 sps:$4 sm:$0xff]  }
 0x1a1   :  { %3215 = vmatpush1.bf16.msra.mxu0 %v4489_v41  ;;  %v4554_v41 = vld [vmem:[%s6258_s8 + $0x23c] ss:$28 sps:$4 sm:$0xff]  }
 0x1a2   :  { %3216 = vmatprep.subr.bf16.mxu0 %v4497_v43  ;;  %v4560_v43 = vld [vmem:[%s6258_s8 + $0x274] ss:$28 sps:$4 sm:$0xff]  }
 0x1a5   :  { %3217 = vmatpush1.bf16.msra.mxu0 %v4495_v44  ;;  %v4558_v44 = vld [vmem:[%s6258_s8 + $0x270] ss:$28 sps:$4 sm:$0xff]  }
 0x1a6   :  { %v1591_v8 = vpop.f32.mrb[4].mxu1  ;;  %3218 = vmatprep.subr.bf16.mxu0 %v4503_v45  ;;  %v4566_v45 = vld [vmem:[%s6258_s8 + $0x2ac] ss:$28 sps:$4 sm:$0xff]  }
 0x1a7   :  { %v4109_v9 = vadd.f32 %v1591_v8, %v253_v6  ;;  %v1593_v10 = vpop.f32.mrb[5].mxu1  ;;  %v4555_v6 = vld [vmem:[%s6258_s8 + $0x268] ss:$28 sps:$4 sm:$0xff]   ;;  %v4561_v8 = vld [vmem:[%s6258_s8 + $0x2a0] ss:$28 sps:$4 sm:$0xff]  }
 0x1a8   :  { %v4110_v11 = vadd.f32 %v1593_v10, %v257_v7  ;;  %v1595_v12 = vpop.f32.mrb[6].mxu1  ;;  %v4563_v7 = vld [vmem:[%s6258_s8 + $0x2a4] ss:$28 sps:$4 sm:$0xff]   ;;  %v4567_v10 = vld [vmem:[%s6258_s8 + $0x2d8] ss:$28 sps:$4 sm:$0xff]  }
 0x1a9   :  { %v1600_v13 = vmax.f32 %v4109_v9, 0.0  ;;  %v1596_v14 = vpop.f32.mrb[7].mxu1  ;;  %3219 = vmatpush1.bf16.msra.mxu0 %v4501_v46  ;;  %v4569_v9 = vld [vmem:[%s6258_s8 + $0x2dc] ss:$28 sps:$4 sm:$0xff]   ;;  %v4564_v46 = vld [vmem:[%s6258_s8 + $0x2a8] ss:$28 sps:$4 sm:$0xff]  }
 0x1aa   :  { %v1601_v15 = vmax.f32 %v4110_v11, 0.0  ;;  %3220 = vmatprep.subr.bf16.mxu0 %v4509_v47  ;;  %v1901_v11 = vld [vmem:[%s6251_s1] sm:$0xff]  ;;  %v1914_v14 = vld [vmem:[%s6256_s6 + $0x28] sm:$0x33] }
 0x1ab   :  { %v1604_v18 = vpack.c.bf16 %v1600_v13, %v1600_v13  ;;  %v3868_v20 = vcombine.low %v1914_v14, %v1914_v14  ;;  %v4572_v47 = vld [vmem:[%s6258_s8 + $0x2e4] ss:$28 sps:$4 sm:$0xff]  }
 0x1ac   :  { %v1605_v17 = vpack.c.bf16 %v1601_v15, %v1601_v15 }
 0x1ad   :  { %3221 = vmatpush1.bf16.msra.mxu0 %v4507_v48  ;;  %v4570_v48 = vld [vmem:[%s6258_s8 + $0x2e0] ss:$28 sps:$4 sm:$0xff]  }
 0x1ae   :  { %3861 = vmatprep.mubr.msk.bf16.mxu1 %vm1266_vm0, %v1605_v17  ;;  %3222 = vmatprep.subr.bf16.mxu0 %v4515_v51  ;;  %v4484_v17 = vld [vmem:[%s6256_s6 + $0x8] ss:$16 sps:$4 sm:$0xff]   ;;  %v4575_v51 = vld [vmem:[%s6258_s8 + $0x314] ss:$28 sps:$4 sm:$0xff]   ;;  %s3618_s6 = sshll.u32 %s4806_s30, 4  ;;  %s3619_s6 = int_to_ptr.vmem [resolvable:$true] %s3618_s6 }
 0x1af   :  { %1889 = vmatmul.mubr.bf16.vlgmr.msra.gmra.mrb[8].mxu1 %v1604_v18  ;;  %p4761_p1 = scmp.lt.s32.totalorder %s3619_s6, %s3619_s6 }
 0x1b0   :  { %2016 = vmatprep.mubr.bf16.mxu1 %v4804_v2  ;;  %1985 = vmatpush1.bf16.msra.mxu1 %v4479_v19  ;;  %v3869_v19 = vcombine.high %v1914_v14, %v1914_v14  ;;  %v4588_v14 = vld [vmem:[%s6258_s8 + $0x388] ss:$28 sps:$4 sm:$0xff]  }
 0x1b1   :  { %3870 = vmatprep.subr.msk.bf16.mxu1 %vm1971_vm1, %v3867_v36  ;;  %3223 = vmatpush1.bf16.msra.mxu0 %v4513_v53  ;;  %v4534_v36 = vld [vmem:[%s6258_s8 + $0x190] ss:$28 sps:$4 sm:$0xff]   ;;  %v4578_v53 = vld [vmem:[%s6258_s8 + $0x31c] ss:$28 sps:$4 sm:$0xff]  }
 0x1b2   :  { %3224 = vmatprep.subr.bf16.mxu0 %v4521_v54  ;;  %v4573_v54 = vld [vmem:[%s6258_s8 + $0x310] ss:$28 sps:$4 sm:$0xff]  }
 0x1b4   :  { %1987 = vmatpush1.bf16.msra.mxu1 %v1973_v38  ;;  %v4540_v38 = vld [vmem:[%s6258_s8 + $0x1c8] ss:$28 sps:$4 sm:$0xff]  }
 0x1b5   :  { %2025 = vmatprep.subr.bf16.mxu1 %v4486_v39  ;;  %3225 = vmatpush1.bf16.msra.mxu0 %v4519_v55  ;;  %v4548_v39 = vld [vmem:[%s6258_s8 + $0x204] ss:$28 sps:$4 sm:$0xff]   ;;  %v4576_v55 = vld [vmem:[%s6258_s8 + $0x318] ss:$28 sps:$4 sm:$0xff]  }
 0x1b6   :  { %3226 = vmatprep.subr.bf16.mxu0 %v4527_v56  ;;  %v4581_v56 = vld [vmem:[%s6258_s8 + $0x34c] ss:$28 sps:$4 sm:$0xff]  }
 0x1b9   :  { %3227 = vmatpush1.bf16.msra.mxu0 %v4525_v57  ;;  %v4584_v57 = vld [vmem:[%s6258_s8 + $0x354] ss:$28 sps:$4 sm:$0xff]  }
 0x1ba   :  { %3228 = vmatprep.subr.bf16.mxu0 %v4533_v58  ;;  %v4579_v58 = vld [vmem:[%s6258_s8 + $0x348] ss:$28 sps:$4 sm:$0xff]  }
 0x1bd   :  { %3229 = vmatpush1.bf16.msra.mxu0 %v4531_v59  ;;  %v4582_v59 = vld [vmem:[%s6258_s8 + $0x350] ss:$28 sps:$4 sm:$0xff]  }
 0x1be   :  { %3230 = vmatprep.subr.bf16.mxu0 %v4539_v60  ;;  %v4587_v60 = vld [vmem:[%s6258_s8 + $0x384] ss:$28 sps:$4 sm:$0xff]  }
 0x1c1   :  { %3231 = vmatpush1.bf16.msra.mxu0 %v4537_v61  ;;  %v4590_v61 = vld [vmem:[%s6258_s8 + $0x38c] ss:$28 sps:$4 sm:$0xff]  }
 0x1c2   :  { %3232 = vmatprep.subr.bf16.mxu0 %v4545_v62  ;;  %v5830_v62 = vld [vmem:[%s6257_s7] sm:$0xf] }
 0x1c5   :  { %3233 = vmatpush1.bf16.msra.mxu0 %v4543_v63  ;;  %v1920_v63 = vrot.slane %v5830_v62, %v5574_v50 }
 0x1c6   :  { %3234 = vmatprep.subr.bf16.mxu0 %v4551_v0  ;;  %v1924_v0 = vrot.slane %v5830_v62, %v5580_v52 }
 0x1c9   :  { %3235 = vmatpush1.bf16.msra.mxu0 %v4549_v1 }
 0x1ca   :  { %3236 = vmatprep.subr.bf16.mxu0 %v4557_v3 }
 0x1cd   :  { %3237 = vmatpush1.bf16.msra.mxu0 %v4555_v6 }
 0x1ce   :  { %3238 = vmatprep.subr.bf16.mxu0 %v4563_v7 }
 0x1d1   :  { %3239 = vmatpush1.bf16.msra.mxu0 %v4561_v8 }
 0x1d2   :  { %3240 = vmatprep.subr.bf16.mxu0 %v4569_v9 }
 0x1d5   :  { %3241 = vmatpush1.bf16.msra.mxu0 %v4567_v10 }
 0x1d6   :  { %3242 = vmatprep.subr.bf16.mxu0 %v4575_v51  ;;  %v4629_v51 = vld [vmem:[%s6258_s8 + $0x50c] ss:$28 sps:$4 sm:$0xff]  }
 0x1d9   :  { %3243 = vmatpush1.bf16.msra.mxu0 %v4573_v54  ;;  %v4627_v54 = vld [vmem:[%s6258_s8 + $0x508] ss:$28 sps:$4 sm:$0xff]  }
 0x1da   :  { %3244 = vmatprep.subr.bf16.mxu0 %v4581_v56 }
 0x1dd   :  { %3245 = vmatpush1.bf16.msra.mxu0 %v4579_v58  ;;  %v4638_v58 = vld [vmem:[%s6258_s8 + $0x54c] ss:$28 sps:$4 sm:$0xff]  }
 0x1de   :  { %3255 = vmatprep.subr.bf16.mxu0 %v4587_v60  ;;  %v4636_v60 = vld [vmem:[%s6258_s8 + $0x548] ss:$28 sps:$4 sm:$0xff]  }
 0x273   :  { %v4077_v21 = vpop.f32.mrb[4].mxu0 }
 0x274   :  { %v4078_v16 = vpop.f32.mrb[5].mxu0 }
 0x275   :  { %v4079_v22 = vadd.f32 %v4078_v16, %v4077_v21  ;;  %v4080_v23 = vpop.f32.mrb[6].mxu0  ;;  %v1979_v21 = vsel %vm1971_vm1, %v3868_v20, 0  ;;  %v4494_v16 = vld [vmem:[%s6258_s8 + $0xc] ss:$28 sps:$4 sm:$0xff]  }
 0x276   :  { %v4081_v24 = vpop.f32.mrb[7].mxu0  ;;  %v4500_v23 = vld [vmem:[%s6258_s8 + $0x44] ss:$28 sps:$4 sm:$0xff]  }
 0x277   :  { %v1851_v26 = vadd.f32 %v4079_v22, %v3835_v25  ;;  %v4492_v22 = vld [vmem:[%s6258_s8 + $0x8] ss:$28 sps:$4 sm:$0xff]   ;;  %v4498_v24 = vld [vmem:[%s6258_s8 + $0x40] ss:$28 sps:$4 sm:$0xff]  }
 0x278   :  { %v4506_v25 = vld [vmem:[%s6258_s8 + $0x7c] ss:$28 sps:$4 sm:$0xff]  }
 0x282   :  { %v1890_v27 = vpop.f32.mrb[8].mxu1 }
 0x283   :  { %v5603_v28 = vadd.f32 %v1890_v27, %v1851_v26  ;;  %v1892_v29 = vpop.f32.mrb[9].mxu1  ;;  %v4504_v26 = vld [vmem:[%s6258_s8 + $0x78] ss:$28 sps:$4 sm:$0xff]  }
 0x284   :  { %v1893_v30 = vpop.f32.mrb[10].mxu1  ;;  %v4512_v27 = vld [vmem:[%s6258_s8 + $0xb4] ss:$28 sps:$4 sm:$0xff]   ;;  %v4518_v29 = vld [vmem:[%s6258_s8 + $0xec] ss:$28 sps:$4 sm:$0xff]  }
 0x285   :  { %v1898_v31 = vmul.f32 0.5, %v5603_v28  ;;  %v1894_v32 = vpop.f32.mrb[11].mxu1  ;;  %v1896_v33 = vpack.c.bf16 %v5603_v28, %v5603_v28  ;;  %v4516_v30 = vld [vmem:[%s6258_s8 + $0xe8] ss:$28 sps:$4 sm:$0xff]  }
 0x286   :  { %v4522_v32 = vld [vmem:[%s6258_s8 + $0x120] ss:$28 sps:$4 sm:$0xff]  }
 0x287   :  { %v1899_v35 = vmul.f32 1.442695, %v1898_v31  ;;  %1897 = vst [vmem:[#allocation4] sm:$0xf] %v1896_v33  ;;  %v4524_v31 = vld [vmem:[%s6258_s8 + $0x124] ss:$28 sps:$4 sm:$0xff]  }
 0x288   :  { %v4530_v33 = vld [vmem:[%s6258_s8 + $0x15c] ss:$28 sps:$4 sm:$0xff]  }
 0x289   :  { %4739 = vpow2.f32 %v1899_v35  ;;  %v4536_v35 = vld [vmem:[%s6258_s8 + $0x194] ss:$28 sps:$4 sm:$0xff]  }
 0x293   :  { %v4740_v40 = vpop.eup %4739 }
 0x294   :  { %1903 = vrot.lane.b32.xlu0 %v4740_v40, %s4805_s17  ;;  %v4546_v40 = vld [vmem:[%s6258_s8 + $0x200] ss:$28 sps:$4 sm:$0xff]  }
 0x306   :  { %v1904_v12 = vpop.permute.xlu0 %1903 }
 0x307   :  { %v1906_v13 = vmul.f32 %v1904_v12, %v1901_v11 }
 0x309   :  { %v1907_v15 = vadd.f32 %v1906_v13, %v5603_v28  ;;  %v4510_v28 = vld [vmem:[%s6258_s8 + $0xb0] ss:$28 sps:$4 sm:$0xff]   ;;  %v4585_v13 = vld [vmem:[%s6258_s8 + $0x380] ss:$28 sps:$4 sm:$0xff]  }
 0x30b   :  { %v1908_v18 = vpack.c.bf16 %v1907_v15, %v1907_v15  ;;  %v1932_v15 = vrot.slane %v5830_v62, %v5588_v5 }
 0x30d   :  { %3871 = vmatmul.mubr.msk.bf16.vlgmr.msra.gmra.mrb[12].mxu1 %vm1967_vm2, %v1908_v18 }
 0x30e   :  { %2026 = vmatpush1.bf16.msra.mxu1 %v4484_v17  ;;  %2057 = vmatprep.mubr.bf16.mxu1 %v4804_v2 }
 0x30f   :  { %3872 = vmatprep.subr.msk.bf16.mxu1 %vm1971_vm1, %v3869_v19  ;;  %v4596_v19 = vld [vmem:[%s6258_s8 + $0x3c4] ss:$28 sps:$4 sm:$0xff]  }
 0x312   :  { %2028 = vmatpush1.bf16.msra.mxu1 %v1979_v21 }
 0x313   :  { %3296 = vmatprep.subr.bf16.mxu1 %v4494_v16 }
 0x315   :  { %3873 = vmatmul.mubr.msk.bf16.vlgmr.msra.gmra.mrb[16].mxu1 %vm1967_vm2, %v1908_v18  ;;  %v4593_v18 = vld [vmem:[%s6258_s8 + $0x3bc] ss:$28 sps:$4 sm:$0xff]  }
 0x316   :  { %3297 = vmatpush1.bf16.msra.mxu1 %v4492_v22 }
 0x317   :  { %3298 = vmatprep.subr.bf16.mxu1 %v4500_v23  ;;  %v4591_v23 = vld [vmem:[%s6258_s8 + $0x3b8] ss:$28 sps:$4 sm:$0xff]  }
 0x31a   :  { %3299 = vmatpush1.bf16.msra.mxu1 %v4498_v24  ;;  %v4594_v24 = vld [vmem:[%s6258_s8 + $0x3c0] ss:$28 sps:$4 sm:$0xff]  }
 0x31b   :  { %3300 = vmatprep.subr.bf16.mxu1 %v4506_v25 }
 0x31e   :  { %3301 = vmatpush1.bf16.msra.mxu1 %v4504_v26  ;;  %v4599_v26 = vld [vmem:[%s6258_s8 + $0x3f4] ss:$28 sps:$4 sm:$0xff]  }
 0x31f   :  { %3302 = vmatprep.subr.bf16.mxu1 %v4512_v27  ;;  %v4602_v27 = vld [vmem:[%s6258_s8 + $0x3fc] ss:$28 sps:$4 sm:$0xff]  }
 0x322   :  { %3303 = vmatpush1.bf16.msra.mxu1 %v4510_v28 }
 0x323   :  { %3304 = vmatprep.subr.bf16.mxu1 %v4518_v29 }
 0x326   :  { %3305 = vmatpush1.bf16.msra.mxu1 %v4516_v30  ;;  %v4597_v30 = vld [vmem:[%s6258_s8 + $0x3f0] ss:$28 sps:$4 sm:$0xff]  }
 0x327   :  { %3306 = vmatprep.subr.bf16.mxu1 %v4524_v31  ;;  %v4600_v31 = vld [vmem:[%s6258_s8 + $0x3f8] ss:$28 sps:$4 sm:$0xff]  }
 0x32a   :  { %3307 = vmatpush1.bf16.msra.mxu1 %v4522_v32  ;;  %v4605_v32 = vld [vmem:[%s6258_s8 + $0x42c] ss:$28 sps:$4 sm:$0xff]  }
 0x32b   :  { %3308 = vmatprep.subr.bf16.mxu1 %v4530_v33  ;;  %v4608_v33 = vld [vmem:[%s6258_s8 + $0x434] ss:$28 sps:$4 sm:$0xff]  }
 0x32e   :  { %3309 = vmatpush1.bf16.msra.mxu1 %v4528_v34  ;;  %v4603_v34 = vld [vmem:[%s6258_s8 + $0x428] ss:$28 sps:$4 sm:$0xff]  }
 0x32f   :  { %3310 = vmatprep.subr.bf16.mxu1 %v4536_v35  ;;  %v4606_v35 = vld [vmem:[%s6258_s8 + $0x430] ss:$28 sps:$4 sm:$0xff]  }
 0x332   :  { %3311 = vmatpush1.bf16.msra.mxu1 %v4534_v36  ;;  %v4611_v36 = vld [vmem:[%s6258_s8 + $0x464] ss:$28 sps:$4 sm:$0xff]  }
 0x333   :  { %3312 = vmatprep.subr.bf16.mxu1 %v4542_v37  ;;  %v4614_v37 = vld [vmem:[%s6258_s8 + $0x46c] ss:$28 sps:$4 sm:$0xff]  }
 0x336   :  { %3313 = vmatpush1.bf16.msra.mxu1 %v4540_v38  ;;  %v4609_v38 = vld [vmem:[%s6258_s8 + $0x460] ss:$28 sps:$4 sm:$0xff]  }
 0x337   :  { %3314 = vmatprep.subr.bf16.mxu1 %v4548_v39  ;;  %v4612_v39 = vld [vmem:[%s6258_s8 + $0x468] ss:$28 sps:$4 sm:$0xff]  }
 0x33a   :  { %3315 = vmatpush1.bf16.msra.mxu1 %v4546_v40  ;;  %v4617_v40 = vld [vmem:[%s6258_s8 + $0x49c] ss:$28 sps:$4 sm:$0xff]  }
 0x33b   :  { %3316 = vmatprep.subr.bf16.mxu1 %v4554_v41  ;;  %v4620_v41 = vld [vmem:[%s6258_s8 + $0x4a4] ss:$28 sps:$4 sm:$0xff]  }
 0x33e   :  { %3317 = vmatpush1.bf16.msra.mxu1 %v4552_v42  ;;  %v4615_v42 = vld [vmem:[%s6258_s8 + $0x498] ss:$28 sps:$4 sm:$0xff]  }
 0x33f   :  { %3318 = vmatprep.subr.bf16.mxu1 %v4560_v43  ;;  %v4618_v43 = vld [vmem:[%s6258_s8 + $0x4a0] ss:$28 sps:$4 sm:$0xff]  }
 0x342   :  { %3319 = vmatpush1.bf16.msra.mxu1 %v4558_v44  ;;  %v4623_v44 = vld [vmem:[%s6258_s8 + $0x4d4] ss:$28 sps:$4 sm:$0xff]  }
 0x343   :  { %3320 = vmatprep.subr.bf16.mxu1 %v4566_v45  ;;  %v4626_v45 = vld [vmem:[%s6258_s8 + $0x4dc] ss:$28 sps:$4 sm:$0xff]  }
 0x346   :  { %3321 = vmatpush1.bf16.msra.mxu1 %v4564_v46  ;;  %v4621_v46 = vld [vmem:[%s6258_s8 + $0x4d0] ss:$28 sps:$4 sm:$0xff]  }
 0x347   :  { %3322 = vmatprep.subr.bf16.mxu1 %v4572_v47  ;;  %v4624_v47 = vld [vmem:[%s6258_s8 + $0x4d8] ss:$28 sps:$4 sm:$0xff]  }
 0x34a   :  { %3323 = vmatpush1.bf16.msra.mxu1 %v4570_v48  ;;  %v1928_v48 = vrot.slane %v5830_v62, %v5585_v4  ;;  %v4641_v62 = vld [vmem:[%s6258_s8 + $0x14] ss:$28 sps:$4 sm:$0xff]  }
 0x34b   :  { %3324 = vmatprep.subr.bf16.mxu1 %v4578_v53  ;;  %v4632_v53 = vld [vmem:[%s6258_s8 + $0x514] ss:$28 sps:$4 sm:$0xff]  }
 0x34e   :  { %3325 = vmatpush1.bf16.msra.mxu1 %v4576_v55  ;;  %v4630_v55 = vld [vmem:[%s6258_s8 + $0x510] ss:$28 sps:$4 sm:$0xff]  }
 0x34f   :  { %3326 = vmatprep.subr.bf16.mxu1 %v4584_v57  ;;  %v4635_v57 = vld [vmem:[%s6258_s8 + $0x544] ss:$28 sps:$4 sm:$0xff]  }
 0x352   :  { %3327 = vmatpush1.bf16.msra.mxu1 %v4582_v59  ;;  %v4633_v59 = vld [vmem:[%s6258_s8 + $0x540] ss:$28 sps:$4 sm:$0xff]  }
 0x353   :  { %3337 = vmatprep.subr.bf16.mxu1 %v4590_v61 }
 0x3e0   :  { %v2018_v1 = vpop.f32.mrb[12].mxu1 }
 0x3e1   :  { %v2019_v3 = vadd.f32 %v2018_v1, %v1920_v63  ;;  %v2020_v6 = vpop.f32.mrb[13].mxu1  ;;  %v4642_v63 = vld [vmem:[%s6258_s8 + $0x1d8] ss:$28 sps:$4 sm:$0xff]  }
 0x3e2   :  { %v2021_v7 = vadd.f32 %v2020_v6, %v1924_v0  ;;  %v2022_v8 = vpop.f32.mrb[14].mxu1  ;;  %v4639_v0 = vld [vmem:[%s6258_s8 + $0x10] ss:$28 sps:$4 sm:$0xff]  }
 0x3e3   :  { %v2066_v9 = vmax.f32 %v2019_v3, 0.0  ;;  %v2023_v10 = vpop.f32.mrb[15].mxu1  ;;  %v4643_v3 = vld [vmem:[%s6258_s8 + $0x18] ss:$28 sps:$4 sm:$0xff]   ;;  %v4646_v6 = vld [vmem:[%s6258_s8 + $0x4c] ss:$28 sps:$4 sm:$0xff]  }
 0x3e4   :  { %v2067_v11 = vmax.f32 %v2021_v7, 0.0  ;;  %v4647_v7 = vld [vmem:[%s6258_s8 + $0x210] ss:$28 sps:$4 sm:$0xff]   ;;  %v4644_v8 = vld [vmem:[%s6258_s8 + $0x48] ss:$28 sps:$4 sm:$0xff]  }
 0x3e5   :  { %v5846_v17 = vpack.c.bf16 %v2066_v9, %v2066_v9  ;;  %v4648_v9 = vld [vmem:[%s6258_s8 + $0x50] ss:$28 sps:$4 sm:$0xff]   ;;  %v4651_v10 = vld [vmem:[%s6258_s8 + $0x84] ss:$28 sps:$4 sm:$0xff]  }
 0x3e6   :  { %v5836_v12 = vpack.c.bf16 %v2067_v11, %v2067_v11  ;;  %v4652_v11 = vld [vmem:[%s6258_s8 + $0x248] ss:$28 sps:$4 sm:$0xff]  }
 0x3e8   :  { %v5854_v20 = vpop.f32.mrb[16].mxu1  ;;  %3246 = vmatprep.mubr.bf16.mxu0 %v5836_v12  ;;  %3328 = vmatprep.mubr.bf16.mxu1 %v5836_v12 }
 0x3e9   :  { %v2061_v21 = vpop.f32.mrb[17].mxu1  ;;  %3247 = vmatmul.mubr.bf16.vlgmr.msra.gmra.mrb[8].mxu0 %v5846_v17  ;;  %3329 = vmatmul.mubr.bf16.vlgmr.msra.gmra.mrb[20].mxu1 %v5846_v17  ;;  %v2060_v56 = vadd.f32 %v5854_v20, %v1928_v48  ;;  %v4661_v20 = vld [vmem:[%s6258_s8 + $0xf4] ss:$28 sps:$4 sm:$0xff]  }
 0x3ea   :  { %v2062_v16 = vadd.f32 %v2061_v21, %v1932_v15  ;;  %3256 = vmatpush1.bf16.msra.mxu0 %v4585_v13  ;;  %3338 = vmatpush1.bf16.msra.mxu1 %v4588_v14  ;;  %v2063_v22 = vpop.f32.mrb[18].mxu1  ;;  %v4649_v13 = vld [vmem:[%s6258_s8 + $0x80] ss:$28 sps:$4 sm:$0xff]   ;;  %v4662_v21 = vld [vmem:[%s6258_s8 + $0x2b8] ss:$28 sps:$4 sm:$0xff]  }
 0x3eb   :  { %v2064_v25 = vpop.f32.mrb[19].mxu1  ;;  %3257 = vmatprep.subr.bf16.mxu0 %v4593_v18  ;;  %3339 = vmatprep.subr.bf16.mxu1 %v4596_v19  ;;  %v2068_v61 = vmax.f32 %v2060_v56, 0.0  ;;  %v4656_v14 = vld [vmem:[%s6258_s8 + $0xbc] ss:$28 sps:$4 sm:$0xff]   ;;  %v4697_v48 = vld [vmem:[%s6258_s8 + $0x2b4] ss:$28 sps:$4 sm:$0xff]  }
 0x3ec   :  { %v2069_v28 = vmax.f32 %v2062_v16, 0.0  ;;  %v4657_v15 = vld [vmem:[%s6258_s8 + $0x280] ss:$28 sps:$4 sm:$0xff]   ;;  %v4654_v18 = vld [vmem:[%s6258_s8 + $0xb8] ss:$28 sps:$4 sm:$0xff]  }
 0x3ed   :  { %v5968_v1 = vpack.c.bf16 %v2068_v61, %v2068_v61  ;;  %v4658_v19 = vld [vmem:[%s6258_s8 + $0xc0] ss:$28 sps:$4 sm:$0xff]   ;;  %v4659_v16 = vld [vmem:[%s6258_s8 + $0xf0] ss:$28 sps:$4 sm:$0xff]   ;;  %v4663_v22 = vld [vmem:[%s6258_s8 + $0xf8] ss:$28 sps:$4 sm:$0xff]  }
 0x3ee   :  { %v5872_v29 = vpack.c.bf16 %v2069_v28, %v2069_v28  ;;  %3258 = vmatpush1.bf16.msra.mxu0 %v4591_v23  ;;  %3340 = vmatpush1.bf16.msra.mxu1 %v4594_v24  ;;  %v4666_v23 = vld [vmem:[%s6258_s8 + $0x12c] ss:$28 sps:$4 sm:$0xff]   ;;  %v4707_v61 = vld [vmem:[%s6258_s8 + $0x358] ss:$28 sps:$4 sm:$0xff]  }
 0x3ef   :  { %3259 = vmatprep.subr.bf16.mxu0 %v4599_v26  ;;  %3341 = vmatprep.subr.bf16.mxu1 %v4602_v27  ;;  %v4667_v24 = vld [vmem:[%s6258_s8 + $0x2f0] ss:$28 sps:$4 sm:$0xff]   ;;  %v4664_v25 = vld [vmem:[%s6258_s8 + $0x128] ss:$28 sps:$4 sm:$0xff]  }
 0x3f0   :  { %4049 = vmatprep.mubr.msk.bf16.mxu0 %vm1266_vm0, %v5872_v29  ;;  %4050 = vmatprep.mubr.msk.bf16.mxu1 %vm1266_vm0, %v5872_v29  ;;  %v4668_v26 = vld [vmem:[%s6258_s8 + $0x130] ss:$28 sps:$4 sm:$0xff]   ;;  %v4671_v27 = vld [vmem:[%s6258_s8 + $0x164] ss:$28 sps:$4 sm:$0xff]  }
 0x3f1   :  { %v4672_v28 = vld [vmem:[%s6258_s8 + $0x328] ss:$28 sps:$4 sm:$0xff]   ;;  %v4702_v56 = vld [vmem:[%s6258_s8 + $0x4b0] ss:$28 sps:$4 sm:$0xff]  }
 0x3f2   :  { %3260 = vmatpush1.bf16.msra.mxu0 %v4597_v30  ;;  %3342 = vmatpush1.bf16.msra.mxu1 %v4600_v31  ;;  %v4669_v30 = vld [vmem:[%s6258_s8 + $0x160] ss:$28 sps:$4 sm:$0xff]   ;;  %v4673_v31 = vld [vmem:[%s6258_s8 + $0x168] ss:$28 sps:$4 sm:$0xff]  }
 0x3f3   :  { %3261 = vmatprep.subr.bf16.mxu0 %v4605_v32  ;;  %3343 = vmatprep.subr.bf16.mxu1 %v4608_v33  ;;  %v4676_v32 = vld [vmem:[%s6258_s8 + $0x19c] ss:$28 sps:$4 sm:$0xff]  }
 0x3f4   :  { %v4677_v33 = vld [vmem:[%s6258_s8 + $0x360] ss:$28 sps:$4 sm:$0xff]  }
 0x3f6   :  { %3262 = vmatpush1.bf16.msra.mxu0 %v4603_v34  ;;  %3344 = vmatpush1.bf16.msra.mxu1 %v4606_v35  ;;  %v4674_v34 = vld [vmem:[%s6258_s8 + $0x198] ss:$28 sps:$4 sm:$0xff]   ;;  %v4678_v35 = vld [vmem:[%s6258_s8 + $0x1a0] ss:$28 sps:$4 sm:$0xff]  }
 0x3f7   :  { %3263 = vmatprep.subr.bf16.mxu0 %v4611_v36  ;;  %3345 = vmatprep.subr.bf16.mxu1 %v4614_v37  ;;  %v4681_v36 = vld [vmem:[%s6258_s8 + $0x1d4] ss:$28 sps:$4 sm:$0xff]  }
 0x3f8   :  { %v4679_v37 = vld [vmem:[%s6258_s8 + $0x1d0] ss:$28 sps:$4 sm:$0xff]  }
 0x3fa   :  { %3264 = vmatpush1.bf16.msra.mxu0 %v4609_v38  ;;  %3346 = vmatpush1.bf16.msra.mxu1 %v4612_v39  ;;  %v4682_v38 = vld [vmem:[%s6258_s8 + $0x398] ss:$28 sps:$4 sm:$0xff]   ;;  %v4685_v39 = vld [vmem:[%s6258_s8 + $0x20c] ss:$28 sps:$4 sm:$0xff]  }
 0x3fb   :  { %3265 = vmatprep.subr.bf16.mxu0 %v4617_v40  ;;  %3347 = vmatprep.subr.bf16.mxu1 %v4620_v41  ;;  %v4683_v40 = vld [vmem:[%s6258_s8 + $0x208] ss:$28 sps:$4 sm:$0xff]   ;;  %v4686_v41 = vld [vmem:[%s6258_s8 + $0x3d0] ss:$28 sps:$4 sm:$0xff]  }
 0x3fe   :  { %3266 = vmatpush1.bf16.msra.mxu0 %v4615_v42  ;;  %3348 = vmatpush1.bf16.msra.mxu1 %v4618_v43  ;;  %v4689_v42 = vld [vmem:[%s6258_s8 + $0x244] ss:$28 sps:$4 sm:$0xff]  }
 0x3ff   :  { %3267 = vmatprep.subr.bf16.mxu0 %v4623_v44  ;;  %3349 = vmatprep.subr.bf16.mxu1 %v4626_v45  ;;  %v4687_v43 = vld [vmem:[%s6258_s8 + $0x240] ss:$28 sps:$4 sm:$0xff]   ;;  %v4690_v44 = vld [vmem:[%s6258_s8 + $0x408] ss:$28 sps:$4 sm:$0xff]  }
 0x400   :  { %v4693_v45 = vld [vmem:[%s6258_s8 + $0x27c] ss:$28 sps:$4 sm:$0xff]  }
 0x402   :  { %3268 = vmatpush1.bf16.msra.mxu0 %v4621_v46  ;;  %3350 = vmatpush1.bf16.msra.mxu1 %v4624_v47  ;;  %v4691_v46 = vld [vmem:[%s6258_s8 + $0x278] ss:$28 sps:$4 sm:$0xff]   ;;  %v4694_v47 = vld [vmem:[%s6258_s8 + $0x440] ss:$28 sps:$4 sm:$0xff]  }
 0x403   :  { %3269 = vmatprep.subr.bf16.mxu0 %v4629_v51  ;;  %3351 = vmatprep.subr.bf16.mxu1 %v4632_v53  ;;  %v4695_v51 = vld [vmem:[%s6258_s8 + $0x2b0] ss:$28 sps:$4 sm:$0xff]   ;;  %v4698_v53 = vld [vmem:[%s6258_s8 + $0x478] ss:$28 sps:$4 sm:$0xff]  }
 0x406   :  { %3270 = vmatpush1.bf16.msra.mxu0 %v4627_v54  ;;  %3352 = vmatpush1.bf16.msra.mxu1 %v4630_v55  ;;  %v4701_v54 = vld [vmem:[%s6258_s8 + $0x2ec] ss:$28 sps:$4 sm:$0xff]  }
 0x407   :  { %3271 = vmatprep.subr.bf16.mxu0 %v4635_v57  ;;  %3353 = vmatprep.subr.bf16.mxu1 %v4638_v58  ;;  %v4699_v55 = vld [vmem:[%s6258_s8 + $0x2e8] ss:$28 sps:$4 sm:$0xff]   ;;  %v4703_v58 = vld [vmem:[%s6258_s8 + $0x320] ss:$28 sps:$4 sm:$0xff]  }
 0x408   :  { %v4705_v57 = vld [vmem:[%s6258_s8 + $0x324] ss:$28 sps:$4 sm:$0xff]  }
 0x40a   :  { %3272 = vmatpush1.bf16.msra.mxu0 %v4633_v59  ;;  %3354 = vmatpush1.bf16.msra.mxu1 %v4636_v60  ;;  %v4706_v59 = vld [vmem:[%s6258_s8 + $0x4e8] ss:$28 sps:$4 sm:$0xff]   ;;  %v4709_v60 = vld [vmem:[%s6258_s8 + $0x35c] ss:$28 sps:$4 sm:$0xff]  }
 0x40b   :  { %3378 = vmatprep.subr.bf16.mxu0 %v4641_v62  ;;  %4083 = vmatprep.subr.bf16.mxu1 %v4642_v63  ;;  %v4710_v62 = vld [vmem:[%s6258_s8 + $0x520] ss:$28 sps:$4 sm:$0xff]   ;;  %v4713_v63 = vld [vmem:[%s6258_s8 + $0x394] ss:$28 sps:$4 sm:$0xff]  }
 0x40d   :  { %3288 = vmatmul.mubr.bf16.vlgmr.msra.gmra.mrb[8].mxu0 %v5968_v1  ;;  %3370 = vmatmul.mubr.bf16.vlgmr.msra.gmra.mrb[20].mxu1 %v5968_v1 }
 0x40e   :  { %3379 = vmatpush1.bf16.msra.mxu0 %v4639_v0  ;;  %3410 = vmatprep.mubr.bf16.mxu0 %v5836_v12  ;;  %v4711_v0 = vld [vmem:[%s6258_s8 + $0x390] ss:$28 sps:$4 sm:$0xff]  }
 0x40f   :  { %4084 = vmatpush3.bf16.msra.mxu1 %v4643_v3  ;;  %3492 = vmatprep.mubr.bf16.mxu1 %v5836_v12  ;;  %v4653_v12 = vld [vmem:[%s6258_s8 + $0x88] ss:$28 sps:$4 sm:$0xff]   ;;  %v4714_v3 = vld [vmem:[%s6258_s8 + $0x558] ss:$28 sps:$4 sm:$0xff]  }
 0x410   :  { %3380 = vmatprep.subr.bf16.mxu0 %v4646_v6  ;;  %4085 = vmatprep.subr.bf16.mxu1 %v4647_v7  ;;  %v4717_v6 = vld [vmem:[%s6258_s8 + $0x3cc] ss:$28 sps:$4 sm:$0xff]  }
 0x411   :  { %v4715_v7 = vld [vmem:[%s6258_s8 + $0x3c8] ss:$28 sps:$4 sm:$0xff]  }
 0x412   :  { %3381 = vmatpush1.bf16.msra.mxu0 %v4644_v8  ;;  %v4720_v8 = vld [vmem:[%s6258_s8 + $0x404] ss:$28 sps:$4 sm:$0xff]  }
 0x413   :  { %4086 = vmatpush3.bf16.msra.mxu1 %v4648_v9  ;;  %3382 = vmatprep.subr.bf16.mxu0 %v4651_v10  ;;  %v4726_v9 = vld [vmem:[%s6258_s8 + $0x474] ss:$28 sps:$4 sm:$0xff]  }
 0x414   :  { %4087 = vmatprep.subr.bf16.mxu1 %v4652_v11  ;;  %v4724_v10 = vld [vmem:[%s6258_s8 + $0x470] ss:$28 sps:$4 sm:$0xff]  }
 0x415   :  { %v4729_v11 = vld [vmem:[%s6258_s8 + $0x4ac] ss:$28 sps:$4 sm:$0xff]  }
 0x416   :  { %3383 = vmatpush1.bf16.msra.mxu0 %v4649_v13  ;;  %v4727_v13 = vld [vmem:[%s6258_s8 + $0x4a8] ss:$28 sps:$4 sm:$0xff]  }
 0x417   :  { %4088 = vmatpush3.bf16.msra.mxu1 %v4653_v12  ;;  %3384 = vmatprep.subr.bf16.mxu0 %v4656_v14  ;;  %v4732_v12 = vld [vmem:[%s6258_s8 + $0x4e4] ss:$28 sps:$4 sm:$0xff]  }
 0x418   :  { %4089 = vmatprep.subr.bf16.mxu1 %v4657_v15  ;;  %v4730_v14 = vld [vmem:[%s6258_s8 + $0x4e0] ss:$28 sps:$4 sm:$0xff]  }
 0x419   :  { %v4735_v15 = vld [vmem:[%s6258_s8 + $0x51c] ss:$28 sps:$4 sm:$0xff]  }
 0x41a   :  { %3385 = vmatpush1.bf16.msra.mxu0 %v4654_v18  ;;  %v4733_v18 = vld [vmem:[%s6258_s8 + $0x518] ss:$28 sps:$4 sm:$0xff]  }
 0x41b   :  { %4090 = vmatpush3.bf16.msra.mxu1 %v4658_v19  ;;  %3386 = vmatprep.subr.bf16.mxu0 %v4661_v20  ;;  %v4738_v19 = vld [vmem:[%s6258_s8 + $0x554] ss:$28 sps:$4 sm:$0xff]  }
 0x41c   :  { %4091 = vmatprep.subr.bf16.mxu1 %v4662_v21  ;;  %v4736_v20 = vld [vmem:[%s6258_s8 + $0x550] ss:$28 sps:$4 sm:$0xff]   ;;  %v6210_v21 = vld [vmem:[%s6259_s9] sm:$0x7f] }
 0x41e   :  { %3387 = vmatpush1.bf16.msra.mxu0 %v4659_v16  ;;  %v2279_v16 = vrot.slane %v6210_v21, %v5574_v50 }
 0x41f   :  { %4092 = vmatpush3.bf16.msra.mxu1 %v4663_v22  ;;  %3388 = vmatprep.subr.bf16.mxu0 %v4666_v23  ;;  %v2287_v22 = vrot.slane %v6210_v21, %v5585_v4  ;;  %v2283_v23 = vrot.slane %v6210_v21, %v5580_v52 }
 0x420   :  { %4093 = vmatprep.subr.bf16.mxu1 %v4667_v24 }
 0x422   :  { %3389 = vmatpush1.bf16.msra.mxu0 %v4664_v25 }
 0x423   :  { %4094 = vmatpush3.bf16.msra.mxu1 %v4668_v26  ;;  %3390 = vmatprep.subr.bf16.mxu0 %v4671_v27 }
 0x424   :  { %4095 = vmatprep.subr.bf16.mxu1 %v4672_v28 }
 0x426   :  { %3391 = vmatpush1.bf16.msra.mxu0 %v4669_v30 }
 0x427   :  { %4096 = vmatpush3.bf16.msra.mxu1 %v4673_v31  ;;  %3392 = vmatprep.subr.bf16.mxu0 %v4676_v32 }
 0x428   :  { %4097 = vmatprep.subr.bf16.mxu1 %v4677_v33 }
 0x42a   :  { %3393 = vmatpush1.bf16.msra.mxu0 %v4674_v34 }
 0x42b   :  { %4098 = vmatpush3.bf16.msra.mxu1 %v4678_v35  ;;  %3394 = vmatprep.subr.bf16.mxu0 %v4681_v36 }
 0x42c   :  { %3500 = vmatprep.subr.bf16.mxu1 %v4804_v2 }
 0x42e   :  { %3493 = vmatmul.mubr.bf16.vlgmr.msra.gmra.mrb[24].mxu1 %v5846_v17  ;;  %3395 = vmatpush1.bf16.msra.mxu0 %v4679_v37 }
 0x42f   :  { %3501 = vmatpush1.bf16.msra.mxu1 %v4682_v38  ;;  %4052 = vmatprep.mubr.msk.bf16.mxu1 %vm1266_vm0, %v5872_v29 }
 0x430   :  { %3396 = vmatprep.subr.bf16.mxu0 %v4685_v39  ;;  %3502 = vmatprep.subr.bf16.mxu1 %v4804_v2 }
 0x432   :  { %3397 = vmatpush1.bf16.msra.mxu0 %v4683_v40 }
 0x433   :  { %3503 = vmatpush1.bf16.msra.mxu1 %v4686_v41  ;;  %3398 = vmatprep.subr.bf16.mxu0 %v4689_v42 }
 0x434   :  { %3504 = vmatprep.subr.bf16.mxu1 %v4804_v2 }
 0x436   :  { %3399 = vmatpush1.bf16.msra.mxu0 %v4687_v43 }
 0x437   :  { %3505 = vmatpush1.bf16.msra.mxu1 %v4690_v44  ;;  %3400 = vmatprep.subr.bf16.mxu0 %v4693_v45 }
 0x438   :  { %3506 = vmatprep.subr.bf16.mxu1 %v4804_v2 }
 0x43a   :  { %3401 = vmatpush1.bf16.msra.mxu0 %v4691_v46 }
 0x43b   :  { %3507 = vmatpush1.bf16.msra.mxu1 %v4694_v47  ;;  %3402 = vmatprep.subr.bf16.mxu0 %v4697_v48 }
 0x43c   :  { %3508 = vmatprep.subr.bf16.mxu1 %v4804_v2 }
 0x43e   :  { %3403 = vmatpush1.bf16.msra.mxu0 %v4695_v51 }
 0x43f   :  { %3509 = vmatpush1.bf16.msra.mxu1 %v4698_v53  ;;  %3404 = vmatprep.subr.bf16.mxu0 %v4701_v54 }
 0x440   :  { %3510 = vmatprep.subr.bf16.mxu1 %v4804_v2 }
 0x442   :  { %3405 = vmatpush1.bf16.msra.mxu0 %v4699_v55 }
 0x443   :  { %3511 = vmatpush1.bf16.msra.mxu1 %v4702_v56  ;;  %3406 = vmatprep.subr.bf16.mxu0 %v4705_v57 }
 0x444   :  { %3512 = vmatprep.subr.bf16.mxu1 %v4804_v2 }
 0x446   :  { %3407 = vmatpush1.bf16.msra.mxu0 %v4703_v58 }
 0x447   :  { %3513 = vmatpush1.bf16.msra.mxu1 %v4706_v59  ;;  %3408 = vmatprep.subr.bf16.mxu0 %v4709_v60 }
 0x448   :  { %3514 = vmatprep.subr.bf16.mxu1 %v4804_v2 }
 0x44a   :  { %3409 = vmatpush1.bf16.msra.mxu0 %v4707_v61 }
 0x44b   :  { %3515 = vmatpush1.bf16.msra.mxu1 %v4710_v62  ;;  %3419 = vmatprep.subr.bf16.mxu0 %v4713_v63 }
 0x44c   :  { %3516 = vmatprep.subr.bf16.mxu1 %v4804_v2  ;;  %v4718_v2 = vld [vmem:[%s6258_s8 + $0x400] ss:$28 sps:$4 sm:$0xff]  }
 0x44d   :  { %3411 = vmatmul.mubr.bf16.vlgmr.msra.gmra.mrb[12].mxu0 %v5846_v17  ;;  %v4723_v17 = vld [vmem:[%s6258_s8 + $0x43c] ss:$28 sps:$4 sm:$0xff]  }
 0x44e   :  { %3420 = vmatpush1.bf16.msra.mxu0 %v4711_v0  ;;  %4051 = vmatprep.mubr.msk.bf16.mxu0 %vm1266_vm0, %v5872_v29  ;;  %v4721_v29 = vld [vmem:[%s6258_s8 + $0x438] ss:$28 sps:$4 sm:$0xff]   ;;  %s4756_s8 = scalar_lea.vmem %s3619_s6, 64 }
 0x44f   :  { %3517 = vmatpush1.bf16.msra.mxu1 %v4714_v3  ;;  %3421 = vmatprep.subr.bf16.mxu0 %v4717_v6  ;;  %p4757_p0 = scmp.ne.s32.totalorder %s3619_s6, %s4756_s8  ;;  %p4762_p2 = scmp.lt.s32.totalorder %s4756_s8, %s4756_s8 }
 0x451   :  { %p4763_p3 = por %p4762_p2, %p4761_p1 }
 0x452   :  { %3533 = vmatmul.mubr.bf16.vlgmr.msra.gmra.mrb[28].mxu1 %v5968_v1  ;;  %3422 = vmatpush1.bf16.msra.mxu0 %v4715_v7 }
 0x453   :  { %3423 = vmatprep.subr.bf16.mxu0 %v4720_v8  ;;  %p4764_p4 = pnand %p4763_p3, %p4757_p0 }
 0x456   :  { %3424 = vmatpush1.bf16.msra.mxu0 %v4718_v2 }
 0x457   :  { %3425 = vmatprep.subr.bf16.mxu0 %v4723_v17 }
 0x45a   :  { %3426 = vmatpush1.bf16.msra.mxu0 %v4721_v29 }
 0x45b   :  { %3427 = vmatprep.subr.bf16.mxu0 %v4726_v9 }
 0x45e   :  { %3428 = vmatpush1.bf16.msra.mxu0 %v4724_v10 }
 0x45f   :  { %3429 = vmatprep.subr.bf16.mxu0 %v4729_v11 }
 0x462   :  { %3430 = vmatpush1.bf16.msra.mxu0 %v4727_v13 }
 0x463   :  { %3431 = vmatprep.subr.bf16.mxu0 %v4732_v12 }
 0x466   :  { %3432 = vmatpush1.bf16.msra.mxu0 %v4730_v14 }
 0x467   :  { %3433 = vmatprep.subr.bf16.mxu0 %v4735_v15 }
 0x46a   :  { %3434 = vmatpush1.bf16.msra.mxu0 %v4733_v18 }
 0x46b   :  { %3435 = vmatprep.subr.bf16.mxu0 %v4738_v19 }
 0x46e   :  { %3436 = vmatpush1.bf16.msra.mxu0 %v4736_v20 }
 0x471   :  { %3452 = vmatmul.mubr.bf16.vlgmr.msra.gmra.mrb[12].mxu0 %v5968_v1  ;;  %v2291_v1 = vrot.slane %v6210_v21, %v5588_v5 }
 0x472   :  { %4767 = shalt.err (!%p4764_p4)
}
 0x473   :  { %s4768_s13 = scalar_lea.hbm %s6261_s11, 64 }
 0x474   :  { %p4769_p5 = scmp.ne.s32.totalorder %s6261_s11, %s4768_s13  ;;  %p4772_p6 = scmp.lt.u32.totalorder %s4768_s13, %s6261_s11 }
 0x476   :  { %p4774_p7 = pnand %p4772_p6, %p4769_p5 }
 0x478   :  { %4777 = shalt.err (!%p4774_p7)
}
 0x479   :  { %3621 = dma.vmem_to_hbm [thread:$0]  %s3619_s6, 64, %s6261_s11, [#allocation5]   ;;  %v2302_v59 = vsub.s32 6, %v5571_v49  ;;  %vm3600_vm3 = vcmask 125952   ;;  %v2294_v9 = vsub.s32 4, %v5571_v49  ;;  %v2298_v10 = vsub.s32 5, %v5571_v49 }
 0x47a   :  { %s4807_s11 = smov [#allocation2]  }
 0x47b   :  { %v2303_v60 = vrot.slane %v6210_v21, %v2302_v59  ;;  %v2295_v11 = vrot.slane %v6210_v21, %v2294_v9  ;;  %v2299_v13 = vrot.slane %v6210_v21, %v2298_v10  ;;  %s3608_s19 = sshll.u32 %s4807_s11, 4  ;;  %s3609_s19 = int_to_ptr.vmem [resolvable:$true] %s3608_s19 }
 0x47c   :  { %s4778_s20 = scalar_lea.vmem %s3609_s19, 448  ;;  %p4783_p9 = scmp.lt.s32.totalorder %s3609_s19, %s3609_s19 }
 0x47d   :  { %p4779_p8 = scmp.ne.s32.totalorder %s3609_s19, %s4778_s20  ;;  %p4784_p10 = scmp.lt.s32.totalorder %s4778_s20, %s4778_s20 }
 0x47f   :  { %p4785_p11 = por %p4784_p10, %p4783_p9 }
 0x481   :  { %p4786_p12 = pnand %p4785_p11, %p4779_p8 }
 0x4e0   :  { %v3289_v50 = vpop.f32.mrb[8].mxu0  ;;  %v3371_v52 = vpop.f32.mrb[20].mxu1 }
 0x4e1   :  { %v4111_v4 = vadd.f32 %v3289_v50, %v2279_v16  ;;  %v4113_v5 = vadd.f32 %v3371_v52, %v2287_v22  ;;  %v3291_v24 = vpop.f32.mrb[9].mxu0  ;;  %v3373_v25 = vpop.f32.mrb[21].mxu1 }
 0x4e2   :  { %v4112_v26 = vadd.f32 %v3291_v24, %v2283_v23  ;;  %v4114_v27 = vadd.f32 %v3373_v25, %v2291_v1  ;;  %v3293_v28 = vpop.f32.mrb[10].mxu0  ;;  %v3375_v30 = vpop.f32.mrb[22].mxu1 }
 0x4e3   :  { %v3540_v31 = vmul.f32 0.5, %v4111_v4  ;;  %v3542_v32 = vmul.f32 0.5, %v4113_v5  ;;  %v3294_v33 = vpop.f32.mrb[11].mxu0  ;;  %v3376_v34 = vpop.f32.mrb[23].mxu1 }
 0x4e4   :  { %v3541_v35 = vmul.f32 0.5, %v4112_v26  ;;  %v3543_v36 = vmul.f32 0.5, %v4114_v27 }
 0x4e5   :  { %4741 = vtanh.f32 %v3540_v31 }
 0x4e6   :  { %4743 = vtanh.f32 %v3542_v32 }
 0x4e7   :  { %4745 = vtanh.f32 %v3541_v35 }
 0x4e8   :  { %4747 = vtanh.f32 %v3543_v36 }
 0x4ef   :  { %v4742_v37 = vpop.eup %4741 }
 0x4f0   :  { %v4744_v38 = vpop.eup %4743  ;;  %v3554_v39 = vmul.f32 0.5, %v4742_v37 }
 0x4f1   :  { %v4746_v40 = vpop.eup %4745  ;;  %v3556_v41 = vmul.f32 0.5, %v4744_v38 }
 0x4f2   :  { %v4748_v42 = vpop.eup %4747  ;;  %v3561_v43 = vadd.f32 0.5, %v3554_v39  ;;  %v3555_v44 = vmul.f32 0.5, %v4746_v40 }
 0x4f3   :  { %v3563_v45 = vadd.f32 0.5, %v3556_v41  ;;  %v3557_v46 = vmul.f32 0.5, %v4748_v42 }
 0x4f4   :  { %v3562_v47 = vadd.f32 0.5, %v3555_v44 }
 0x4f5   :  { %v3564_v48 = vadd.f32 0.5, %v3557_v46 }
 0x4f6   :  { %v4057_v51 = vpack.c.bf16 %v3562_v47, %v3561_v43 }
 0x4f7   :  { %v4058_v53 = vpack.c.bf16 %v3564_v48, %v3563_v45 }
 0x4f8   :  { %3597 = vst [vmem:[#allocation2] sm:$0xff] %v4057_v51 }
 0x4f9   :  { %3598 = vst [vmem:[#allocation2 + $0x8] sm:$0xff] %v4058_v53 }
 0x501   :  { %v4099_v54 = vpop.f32.mrb[24].mxu1 }
 0x502   :  { %v4100_v55 = vpop.f32.mrb[25].mxu1 }
 0x503   :  { %v4101_v56 = vadd.f32 %v4100_v55, %v4099_v54  ;;  %v4102_v57 = vpop.f32.mrb[26].mxu1 }
 0x504   :  { %v4103_v58 = vpop.f32.mrb[27].mxu1 }
 0x505   :  { %v3495_v61 = vadd.f32 %v4101_v56, %v2303_v60 }
 0x525   :  { %v3534_v62 = vpop.f32.mrb[28].mxu1 }
 0x526   :  { %v3535_v63 = vadd.f32 %v3534_v62, %v3495_v61  ;;  %v3536_v0 = vpop.f32.mrb[29].mxu1 }
 0x527   :  { %v3537_v3 = vpop.f32.mrb[30].mxu1 }
 0x528   :  { %v3546_v6 = vmul.f32 0.5, %v3535_v63  ;;  %v3538_v7 = vpop.f32.mrb[31].mxu1 }
 0x52a   :  { %4749 = vtanh.f32 %v3546_v6 }
 0x534   :  { %v4750_v8 = vpop.eup %4749 }
 0x535   :  { %v3560_v2 = vmul.f32 0.5, %v4750_v8 }
 0x537   :  { %v3567_v17 = vadd.f32 0.5, %v3560_v2 }
 0x539   :  { %v4060_v29 = vpack.c.bf16 %v3567_v17, %v3567_v17 }
 0x53b   :  { %3601 = vst.msk [vmem:[#allocation2 + $0x18] sm:$0xf] %vm3600_vm3, %v4060_v29 }
 0x544   :  { %v3453_v12 = vpop.f32.mrb[12].mxu0 }
 0x545   :  { %v4115_v14 = vadd.f32 %v3453_v12, %v2295_v11  ;;  %v3455_v15 = vpop.f32.mrb[13].mxu0 }
 0x546   :  { %v4116_v18 = vadd.f32 %v3455_v15, %v2299_v13  ;;  %v3457_v19 = vpop.f32.mrb[14].mxu0 }
 0x547   :  { %v3544_v20 = vmul.f32 0.5, %v4115_v14  ;;  %v3458_v16 = vpop.f32.mrb[15].mxu0 }
 0x548   :  { %v3545_v22 = vmul.f32 0.5, %v4116_v18 }
 0x549   :  { %4751 = vtanh.f32 %v3544_v20 }
 0x54a   :  { %4753 = vtanh.f32 %v3545_v22 }
 0x553   :  { %v4752_v23 = vpop.eup %4751 }
 0x554   :  { %v4754_v1 = vpop.eup %4753  ;;  %v3558_v50 = vmul.f32 0.5, %v4752_v23 }
 0x555   :  { %v3559_v52 = vmul.f32 0.5, %v4754_v1 }
 0x556   :  { %v3565_v4 = vadd.f32 0.5, %v3558_v50 }
 0x557   :  { %v3566_v49 = vadd.f32 0.5, %v3559_v52 }
 0x559   :  { %v4059_v5 = vpack.c.bf16 %v3566_v49, %v3565_v4 }
 0x55b   :  { %3599 = vst [vmem:[#allocation2 + $0x10] sm:$0xff] %v4059_v5 }
 0x55c   :  { %4789 = shalt.err (!%p4786_p12)
}
 0x55d   :  { %s4790_s23 = scalar_lea.hbm %s6260_s10, 448 }
 0x55e   :  { %p4791_p13 = scmp.ne.s32.totalorder %s6260_s10, %s4790_s23  ;;  %p4794_p0 = scmp.lt.u32.totalorder %s4790_s23, %s6260_s10 }
 0x560   :  { %p4796_p1 = pnand %p4794_p0, %p4791_p13 }
 0x562   :  { %4799 = shalt.err (!%p4796_p1)
}
 0x563   :  { %3611 = dma.vmem_to_hbm [thread:$0]  %s3609_s19, 448, %s6260_s10, [#allocation3]  }
 0x564   :  { %4800 = dma.done.wait [#allocation3], 448  }
 0x565   :  { %4801 = vsyncadd [#allocation3], 4294966848 }
 0x566   :  { %4802 = dma.done.wait [#allocation5], 64  }
 0x567   :  { %4803 = vsyncadd [#allocation5], 4294967232 }
 0x568   :  { %3628 = vsyncpa [#allocation3], 1 }
 0x569   :  { %3629 = vsyncpa [#allocation5], 1 }

</bundles_post_ra>
